<compile_context>
chip_gen: v7x
topology: tpu7x:2x2x1
jax: 0.10.0
libtpu: 0.0.40
codegen_flags: <defaults>
</compile_context>

<pallas_src>
import functools

import jax
import jax.numpy as jnp
from jax import lax
from jax.experimental import pallas as pl
from jax.experimental.pallas import tpu as pltpu

# ---- config (consistent with the module's shape requirements) ----
EMBED_DIM = 32          # config.embed_dim
CODEBOOK_SIZE = 64      # config.codebook_size
NUM_CODEBOOKS = 8       # module always works with 8 codebooks internally
EXPAND = 1.5            # config.expand_factor
D_INNER = int(EMBED_DIM * EXPAND)   # 48
D_HALF = EMBED_DIM // 2             # 16
NUM_LAYERS = 4
LN_EPS = 1e-5


def _layernorm(x, w, b):
    mean = jnp.mean(x, axis=-1, keepdims=True)
    var = jnp.mean(jnp.square(x - mean), axis=-1, keepdims=True)
    return (x - mean) * lax.rsqrt(var + LN_EPS) * w + b


def _erf(x):
    # Abramowitz & Stegun 7.1.26 polynomial (max abs err ~1.5e-7): matches torch's
    # exact-erf GELU to fp32 noise while using only exp/div (Mosaic-safe lowering).
    p = 0.3275911
    a1, a2, a3, a4, a5 = (0.254829592, -0.284496736, 1.421413741,
                          -1.453152027, 1.061405429)
    ax = jnp.abs(x)
    t = 1.0 / (1.0 + p * ax)
    poly = ((((a5 * t + a4) * t + a3) * t + a2) * t + a1) * t
    y = 1.0 - poly * jnp.exp(-ax * ax)
    return jnp.where(x >= 0.0, y, -y)


def _gelu_exact(x):
    return 0.5 * x * (1.0 + _erf(x * 0.7071067811865476))


def _softplus(x):
    # torch F.softplus default: beta=1, threshold=20
    return jnp.where(x > 20.0, x, jnp.log(1.0 + jnp.exp(jnp.minimum(x, 20.0))))


# --------------------------------------------------------------------------
# Fused forward kernel: one grid step per BLOCK of Bt batch elements.
# --------------------------------------------------------------------------
def fused_forward_kernel(emb_ref,     # (K, Bt, Tp, D)   per-codebook embeddings
                         ctx_ref,     # (Bt, 1, D)       context_proj(text) + mean LN bias
                         eln_w_ref,   # (K, 1, D)        per-codebook LN scale / 8
                         m_vec_ref,   # (L, 4, Din)      rows: ln_w, ln_b, layer_scale, dt bias
                         m_w_in_ref,  # (L, D, 2*Din)    fused in_proj (x1 | x2)
                         m_w_conv_ref,  # (L, 3, Din)    depthwise taps [prev, cur, next]
                         m_w_dt_ref,  # (L, Din, Din)
                         m_w_out_ref,  # (L, Din, D)
                         h_w1_ref,    # (D, K*H)         heads, LN affine pre-folded
                         h_b1_ref,    # (1, K*H)
                         h_w2_ref,    # (K*H, K*V)       block-diagonal
                         h_b2_ref,    # (1, K*V)
                         o_ref,       # (Bt, Tp, K*V)
                         *, t_real):
    K, Bt, Tp, D = emb_ref.shape
    rows = Bt * Tp

    # ---- per-codebook LayerNorm (stats only), mean over K folded into the scale ----
    emb = emb_ref[...]                                           # (K, Bt, Tp, D)
    mu = jnp.mean(emb, axis=-1, keepdims=True)
    var = jnp.mean(jnp.square(emb - mu), axis=-1, keepdims=True)
    normed = (emb - mu) * lax.rsqrt(var + LN_EPS)
    acc = normed[0] * eln_w_ref[0]                               # eln_w already / 8
    for k in range(1, NUM_CODEBOOKS):
        acc = acc + normed[k] * eln_w_ref[k]
    # ctx already contains context_proj(text_context) + mean_k(embed LN bias_k)
    x = (acc + ctx_ref[...]).reshape(rows, D)                    # (rows, D)

    # ---- depthwise-conv boundary masks, built ONCE (outside the layer loop) ----
    t_idx = lax.broadcasted_iota(jnp.int32, (Bt, Tp, D_INNER), 1).reshape(rows, D_INNER)
    mask_prev = (t_idx > 0).astype(jnp.float32)            # zero "prev" at t == 0
    mask_next = (t_idx < (t_real - 1)).astype(jnp.float32)  # zero "next" at t >= T-1 (incl. pad)

    # ---- 4x UnifiedMambaBlock, activations stay VMEM/vreg resident ----
    for l in range(NUM_LAYERS):
        ln_w = m_vec_ref[l, 0:1, 0:D]
        ln_b = m_vec_ref[l, 1:2, 0:D]
        scale = m_vec_ref[l, 2:3, 0:D]
        b_dt = m_vec_ref[l, 3:4, :]

        xn = _layernorm(x, ln_w, ln_b)                                      # (rows, D)
        xp = jnp.dot(xn, m_w_in_ref[l], preferred_element_type=jnp.float32)  # (rows, 2*Din)
        x1 = xp[:, :D_INNER]
        x2 = xp[:, D_INNER:]

        # depthwise conv1d, kernel=3, zero padding=1: XLU rolls + boundary mask
        wc = m_w_conv_ref[l]                                                # (3, Din)
        x_prev = pltpu.roll(x1, shift=1, axis=0) * mask_prev
        x_next = pltpu.roll(x1, shift=rows - 1, axis=0) * mask_next
        conv = x_prev * wc[0:1, :] + x1 * wc[1:2, :] + x_next * wc[2:3, :]

        x1_ssm = conv * jax.nn.sigmoid(conv)                                # SiLU
        dt = jnp.dot(x1_ssm, m_w_dt_ref[l], preferred_element_type=jnp.float32) + b_dt
        dt = _softplus(dt)
        x_gated = (x1_ssm * jax.nn.sigmoid(dt)) * jax.nn.sigmoid(x2)
        out = jnp.dot(x_gated, m_w_out_ref[l], preferred_element_type=jnp.float32)
        x = out * scale + x                                                 # layer_scale + residual

    # ---- 8 output heads, batched into lane-dense matmuls ----
    mu = jnp.mean(x, axis=-1, keepdims=True)
    var = jnp.mean(jnp.square(x - mu), axis=-1, keepdims=True)
    xhat = (x - mu) * lax.rsqrt(var + LN_EPS)                               # (rows, D)
    h = jnp.dot(xhat, h_w1_ref[...], preferred_element_type=jnp.float32) + h_b1_ref[...]
    h = _gelu_exact(h)                                                      # (rows, K*H=128)
    logits = jnp.dot(h, h_w2_ref[...], preferred_element_type=jnp.float32) + h_b2_ref[...]
    o_ref[...] = logits.reshape(Bt, Tp, logits.shape[-1]).astype(o_ref.dtype)


def fused_forward(emb, ctx, eln_w, m_vec, m_w_in, m_w_conv, m_w_dt, m_w_out,
                  h_w1, h_b1, h_w2, h_b2, *, t_real, bt):
    K, Bp, Tp, D = emb.shape
    KV = h_w2.shape[1]
    nblk = Bp // bt

    def full_spec(a):
        r = a.ndim
        return pl.BlockSpec(a.shape, lambda i, _r=r: (0,) * _r)

    weights = (eln_w, m_vec, m_w_in, m_w_conv, m_w_dt, m_w_out, h_w1, h_b1, h_w2, h_b2)
    in_specs = [
        pl.BlockSpec((K, bt, Tp, D), lambda i: (0, i, 0, 0)),
        pl.BlockSpec((bt, 1, D), lambda i: (i, 0, 0)),
    ] + [full_spec(a) for a in weights]

    kernel = functools.partial(fused_forward_kernel, t_real=t_real)
    return pl.pallas_call(
        kernel,
        out_shape=jax.ShapeDtypeStruct((Bp, Tp, KV), jnp.float32),
        grid=(nblk,),
        in_specs=in_specs,
        out_specs=pl.BlockSpec((bt, Tp, KV), lambda i: (i, 0, 0)),
        compiler_params=pltpu.CompilerParams(dimension_semantics=("parallel",)),
    )(emb, ctx, *weights)


# --------------------------------------------------------------------------
# Full forward pass (glue: codebook pad/truncate, T/B padding, vectorized
# embedding gather, ctx projection, weight folding/packing — cheap, jitted XLA)
# --------------------------------------------------------------------------
def audio_processor_forward(params, audio_tokens, text_context):
    B, C, T = audio_tokens.shape
    K = NUM_CODEBOOKS
    if C < K:
        pad = jnp.zeros((B, K - C, T), dtype=audio_tokens.dtype)
        audio_tokens = jnp.concatenate([audio_tokens, pad], axis=1)
    elif C > K:
        audio_tokens = audio_tokens[:, :K, :]

    # pad time to a multiple of 8 so all in-kernel slices/reshapes are sublane-aligned
    Tp = ((T + 7) // 8) * 8
    if Tp > T:
        tpad = jnp.zeros((B, K, Tp - T), dtype=audio_tokens.dtype)
        audio_tokens = jnp.concatenate([audio_tokens, tpad], axis=2)

    # batch tile: amortize per-step pipeline overhead, keep the row tile modest
    bt = max(1, min(B, 8, max(1, 1024 // Tp)))
    Bp = ((B + bt - 1) // bt) * bt

    # single vectorized embedding gather, codebook-major layout (K, B, Tp, D)
    tables = params["embed_tables"]                               # (K, Vcode, D)
    cb = jnp.arange(K, dtype=jnp.int32)[:, None, None]
    tok_kbt = jnp.transpose(audio_tokens, (1, 0, 2))              # (K, B, Tp)
    emb = tables[cb, tok_kbt]                                     # (K, B, Tp, D)
    if Bp > B:
        emb = jnp.concatenate(
            [emb, jnp.zeros((K, Bp - B, Tp, EMBED_DIM), emb.dtype)], axis=1)

    # context projection hoisted out of the kernel; fold mean of per-codebook LN biases
    eln_b_mean = jnp.mean(params["embed_ln_b"], axis=0)           # (D,)
    ctx = text_context @ params["ctx_w"] + params["ctx_b"] + eln_b_mean
    ctx = ctx.reshape(B, 1, EMBED_DIM)
    if Bp > B:
        ctx = jnp.concatenate([ctx, jnp.zeros((Bp - B, 1, EMBED_DIM), ctx.dtype)], axis=0)

    # per-codebook LN scale, pre-divided by the codebook count (mean fold)
    eln_w = (params["embed_ln_w"] / float(K)).reshape(K, 1, EMBED_DIM)

    # pack the four per-layer row vectors into one (L, 4, D_INNER) operand
    def pad_d(a):
        return jnp.pad(a, ((0, 0), (0, D_INNER - EMBED_DIM)))
    m_vec = jnp.stack([pad_d(params["m_ln_w"]), pad_d(params["m_ln_b"]),
                       pad_d(params["m_scale"]), params["m_b_dt"]], axis=1)

    # fuse the two in_proj halves into one (L, D, 2*Din) weight
    m_w_in = jnp.concatenate([params["m_w_in1"], params["m_w_in2"]], axis=-1)

    # fold each head's LN affine into its first linear; concat heads lane-dense
    ln_w, ln_b = params["head_ln_w"], params["head_ln_b"]         # (K, D)
    w1, b1 = params["head_w1"], params["head_b1"]                 # (K, D, H), (K, H)
    w2, b2 = params["head_w2"], params["head_b2"]                 # (K, H, V), (K, V)
    w1_eff = ln_w[:, :, None] * w1                                # (K, D, H)
    b1_eff = b1 + jnp.einsum("kd,kdh->kh", ln_b, w1)              # (K, H)
    h_w1 = w1_eff.transpose(1, 0, 2).reshape(EMBED_DIM, K * D_HALF)
    h_b1 = b1_eff.reshape(1, K * D_HALF)
    h_w2 = jnp.zeros((K * D_HALF, K * CODEBOOK_SIZE), jnp.float32)
    for c in range(K):
        h_w2 = h_w2.at[c * D_HALF:(c + 1) * D_HALF,
                       c * CODEBOOK_SIZE:(c + 1) * CODEBOOK_SIZE].set(w2[c])
    h_b2 = b2.reshape(1, K * CODEBOOK_SIZE)

    out = fused_forward(emb, ctx, eln_w, m_vec, m_w_in, params["m_w_conv"],
                        params["m_w_dt"], params["m_w_out"],
                        h_w1, h_b1, h_w2, h_b2, t_real=T, bt=bt)  # (Bp, Tp, K*V)

    out = out[:B, :T]
    logits = out.reshape(B, T, K, CODEBOOK_SIZE).transpose(0, 2, 1, 3)
    return logits                                                 # (B, 8, T, V)


# --------------------------------------------------------------------------
# Deterministic synthetic parameters (weights stored pre-transposed: (in, out))
# --------------------------------------------------------------------------
def init_params(key):
    keys = iter(jax.random.split(key, 32))

    def nrm(shape, scale):
        return (scale * jax.random.normal(next(keys), shape)).astype(jnp.float32)

    return {
        "embed_tables": nrm((NUM_CODEBOOKS, CODEBOOK_SIZE, EMBED_DIM), 1.0),
        "embed_ln_w": jnp.ones((NUM_CODEBOOKS, EMBED_DIM), jnp.float32),
        "embed_ln_b": jnp.zeros((NUM_CODEBOOKS, EMBED_DIM), jnp.float32),
        "ctx_w": nrm((EMBED_DIM, EMBED_DIM), 0.05),
        "ctx_b": nrm((1, EMBED_DIM), 0.05),
        # 4 UnifiedMambaBlocks stacked along a leading layer axis
        "m_ln_w": jnp.ones((NUM_LAYERS, EMBED_DIM), jnp.float32),
        "m_ln_b": jnp.zeros((NUM_LAYERS, EMBED_DIM), jnp.float32),
        "m_w_in1": nrm((NUM_LAYERS, EMBED_DIM, D_INNER), 0.05),   # in_proj chunk 1
        "m_w_in2": nrm((NUM_LAYERS, EMBED_DIM, D_INNER), 0.05),   # in_proj chunk 2
        "m_w_conv": nrm((NUM_LAYERS, 3, D_INNER), 0.3),           # depthwise taps [prev,cur,next]
        "m_w_dt": nrm((NUM_LAYERS, D_INNER, D_INNER), 0.05),
        "m_b_dt": nrm((NUM_LAYERS, D_INNER), 0.05),
        "m_w_out": nrm((NUM_LAYERS, D_INNER, EMBED_DIM), 0.05),
        "m_scale": jnp.full((NUM_LAYERS, EMBED_DIM), 0.1, jnp.float32),
        # 8 output heads
        "head_ln_w": jnp.ones((NUM_CODEBOOKS, EMBED_DIM), jnp.float32),
        "head_ln_b": jnp.zeros((NUM_CODEBOOKS, EMBED_DIM), jnp.float32),
        "head_w1": nrm((NUM_CODEBOOKS, EMBED_DIM, D_HALF), 0.05),
        "head_b1": nrm((NUM_CODEBOOKS, D_HALF), 0.05),
        "head_w2": nrm((NUM_CODEBOOKS, D_HALF, CODEBOOK_SIZE), 0.05),
        "head_b2": nrm((NUM_CODEBOOKS, CODEBOOK_SIZE), 0.05),
    }


if __name__ == "__main__":
    key = jax.random.PRNGKey(0)
    pkey, tkey, ckey = jax.random.split(key, 3)
    params = init_params(pkey)

    B, C, T = 2, 4, 8      # C=4 < 8 exercises the codebook-padding path
    audio_tokens = jax.random.randint(tkey, (B, C, T), 0, CODEBOOK_SIZE,
                                      dtype=jnp.int32)
    text_context = jax.random.normal(ckey, (B, EMBED_DIM), dtype=jnp.float32)

    fwd = jax.jit(audio_processor_forward)
    out = fwd(params, audio_tokens, text_context)
    out = jax.block_until_ready(out)

    assert out.shape == (B, NUM_CODEBOOKS, T, CODEBOOK_SIZE), out.shape
    assert bool(jnp.all(jnp.isfinite(out)))
    print("KERNEL_OK")
</pallas_src>

<mosaic_0001>
module attributes {stable_mosaic.version = 11 : i64} {
  func.func @fused_forward_kernel(%arg0: i32, %arg1: memref<8x2x8x32xf32, #tpu.memory_space<vmem>>, %arg2: memref<2x1x32xf32, #tpu.memory_space<vmem>>, %arg3: memref<8x1x32xf32, #tpu.memory_space<vmem>>, %arg4: memref<4x4x48xf32, #tpu.memory_space<vmem>>, %arg5: memref<4x32x96xf32, #tpu.memory_space<vmem>>, %arg6: memref<4x3x48xf32, #tpu.memory_space<vmem>>, %arg7: memref<4x48x48xf32, #tpu.memory_space<vmem>>, %arg8: memref<4x48x32xf32, #tpu.memory_space<vmem>>, %arg9: memref<32x128xf32, #tpu.memory_space<vmem>>, %arg10: memref<1x128xf32, #tpu.memory_space<vmem>>, %arg11: memref<128x512xf32, #tpu.memory_space<vmem>>, %arg12: memref<1x512xf32, #tpu.memory_space<vmem>>, %arg13: memref<2x8x512xf32, #tpu.memory_space<vmem>>) attributes {dimension_semantics = [#tpu.dimension_semantics<parallel>], iteration_bounds = array<i64: 1>, scalar_prefetch = 0 : i64, scratch_operands = 0 : i64, tpu.core_type = #tpu.core_type<tc>, window_params = [{transform_indices = @transform_0, window_bounds = array<i64: 8, 2, 8, 32>}, {transform_indices = @transform_1, window_bounds = array<i64: 2, 1, 32>}, {pipeline_mode = #tpu.pipeline_mode<synchronous>, transform_indices = @transform_2, window_bounds = array<i64: 8, 1, 32>}, {pipeline_mode = #tpu.pipeline_mode<synchronous>, transform_indices = @transform_3, window_bounds = array<i64: 4, 4, 48>}, {pipeline_mode = #tpu.pipeline_mode<synchronous>, transform_indices = @transform_4, window_bounds = array<i64: 4, 32, 96>}, {pipeline_mode = #tpu.pipeline_mode<synchronous>, transform_indices = @transform_5, window_bounds = array<i64: 4, 3, 48>}, {pipeline_mode = #tpu.pipeline_mode<synchronous>, transform_indices = @transform_6, window_bounds = array<i64: 4, 48, 48>}, {pipeline_mode = #tpu.pipeline_mode<synchronous>, transform_indices = @transform_7, window_bounds = array<i64: 4, 48, 32>}, {pipeline_mode = #tpu.pipeline_mode<synchronous>, transform_indices = @transform_8, window_bounds = array<i64: 32, 128>}, {pipeline_mode = #tpu.pipeline_mode<synchronous>, transform_indices = @transform_9, window_bounds = array<i64: 1, 128>}, {pipeline_mode = #tpu.pipeline_mode<synchronous>, transform_indices = @transform_10, window_bounds = array<i64: 128, 512>}, {pipeline_mode = #tpu.pipeline_mode<synchronous>, transform_indices = @transform_11, window_bounds = array<i64: 1, 512>}, {transform_indices = @transform_12, window_bounds = array<i64: 2, 8, 512>}]} {
    %c0 = arith.constant 0 : index
    %c0_0 = arith.constant 0 : index
    %c0_1 = arith.constant 0 : index
    %c0_2 = arith.constant 0 : index
    %0 = vector.load %arg1[%c0, %c0_0, %c0_1, %c0_2] : memref<8x2x8x32xf32, #tpu.memory_space<vmem>>, vector<8x2x8x32xf32>
    %cst = arith.constant dense<0.000000e+00> : vector<8x2x8xf32>
    %1 = vector.multi_reduction <add>, %0, %cst [3] : vector<8x2x8x32xf32> to vector<8x2x8xf32>
    %2 = vector.shape_cast %1 : vector<8x2x8xf32> to vector<8x2x8x1xf32>
    %cst_3 = arith.constant 3.200000e+01 : f32
    %3 = vector.broadcast %cst_3 : f32 to vector<8x2x8x1xf32>
    %4 = arith.divf %2, %3 : vector<8x2x8x1xf32>
    %5 = vector.broadcast %4 : vector<8x2x8x1xf32> to vector<8x2x8x32xf32>
    %6 = arith.subf %0, %5 : vector<8x2x8x32xf32>
    %7 = arith.mulf %6, %6 : vector<8x2x8x32xf32>
    %cst_4 = arith.constant dense<0.000000e+00> : vector<8x2x8xf32>
    %8 = vector.multi_reduction <add>, %7, %cst_4 [3] : vector<8x2x8x32xf32> to vector<8x2x8xf32>
    %9 = vector.shape_cast %8 : vector<8x2x8xf32> to vector<8x2x8x1xf32>
    %cst_5 = arith.constant 3.200000e+01 : f32
    %10 = vector.broadcast %cst_5 : f32 to vector<8x2x8x1xf32>
    %11 = arith.divf %9, %10 : vector<8x2x8x1xf32>
    %12 = vector.broadcast %4 : vector<8x2x8x1xf32> to vector<8x2x8x32xf32>
    %13 = arith.subf %0, %12 : vector<8x2x8x32xf32>
    %cst_6 = arith.constant 9.99999974E-6 : f32
    %14 = vector.broadcast %cst_6 : f32 to vector<8x2x8x1xf32>
    %15 = arith.addf %11, %14 : vector<8x2x8x1xf32>
    %16 = math.rsqrt %15 : vector<8x2x8x1xf32>
    %17 = vector.broadcast %16 : vector<8x2x8x1xf32> to vector<8x2x8x32xf32>
    %18 = arith.mulf %13, %17 : vector<8x2x8x32xf32>
    %19 = vector.extract_strided_slice %18 {offsets = [0, 0, 0, 0], sizes = [1, 2, 8, 32], strides = [1, 1, 1, 1]} : vector<8x2x8x32xf32> to vector<1x2x8x32xf32>
    %20 = vector.shape_cast %19 : vector<1x2x8x32xf32> to vector<2x8x32xf32>
    %c0_7 = arith.constant 0 : index
    %c0_8 = arith.constant 0 : index
    %c0_9 = arith.constant 0 : index
    %21 = vector.load %arg3[%c0_7, %c0_8, %c0_9] : memref<8x1x32xf32, #tpu.memory_space<vmem>>, vector<1x1x32xf32>
    %22 = vector.shape_cast %21 : vector<1x1x32xf32> to vector<1x32xf32>
    %23 = vector.shape_cast %22 : vector<1x32xf32> to vector<1x1x32xf32>
    %24 = vector.broadcast %23 : vector<1x1x32xf32> to vector<2x8x32xf32>
    %25 = arith.mulf %20, %24 : vector<2x8x32xf32>
    %26 = vector.extract_strided_slice %18 {offsets = [1, 0, 0, 0], sizes = [1, 2, 8, 32], strides = [1, 1, 1, 1]} : vector<8x2x8x32xf32> to vector<1x2x8x32xf32>
    %27 = vector.shape_cast %26 : vector<1x2x8x32xf32> to vector<2x8x32xf32>
    %c1 = arith.constant 1 : index
    %c0_10 = arith.constant 0 : index
    %c0_11 = arith.constant 0 : index
    %28 = vector.load %arg3[%c1, %c0_10, %c0_11] : memref<8x1x32xf32, #tpu.memory_space<vmem>>, vector<1x1x32xf32>
    %29 = vector.shape_cast %28 : vector<1x1x32xf32> to vector<1x32xf32>
    %30 = vector.shape_cast %29 : vector<1x32xf32> to vector<1x1x32xf32>
    %31 = vector.broadcast %30 : vector<1x1x32xf32> to vector<2x8x32xf32>
    %32 = arith.mulf %27, %31 : vector<2x8x32xf32>
    %33 = arith.addf %25, %32 : vector<2x8x32xf32>
    %34 = vector.extract_strided_slice %18 {offsets = [2, 0, 0, 0], sizes = [1, 2, 8, 32], strides = [1, 1, 1, 1]} : vector<8x2x8x32xf32> to vector<1x2x8x32xf32>
    %35 = vector.shape_cast %34 : vector<1x2x8x32xf32> to vector<2x8x32xf32>
    %c2 = arith.constant 2 : index
    %c0_12 = arith.constant 0 : index
    %c0_13 = arith.constant 0 : index
    %36 = vector.load %arg3[%c2, %c0_12, %c0_13] : memref<8x1x32xf32, #tpu.memory_space<vmem>>, vector<1x1x32xf32>
    %37 = vector.shape_cast %36 : vector<1x1x32xf32> to vector<1x32xf32>
    %38 = vector.shape_cast %37 : vector<1x32xf32> to vector<1x1x32xf32>
    %39 = vector.broadcast %38 : vector<1x1x32xf32> to vector<2x8x32xf32>
    %40 = arith.mulf %35, %39 : vector<2x8x32xf32>
    %41 = arith.addf %33, %40 : vector<2x8x32xf32>
    %42 = vector.extract_strided_slice %18 {offsets = [3, 0, 0, 0], sizes = [1, 2, 8, 32], strides = [1, 1, 1, 1]} : vector<8x2x8x32xf32> to vector<1x2x8x32xf32>
    %43 = vector.shape_cast %42 : vector<1x2x8x32xf32> to vector<2x8x32xf32>
    %c3 = arith.constant 3 : index
    %c0_14 = arith.constant 0 : index
    %c0_15 = arith.constant 0 : index
    %44 = vector.load %arg3[%c3, %c0_14, %c0_15] : memref<8x1x32xf32, #tpu.memory_space<vmem>>, vector<1x1x32xf32>
    %45 = vector.shape_cast %44 : vector<1x1x32xf32> to vector<1x32xf32>
    %46 = vector.shape_cast %45 : vector<1x32xf32> to vector<1x1x32xf32>
    %47 = vector.broadcast %46 : vector<1x1x32xf32> to vector<2x8x32xf32>
    %48 = arith.mulf %43, %47 : vector<2x8x32xf32>
    %49 = arith.addf %41, %48 : vector<2x8x32xf32>
    %50 = vector.extract_strided_slice %18 {offsets = [4, 0, 0, 0], sizes = [1, 2, 8, 32], strides = [1, 1, 1, 1]} : vector<8x2x8x32xf32> to vector<1x2x8x32xf32>
    %51 = vector.shape_cast %50 : vector<1x2x8x32xf32> to vector<2x8x32xf32>
    %c4 = arith.constant 4 : index
    %c0_16 = arith.constant 0 : index
    %c0_17 = arith.constant 0 : index
    %52 = vector.load %arg3[%c4, %c0_16, %c0_17] : memref<8x1x32xf32, #tpu.memory_space<vmem>>, vector<1x1x32xf32>
    %53 = vector.shape_cast %52 : vector<1x1x32xf32> to vector<1x32xf32>
    %54 = vector.shape_cast %53 : vector<1x32xf32> to vector<1x1x32xf32>
    %55 = vector.broadcast %54 : vector<1x1x32xf32> to vector<2x8x32xf32>
    %56 = arith.mulf %51, %55 : vector<2x8x32xf32>
    %57 = arith.addf %49, %56 : vector<2x8x32xf32>
    %58 = vector.extract_strided_slice %18 {offsets = [5, 0, 0, 0], sizes = [1, 2, 8, 32], strides = [1, 1, 1, 1]} : vector<8x2x8x32xf32> to vector<1x2x8x32xf32>
    %59 = vector.shape_cast %58 : vector<1x2x8x32xf32> to vector<2x8x32xf32>
    %c5 = arith.constant 5 : index
    %c0_18 = arith.constant 0 : index
    %c0_19 = arith.constant 0 : index
    %60 = vector.load %arg3[%c5, %c0_18, %c0_19] : memref<8x1x32xf32, #tpu.memory_space<vmem>>, vector<1x1x32xf32>
    %61 = vector.shape_cast %60 : vector<1x1x32xf32> to vector<1x32xf32>
    %62 = vector.shape_cast %61 : vector<1x32xf32> to vector<1x1x32xf32>
    %63 = vector.broadcast %62 : vector<1x1x32xf32> to vector<2x8x32xf32>
    %64 = arith.mulf %59, %63 : vector<2x8x32xf32>
    %65 = arith.addf %57, %64 : vector<2x8x32xf32>
    %66 = vector.extract_strided_slice %18 {offsets = [6, 0, 0, 0], sizes = [1, 2, 8, 32], strides = [1, 1, 1, 1]} : vector<8x2x8x32xf32> to vector<1x2x8x32xf32>
    %67 = vector.shape_cast %66 : vector<1x2x8x32xf32> to vector<2x8x32xf32>
    %c6 = arith.constant 6 : index
    %c0_20 = arith.constant 0 : index
    %c0_21 = arith.constant 0 : index
    %68 = vector.load %arg3[%c6, %c0_20, %c0_21] : memref<8x1x32xf32, #tpu.memory_space<vmem>>, vector<1x1x32xf32>
    %69 = vector.shape_cast %68 : vector<1x1x32xf32> to vector<1x32xf32>
    %70 = vector.shape_cast %69 : vector<1x32xf32> to vector<1x1x32xf32>
    %71 = vector.broadcast %70 : vector<1x1x32xf32> to vector<2x8x32xf32>
    %72 = arith.mulf %67, %71 : vector<2x8x32xf32>
    %73 = arith.addf %65, %72 : vector<2x8x32xf32>
    %74 = vector.extract_strided_slice %18 {offsets = [7, 0, 0, 0], sizes = [1, 2, 8, 32], strides = [1, 1, 1, 1]} : vector<8x2x8x32xf32> to vector<1x2x8x32xf32>
    %75 = vector.shape_cast %74 : vector<1x2x8x32xf32> to vector<2x8x32xf32>
    %c7 = arith.constant 7 : index
    %c0_22 = arith.constant 0 : index
    %c0_23 = arith.constant 0 : index
    %76 = vector.load %arg3[%c7, %c0_22, %c0_23] : memref<8x1x32xf32, #tpu.memory_space<vmem>>, vector<1x1x32xf32>
    %77 = vector.shape_cast %76 : vector<1x1x32xf32> to vector<1x32xf32>
    %78 = vector.shape_cast %77 : vector<1x32xf32> to vector<1x1x32xf32>
    %79 = vector.broadcast %78 : vector<1x1x32xf32> to vector<2x8x32xf32>
    %80 = arith.mulf %75, %79 : vector<2x8x32xf32>
    %81 = arith.addf %73, %80 : vector<2x8x32xf32>
    %c0_24 = arith.constant 0 : index
    %c0_25 = arith.constant 0 : index
    %c0_26 = arith.constant 0 : index
    %82 = vector.load %arg2[%c0_24, %c0_25, %c0_26] : memref<2x1x32xf32, #tpu.memory_space<vmem>>, vector<2x1x32xf32>
    %83 = vector.broadcast %82 : vector<2x1x32xf32> to vector<2x8x32xf32>
    %84 = arith.addf %81, %83 : vector<2x8x32xf32>
    %85 = vector.shape_cast %84 : vector<2x8x32xf32> to vector<16x32xf32>
    %86 = tpu.iota {dimensions = array<i32: 1>} : vector<2x8x48xi32>
    %87 = vector.shape_cast %86 : vector<2x8x48xi32> to vector<16x48xi32>
    %c0_i32 = arith.constant 0 : i32
    %88 = vector.broadcast %c0_i32 : i32 to vector<16x48xi32>
    %89 = arith.cmpi sgt, %87, %88 : vector<16x48xi32>
    %90 = arith.extui %89 : vector<16x48xi1> to vector<16x48xi32>
    %91 = arith.sitofp %90 : vector<16x48xi32> to vector<16x48xf32>
    %c7_i32 = arith.constant 7 : i32
    %92 = vector.broadcast %c7_i32 : i32 to vector<16x48xi32>
    %93 = arith.cmpi slt, %87, %92 : vector<16x48xi32>
    %94 = arith.extui %93 : vector<16x48xi1> to vector<16x48xi32>
    %95 = arith.sitofp %94 : vector<16x48xi32> to vector<16x48xf32>
    %c0_27 = arith.constant 0 : index
    %c0_28 = arith.constant 0 : index
    %c0_29 = arith.constant 0 : index
    %96 = vector.load %arg4[%c0_27, %c0_28, %c0_29] : memref<4x4x48xf32, #tpu.memory_space<vmem>>, vector<1x1x32xf32>
    %97 = vector.shape_cast %96 : vector<1x1x32xf32> to vector<1x32xf32>
    %c0_30 = arith.constant 0 : index
    %c1_31 = arith.constant 1 : index
    %c0_32 = arith.constant 0 : index
    %98 = vector.load %arg4[%c0_30, %c1_31, %c0_32] : memref<4x4x48xf32, #tpu.memory_space<vmem>>, vector<1x1x32xf32>
    %99 = vector.shape_cast %98 : vector<1x1x32xf32> to vector<1x32xf32>
    %c0_33 = arith.constant 0 : index
    %c2_34 = arith.constant 2 : index
    %c0_35 = arith.constant 0 : index
    %100 = vector.load %arg4[%c0_33, %c2_34, %c0_35] : memref<4x4x48xf32, #tpu.memory_space<vmem>>, vector<1x1x32xf32>
    %101 = vector.shape_cast %100 : vector<1x1x32xf32> to vector<1x32xf32>
    %c0_36 = arith.constant 0 : index
    %c3_37 = arith.constant 3 : index
    %c0_38 = arith.constant 0 : index
    %102 = vector.load %arg4[%c0_36, %c3_37, %c0_38] : memref<4x4x48xf32, #tpu.memory_space<vmem>>, vector<1x1x48xf32>
    %103 = vector.shape_cast %102 : vector<1x1x48xf32> to vector<1x48xf32>
    %cst_39 = arith.constant dense<0.000000e+00> : vector<16xf32>
    %104 = vector.multi_reduction <add>, %85, %cst_39 [1] : vector<16x32xf32> to vector<16xf32>
    %105 = vector.shape_cast %104 : vector<16xf32> to vector<16x1xf32>
    %cst_40 = arith.constant 3.200000e+01 : f32
    %106 = vector.broadcast %cst_40 : f32 to vector<16x1xf32>
    %107 = arith.divf %105, %106 : vector<16x1xf32>
    %108 = vector.broadcast %107 : vector<16x1xf32> to vector<16x32xf32>
    %109 = arith.subf %85, %108 : vector<16x32xf32>
    %110 = arith.mulf %109, %109 : vector<16x32xf32>
    %cst_41 = arith.constant dense<0.000000e+00> : vector<16xf32>
    %111 = vector.multi_reduction <add>, %110, %cst_41 [1] : vector<16x32xf32> to vector<16xf32>
    %112 = vector.shape_cast %111 : vector<16xf32> to vector<16x1xf32>
    %cst_42 = arith.constant 3.200000e+01 : f32
    %113 = vector.broadcast %cst_42 : f32 to vector<16x1xf32>
    %114 = arith.divf %112, %113 : vector<16x1xf32>
    %115 = vector.broadcast %107 : vector<16x1xf32> to vector<16x32xf32>
    %116 = arith.subf %85, %115 : vector<16x32xf32>
    %cst_43 = arith.constant 9.99999974E-6 : f32
    %117 = vector.broadcast %cst_43 : f32 to vector<16x1xf32>
    %118 = arith.addf %114, %117 : vector<16x1xf32>
    %119 = math.rsqrt %118 : vector<16x1xf32>
    %120 = vector.broadcast %119 : vector<16x1xf32> to vector<16x32xf32>
    %121 = arith.mulf %116, %120 : vector<16x32xf32>
    %122 = vector.broadcast %97 : vector<1x32xf32> to vector<16x32xf32>
    %123 = arith.mulf %121, %122 : vector<16x32xf32>
    %124 = vector.broadcast %99 : vector<1x32xf32> to vector<16x32xf32>
    %125 = arith.addf %123, %124 : vector<16x32xf32>
    %c0_44 = arith.constant 0 : index
    %c0_45 = arith.constant 0 : index
    %c0_46 = arith.constant 0 : index
    %126 = vector.load %arg5[%c0_44, %c0_45, %c0_46] : memref<4x32x96xf32, #tpu.memory_space<vmem>>, vector<1x32x96xf32>
    %127 = vector.shape_cast %126 : vector<1x32x96xf32> to vector<32x96xf32>
    %cst_47 = arith.constant dense<0.000000e+00> : vector<16x96xf32>
    %128 = tpu.matmul %125, %127, %cst_47 {dimension_numbers = #tpu.dot_dimension_numbers<[1], [0], [0], [1], [0, 0, 1, 1], [], []>} : vector<16x32xf32>, vector<32x96xf32>, vector<16x96xf32> -> vector<16x96xf32>
    %129 = vector.extract_strided_slice %128 {offsets = [0, 0], sizes = [16, 48], strides = [1, 1]} : vector<16x96xf32> to vector<16x48xf32>
    %130 = vector.extract_strided_slice %128 {offsets = [0, 48], sizes = [16, 48], strides = [1, 1]} : vector<16x96xf32> to vector<16x48xf32>
    %c0_48 = arith.constant 0 : index
    %c0_49 = arith.constant 0 : index
    %c0_50 = arith.constant 0 : index
    %131 = vector.load %arg6[%c0_48, %c0_49, %c0_50] : memref<4x3x48xf32, #tpu.memory_space<vmem>>, vector<1x3x48xf32>
    %132 = vector.shape_cast %131 : vector<1x3x48xf32> to vector<3x48xf32>
    %c1_i32 = arith.constant 1 : i32
    %133 = tpu.dynamic_rotate %129 by %c1_i32 dim 0 : vector<16x48xf32>, i32 -> vector<16x48xf32>
    %134 = arith.mulf %133, %91 : vector<16x48xf32>
    %c15_i32 = arith.constant 15 : i32
    %135 = tpu.dynamic_rotate %129 by %c15_i32 dim 0 : vector<16x48xf32>, i32 -> vector<16x48xf32>
    %136 = arith.mulf %135, %95 : vector<16x48xf32>
    %137 = vector.extract_strided_slice %132 {offsets = [0, 0], sizes = [1, 48], strides = [1, 1]} : vector<3x48xf32> to vector<1x48xf32>
    %138 = vector.broadcast %137 : vector<1x48xf32> to vector<16x48xf32>
    %139 = arith.mulf %134, %138 : vector<16x48xf32>
    %140 = vector.extract_strided_slice %132 {offsets = [1, 0], sizes = [1, 48], strides = [1, 1]} : vector<3x48xf32> to vector<1x48xf32>
    %141 = vector.broadcast %140 : vector<1x48xf32> to vector<16x48xf32>
    %142 = arith.mulf %129, %141 : vector<16x48xf32>
    %143 = arith.addf %139, %142 : vector<16x48xf32>
    %144 = vector.extract_strided_slice %132 {offsets = [2, 0], sizes = [1, 48], strides = [1, 1]} : vector<3x48xf32> to vector<1x48xf32>
    %145 = vector.broadcast %144 : vector<1x48xf32> to vector<16x48xf32>
    %146 = arith.mulf %136, %145 : vector<16x48xf32>
    %147 = arith.addf %143, %146 : vector<16x48xf32>
    %148 = arith.negf %147 : vector<16x48xf32>
    %149 = math.exp %148 : vector<16x48xf32>
    %cst_51 = arith.constant 1.000000e+00 : f32
    %150 = vector.broadcast %cst_51 : f32 to vector<16x48xf32>
    %151 = arith.addf %150, %149 : vector<16x48xf32>
    %152 = arith.divf %150, %151 : vector<16x48xf32>
    %153 = arith.mulf %147, %152 : vector<16x48xf32>
    %c0_52 = arith.constant 0 : index
    %c0_53 = arith.constant 0 : index
    %c0_54 = arith.constant 0 : index
    %154 = vector.load %arg7[%c0_52, %c0_53, %c0_54] : memref<4x48x48xf32, #tpu.memory_space<vmem>>, vector<1x48x48xf32>
    %155 = vector.shape_cast %154 : vector<1x48x48xf32> to vector<48x48xf32>
    %cst_55 = arith.constant dense<0.000000e+00> : vector<16x48xf32>
    %156 = tpu.matmul %153, %155, %cst_55 {dimension_numbers = #tpu.dot_dimension_numbers<[1], [0], [0], [1], [0, 0, 1, 1], [], []>} : vector<16x48xf32>, vector<48x48xf32>, vector<16x48xf32> -> vector<16x48xf32>
    %157 = vector.broadcast %103 : vector<1x48xf32> to vector<16x48xf32>
    %158 = arith.addf %156, %157 : vector<16x48xf32>
    %cst_56 = arith.constant 2.000000e+01 : f32
    %159 = vector.broadcast %cst_56 : f32 to vector<16x48xf32>
    %160 = arith.cmpf ogt, %158, %159 : vector<16x48xf32>
    %cst_57 = arith.constant 2.000000e+01 : f32
    %161 = vector.broadcast %cst_57 : f32 to vector<16x48xf32>
    %162 = arith.minimumf %158, %161 : vector<16x48xf32>
    %163 = math.exp %162 : vector<16x48xf32>
    %cst_58 = arith.constant 1.000000e+00 : f32
    %164 = vector.broadcast %cst_58 : f32 to vector<16x48xf32>
    %165 = arith.addf %164, %163 : vector<16x48xf32>
    %166 = math.log %165 : vector<16x48xf32>
    %167 = arith.select %160, %158, %166 : vector<16x48xi1>, vector<16x48xf32>
    %168 = arith.negf %167 : vector<16x48xf32>
    %169 = math.exp %168 : vector<16x48xf32>
    %cst_59 = arith.constant 1.000000e+00 : f32
    %170 = vector.broadcast %cst_59 : f32 to vector<16x48xf32>
    %171 = arith.addf %170, %169 : vector<16x48xf32>
    %172 = arith.divf %170, %171 : vector<16x48xf32>
    %173 = arith.mulf %153, %172 : vector<16x48xf32>
    %174 = arith.negf %130 : vector<16x48xf32>
    %175 = math.exp %174 : vector<16x48xf32>
    %cst_60 = arith.constant 1.000000e+00 : f32
    %176 = vector.broadcast %cst_60 : f32 to vector<16x48xf32>
    %177 = arith.addf %176, %175 : vector<16x48xf32>
    %178 = arith.divf %176, %177 : vector<16x48xf32>
    %179 = arith.mulf %173, %178 : vector<16x48xf32>
    %c0_61 = arith.constant 0 : index
    %c0_62 = arith.constant 0 : index
    %c0_63 = arith.constant 0 : index
    %180 = vector.load %arg8[%c0_61, %c0_62, %c0_63] : memref<4x48x32xf32, #tpu.memory_space<vmem>>, vector<1x48x32xf32>
    %181 = vector.shape_cast %180 : vector<1x48x32xf32> to vector<48x32xf32>
    %cst_64 = arith.constant dense<0.000000e+00> : vector<16x32xf32>
    %182 = tpu.matmul %179, %181, %cst_64 {dimension_numbers = #tpu.dot_dimension_numbers<[1], [0], [0], [1], [0, 0, 1, 1], [], []>} : vector<16x48xf32>, vector<48x32xf32>, vector<16x32xf32> -> vector<16x32xf32>
    %183 = vector.broadcast %101 : vector<1x32xf32> to vector<16x32xf32>
    %184 = arith.mulf %182, %183 : vector<16x32xf32>
    %185 = arith.addf %184, %85 : vector<16x32xf32>
    %c1_65 = arith.constant 1 : index
    %c0_66 = arith.constant 0 : index
    %c0_67 = arith.constant 0 : index
    %186 = vector.load %arg4[%c1_65, %c0_66, %c0_67] : memref<4x4x48xf32, #tpu.memory_space<vmem>>, vector<1x1x32xf32>
    %187 = vector.shape_cast %186 : vector<1x1x32xf32> to vector<1x32xf32>
    %c1_68 = arith.constant 1 : index
    %c1_69 = arith.constant 1 : index
    %c0_70 = arith.constant 0 : index
    %188 = vector.load %arg4[%c1_68, %c1_69, %c0_70] : memref<4x4x48xf32, #tpu.memory_space<vmem>>, vector<1x1x32xf32>
    %189 = vector.shape_cast %188 : vector<1x1x32xf32> to vector<1x32xf32>
    %c1_71 = arith.constant 1 : index
    %c2_72 = arith.constant 2 : index
    %c0_73 = arith.constant 0 : index
    %190 = vector.load %arg4[%c1_71, %c2_72, %c0_73] : memref<4x4x48xf32, #tpu.memory_space<vmem>>, vector<1x1x32xf32>
    %191 = vector.shape_cast %190 : vector<1x1x32xf32> to vector<1x32xf32>
    %c1_74 = arith.constant 1 : index
    %c3_75 = arith.constant 3 : index
    %c0_76 = arith.constant 0 : index
    %192 = vector.load %arg4[%c1_74, %c3_75, %c0_76] : memref<4x4x48xf32, #tpu.memory_space<vmem>>, vector<1x1x48xf32>
    %193 = vector.shape_cast %192 : vector<1x1x48xf32> to vector<1x48xf32>
    %cst_77 = arith.constant dense<0.000000e+00> : vector<16xf32>
    %194 = vector.multi_reduction <add>, %185, %cst_77 [1] : vector<16x32xf32> to vector<16xf32>
    %195 = vector.shape_cast %194 : vector<16xf32> to vector<16x1xf32>
    %cst_78 = arith.constant 3.200000e+01 : f32
    %196 = vector.broadcast %cst_78 : f32 to vector<16x1xf32>
    %197 = arith.divf %195, %196 : vector<16x1xf32>
    %198 = vector.broadcast %197 : vector<16x1xf32> to vector<16x32xf32>
    %199 = arith.subf %185, %198 : vector<16x32xf32>
    %200 = arith.mulf %199, %199 : vector<16x32xf32>
    %cst_79 = arith.constant dense<0.000000e+00> : vector<16xf32>
    %201 = vector.multi_reduction <add>, %200, %cst_79 [1] : vector<16x32xf32> to vector<16xf32>
    %202 = vector.shape_cast %201 : vector<16xf32> to vector<16x1xf32>
    %cst_80 = arith.constant 3.200000e+01 : f32
    %203 = vector.broadcast %cst_80 : f32 to vector<16x1xf32>
    %204 = arith.divf %202, %203 : vector<16x1xf32>
    %205 = vector.broadcast %197 : vector<16x1xf32> to vector<16x32xf32>
    %206 = arith.subf %185, %205 : vector<16x32xf32>
    %cst_81 = arith.constant 9.99999974E-6 : f32
    %207 = vector.broadcast %cst_81 : f32 to vector<16x1xf32>
    %208 = arith.addf %204, %207 : vector<16x1xf32>
    %209 = math.rsqrt %208 : vector<16x1xf32>
    %210 = vector.broadcast %209 : vector<16x1xf32> to vector<16x32xf32>
    %211 = arith.mulf %206, %210 : vector<16x32xf32>
    %212 = vector.broadcast %187 : vector<1x32xf32> to vector<16x32xf32>
    %213 = arith.mulf %211, %212 : vector<16x32xf32>
    %214 = vector.broadcast %189 : vector<1x32xf32> to vector<16x32xf32>
    %215 = arith.addf %213, %214 : vector<16x32xf32>
    %c1_82 = arith.constant 1 : index
    %c0_83 = arith.constant 0 : index
    %c0_84 = arith.constant 0 : index
    %216 = vector.load %arg5[%c1_82, %c0_83, %c0_84] : memref<4x32x96xf32, #tpu.memory_space<vmem>>, vector<1x32x96xf32>
    %217 = vector.shape_cast %216 : vector<1x32x96xf32> to vector<32x96xf32>
    %cst_85 = arith.constant dense<0.000000e+00> : vector<16x96xf32>
    %218 = tpu.matmul %215, %217, %cst_85 {dimension_numbers = #tpu.dot_dimension_numbers<[1], [0], [0], [1], [0, 0, 1, 1], [], []>} : vector<16x32xf32>, vector<32x96xf32>, vector<16x96xf32> -> vector<16x96xf32>
    %219 = vector.extract_strided_slice %218 {offsets = [0, 0], sizes = [16, 48], strides = [1, 1]} : vector<16x96xf32> to vector<16x48xf32>
    %220 = vector.extract_strided_slice %218 {offsets = [0, 48], sizes = [16, 48], strides = [1, 1]} : vector<16x96xf32> to vector<16x48xf32>
    %c1_86 = arith.constant 1 : index
    %c0_87 = arith.constant 0 : index
    %c0_88 = arith.constant 0 : index
    %221 = vector.load %arg6[%c1_86, %c0_87, %c0_88] : memref<4x3x48xf32, #tpu.memory_space<vmem>>, vector<1x3x48xf32>
    %222 = vector.shape_cast %221 : vector<1x3x48xf32> to vector<3x48xf32>
    %c1_i32_89 = arith.constant 1 : i32
    %223 = tpu.dynamic_rotate %219 by %c1_i32_89 dim 0 : vector<16x48xf32>, i32 -> vector<16x48xf32>
    %224 = arith.mulf %223, %91 : vector<16x48xf32>
    %c15_i32_90 = arith.constant 15 : i32
    %225 = tpu.dynamic_rotate %219 by %c15_i32_90 dim 0 : vector<16x48xf32>, i32 -> vector<16x48xf32>
    %226 = arith.mulf %225, %95 : vector<16x48xf32>
    %227 = vector.extract_strided_slice %222 {offsets = [0, 0], sizes = [1, 48], strides = [1, 1]} : vector<3x48xf32> to vector<1x48xf32>
    %228 = vector.broadcast %227 : vector<1x48xf32> to vector<16x48xf32>
    %229 = arith.mulf %224, %228 : vector<16x48xf32>
    %230 = vector.extract_strided_slice %222 {offsets = [1, 0], sizes = [1, 48], strides = [1, 1]} : vector<3x48xf32> to vector<1x48xf32>
    %231 = vector.broadcast %230 : vector<1x48xf32> to vector<16x48xf32>
    %232 = arith.mulf %219, %231 : vector<16x48xf32>
    %233 = arith.addf %229, %232 : vector<16x48xf32>
    %234 = vector.extract_strided_slice %222 {offsets = [2, 0], sizes = [1, 48], strides = [1, 1]} : vector<3x48xf32> to vector<1x48xf32>
    %235 = vector.broadcast %234 : vector<1x48xf32> to vector<16x48xf32>
    %236 = arith.mulf %226, %235 : vector<16x48xf32>
    %237 = arith.addf %233, %236 : vector<16x48xf32>
    %238 = arith.negf %237 : vector<16x48xf32>
    %239 = math.exp %238 : vector<16x48xf32>
    %cst_91 = arith.constant 1.000000e+00 : f32
    %240 = vector.broadcast %cst_91 : f32 to vector<16x48xf32>
    %241 = arith.addf %240, %239 : vector<16x48xf32>
    %242 = arith.divf %240, %241 : vector<16x48xf32>
    %243 = arith.mulf %237, %242 : vector<16x48xf32>
    %c1_92 = arith.constant 1 : index
    %c0_93 = arith.constant 0 : index
    %c0_94 = arith.constant 0 : index
    %244 = vector.load %arg7[%c1_92, %c0_93, %c0_94] : memref<4x48x48xf32, #tpu.memory_space<vmem>>, vector<1x48x48xf32>
    %245 = vector.shape_cast %244 : vector<1x48x48xf32> to vector<48x48xf32>
    %cst_95 = arith.constant dense<0.000000e+00> : vector<16x48xf32>
    %246 = tpu.matmul %243, %245, %cst_95 {dimension_numbers = #tpu.dot_dimension_numbers<[1], [0], [0], [1], [0, 0, 1, 1], [], []>} : vector<16x48xf32>, vector<48x48xf32>, vector<16x48xf32> -> vector<16x48xf32>
    %247 = vector.broadcast %193 : vector<1x48xf32> to vector<16x48xf32>
    %248 = arith.addf %246, %247 : vector<16x48xf32>
    %cst_96 = arith.constant 2.000000e+01 : f32
    %249 = vector.broadcast %cst_96 : f32 to vector<16x48xf32>
    %250 = arith.cmpf ogt, %248, %249 : vector<16x48xf32>
    %cst_97 = arith.constant 2.000000e+01 : f32
    %251 = vector.broadcast %cst_97 : f32 to vector<16x48xf32>
    %252 = arith.minimumf %248, %251 : vector<16x48xf32>
    %253 = math.exp %252 : vector<16x48xf32>
    %cst_98 = arith.constant 1.000000e+00 : f32
    %254 = vector.broadcast %cst_98 : f32 to vector<16x48xf32>
    %255 = arith.addf %254, %253 : vector<16x48xf32>
    %256 = math.log %255 : vector<16x48xf32>
    %257 = arith.select %250, %248, %256 : vector<16x48xi1>, vector<16x48xf32>
    %258 = arith.negf %257 : vector<16x48xf32>
    %259 = math.exp %258 : vector<16x48xf32>
    %cst_99 = arith.constant 1.000000e+00 : f32
    %260 = vector.broadcast %cst_99 : f32 to vector<16x48xf32>
    %261 = arith.addf %260, %259 : vector<16x48xf32>
    %262 = arith.divf %260, %261 : vector<16x48xf32>
    %263 = arith.mulf %243, %262 : vector<16x48xf32>
    %264 = arith.negf %220 : vector<16x48xf32>
    %265 = math.exp %264 : vector<16x48xf32>
    %cst_100 = arith.constant 1.000000e+00 : f32
    %266 = vector.broadcast %cst_100 : f32 to vector<16x48xf32>
    %267 = arith.addf %266, %265 : vector<16x48xf32>
    %268 = arith.divf %266, %267 : vector<16x48xf32>
    %269 = arith.mulf %263, %268 : vector<16x48xf32>
    %c1_101 = arith.constant 1 : index
    %c0_102 = arith.constant 0 : index
    %c0_103 = arith.constant 0 : index
    %270 = vector.load %arg8[%c1_101, %c0_102, %c0_103] : memref<4x48x32xf32, #tpu.memory_space<vmem>>, vector<1x48x32xf32>
    %271 = vector.shape_cast %270 : vector<1x48x32xf32> to vector<48x32xf32>
    %cst_104 = arith.constant dense<0.000000e+00> : vector<16x32xf32>
    %272 = tpu.matmul %269, %271, %cst_104 {dimension_numbers = #tpu.dot_dimension_numbers<[1], [0], [0], [1], [0, 0, 1, 1], [], []>} : vector<16x48xf32>, vector<48x32xf32>, vector<16x32xf32> -> vector<16x32xf32>
    %273 = vector.broadcast %191 : vector<1x32xf32> to vector<16x32xf32>
    %274 = arith.mulf %272, %273 : vector<16x32xf32>
    %275 = arith.addf %274, %185 : vector<16x32xf32>
    %c2_105 = arith.constant 2 : index
    %c0_106 = arith.constant 0 : index
    %c0_107 = arith.constant 0 : index
    %276 = vector.load %arg4[%c2_105, %c0_106, %c0_107] : memref<4x4x48xf32, #tpu.memory_space<vmem>>, vector<1x1x32xf32>
    %277 = vector.shape_cast %276 : vector<1x1x32xf32> to vector<1x32xf32>
    %c2_108 = arith.constant 2 : index
    %c1_109 = arith.constant 1 : index
    %c0_110 = arith.constant 0 : index
    %278 = vector.load %arg4[%c2_108, %c1_109, %c0_110] : memref<4x4x48xf32, #tpu.memory_space<vmem>>, vector<1x1x32xf32>
    %279 = vector.shape_cast %278 : vector<1x1x32xf32> to vector<1x32xf32>
    %c2_111 = arith.constant 2 : index
    %c2_112 = arith.constant 2 : index
    %c0_113 = arith.constant 0 : index
    %280 = vector.load %arg4[%c2_111, %c2_112, %c0_113] : memref<4x4x48xf32, #tpu.memory_space<vmem>>, vector<1x1x32xf32>
    %281 = vector.shape_cast %280 : vector<1x1x32xf32> to vector<1x32xf32>
    %c2_114 = arith.constant 2 : index
    %c3_115 = arith.constant 3 : index
    %c0_116 = arith.constant 0 : index
    %282 = vector.load %arg4[%c2_114, %c3_115, %c0_116] : memref<4x4x48xf32, #tpu.memory_space<vmem>>, vector<1x1x48xf32>
    %283 = vector.shape_cast %282 : vector<1x1x48xf32> to vector<1x48xf32>
    %cst_117 = arith.constant dense<0.000000e+00> : vector<16xf32>
    %284 = vector.multi_reduction <add>, %275, %cst_117 [1] : vector<16x32xf32> to vector<16xf32>
    %285 = vector.shape_cast %284 : vector<16xf32> to vector<16x1xf32>
    %cst_118 = arith.constant 3.200000e+01 : f32
    %286 = vector.broadcast %cst_118 : f32 to vector<16x1xf32>
    %287 = arith.divf %285, %286 : vector<16x1xf32>
    %288 = vector.broadcast %287 : vector<16x1xf32> to vector<16x32xf32>
    %289 = arith.subf %275, %288 : vector<16x32xf32>
    %290 = arith.mulf %289, %289 : vector<16x32xf32>
    %cst_119 = arith.constant dense<0.000000e+00> : vector<16xf32>
    %291 = vector.multi_reduction <add>, %290, %cst_119 [1] : vector<16x32xf32> to vector<16xf32>
    %292 = vector.shape_cast %291 : vector<16xf32> to vector<16x1xf32>
    %cst_120 = arith.constant 3.200000e+01 : f32
    %293 = vector.broadcast %cst_120 : f32 to vector<16x1xf32>
    %294 = arith.divf %292, %293 : vector<16x1xf32>
    %295 = vector.broadcast %287 : vector<16x1xf32> to vector<16x32xf32>
    %296 = arith.subf %275, %295 : vector<16x32xf32>
    %cst_121 = arith.constant 9.99999974E-6 : f32
    %297 = vector.broadcast %cst_121 : f32 to vector<16x1xf32>
    %298 = arith.addf %294, %297 : vector<16x1xf32>
    %299 = math.rsqrt %298 : vector<16x1xf32>
    %300 = vector.broadcast %299 : vector<16x1xf32> to vector<16x32xf32>
    %301 = arith.mulf %296, %300 : vector<16x32xf32>
    %302 = vector.broadcast %277 : vector<1x32xf32> to vector<16x32xf32>
    %303 = arith.mulf %301, %302 : vector<16x32xf32>
    %304 = vector.broadcast %279 : vector<1x32xf32> to vector<16x32xf32>
    %305 = arith.addf %303, %304 : vector<16x32xf32>
    %c2_122 = arith.constant 2 : index
    %c0_123 = arith.constant 0 : index
    %c0_124 = arith.constant 0 : index
    %306 = vector.load %arg5[%c2_122, %c0_123, %c0_124] : memref<4x32x96xf32, #tpu.memory_space<vmem>>, vector<1x32x96xf32>
    %307 = vector.shape_cast %306 : vector<1x32x96xf32> to vector<32x96xf32>
    %cst_125 = arith.constant dense<0.000000e+00> : vector<16x96xf32>
    %308 = tpu.matmul %305, %307, %cst_125 {dimension_numbers = #tpu.dot_dimension_numbers<[1], [0], [0], [1], [0, 0, 1, 1], [], []>} : vector<16x32xf32>, vector<32x96xf32>, vector<16x96xf32> -> vector<16x96xf32>
    %309 = vector.extract_strided_slice %308 {offsets = [0, 0], sizes = [16, 48], strides = [1, 1]} : vector<16x96xf32> to vector<16x48xf32>
    %310 = vector.extract_strided_slice %308 {offsets = [0, 48], sizes = [16, 48], strides = [1, 1]} : vector<16x96xf32> to vector<16x48xf32>
    %c2_126 = arith.constant 2 : index
    %c0_127 = arith.constant 0 : index
    %c0_128 = arith.constant 0 : index
    %311 = vector.load %arg6[%c2_126, %c0_127, %c0_128] : memref<4x3x48xf32, #tpu.memory_space<vmem>>, vector<1x3x48xf32>
    %312 = vector.shape_cast %311 : vector<1x3x48xf32> to vector<3x48xf32>
    %c1_i32_129 = arith.constant 1 : i32
    %313 = tpu.dynamic_rotate %309 by %c1_i32_129 dim 0 : vector<16x48xf32>, i32 -> vector<16x48xf32>
    %314 = arith.mulf %313, %91 : vector<16x48xf32>
    %c15_i32_130 = arith.constant 15 : i32
    %315 = tpu.dynamic_rotate %309 by %c15_i32_130 dim 0 : vector<16x48xf32>, i32 -> vector<16x48xf32>
    %316 = arith.mulf %315, %95 : vector<16x48xf32>
    %317 = vector.extract_strided_slice %312 {offsets = [0, 0], sizes = [1, 48], strides = [1, 1]} : vector<3x48xf32> to vector<1x48xf32>
    %318 = vector.broadcast %317 : vector<1x48xf32> to vector<16x48xf32>
    %319 = arith.mulf %314, %318 : vector<16x48xf32>
    %320 = vector.extract_strided_slice %312 {offsets = [1, 0], sizes = [1, 48], strides = [1, 1]} : vector<3x48xf32> to vector<1x48xf32>
    %321 = vector.broadcast %320 : vector<1x48xf32> to vector<16x48xf32>
    %322 = arith.mulf %309, %321 : vector<16x48xf32>
    %323 = arith.addf %319, %322 : vector<16x48xf32>
    %324 = vector.extract_strided_slice %312 {offsets = [2, 0], sizes = [1, 48], strides = [1, 1]} : vector<3x48xf32> to vector<1x48xf32>
    %325 = vector.broadcast %324 : vector<1x48xf32> to vector<16x48xf32>
    %326 = arith.mulf %316, %325 : vector<16x48xf32>
    %327 = arith.addf %323, %326 : vector<16x48xf32>
    %328 = arith.negf %327 : vector<16x48xf32>
    %329 = math.exp %328 : vector<16x48xf32>
    %cst_131 = arith.constant 1.000000e+00 : f32
    %330 = vector.broadcast %cst_131 : f32 to vector<16x48xf32>
    %331 = arith.addf %330, %329 : vector<16x48xf32>
    %332 = arith.divf %330, %331 : vector<16x48xf32>
    %333 = arith.mulf %327, %332 : vector<16x48xf32>
    %c2_132 = arith.constant 2 : index
    %c0_133 = arith.constant 0 : index
    %c0_134 = arith.constant 0 : index
    %334 = vector.load %arg7[%c2_132, %c0_133, %c0_134] : memref<4x48x48xf32, #tpu.memory_space<vmem>>, vector<1x48x48xf32>
    %335 = vector.shape_cast %334 : vector<1x48x48xf32> to vector<48x48xf32>
    %cst_135 = arith.constant dense<0.000000e+00> : vector<16x48xf32>
    %336 = tpu.matmul %333, %335, %cst_135 {dimension_numbers = #tpu.dot_dimension_numbers<[1], [0], [0], [1], [0, 0, 1, 1], [], []>} : vector<16x48xf32>, vector<48x48xf32>, vector<16x48xf32> -> vector<16x48xf32>
    %337 = vector.broadcast %283 : vector<1x48xf32> to vector<16x48xf32>
    %338 = arith.addf %336, %337 : vector<16x48xf32>
    %cst_136 = arith.constant 2.000000e+01 : f32
    %339 = vector.broadcast %cst_136 : f32 to vector<16x48xf32>
    %340 = arith.cmpf ogt, %338, %339 : vector<16x48xf32>
    %cst_137 = arith.constant 2.000000e+01 : f32
    %341 = vector.broadcast %cst_137 : f32 to vector<16x48xf32>
    %342 = arith.minimumf %338, %341 : vector<16x48xf32>
    %343 = math.exp %342 : vector<16x48xf32>
    %cst_138 = arith.constant 1.000000e+00 : f32
    %344 = vector.broadcast %cst_138 : f32 to vector<16x48xf32>
    %345 = arith.addf %344, %343 : vector<16x48xf32>
    %346 = math.log %345 : vector<16x48xf32>
    %347 = arith.select %340, %338, %346 : vector<16x48xi1>, vector<16x48xf32>
    %348 = arith.negf %347 : vector<16x48xf32>
    %349 = math.exp %348 : vector<16x48xf32>
    %cst_139 = arith.constant 1.000000e+00 : f32
    %350 = vector.broadcast %cst_139 : f32 to vector<16x48xf32>
    %351 = arith.addf %350, %349 : vector<16x48xf32>
    %352 = arith.divf %350, %351 : vector<16x48xf32>
    %353 = arith.mulf %333, %352 : vector<16x48xf32>
    %354 = arith.negf %310 : vector<16x48xf32>
    %355 = math.exp %354 : vector<16x48xf32>
    %cst_140 = arith.constant 1.000000e+00 : f32
    %356 = vector.broadcast %cst_140 : f32 to vector<16x48xf32>
    %357 = arith.addf %356, %355 : vector<16x48xf32>
    %358 = arith.divf %356, %357 : vector<16x48xf32>
    %359 = arith.mulf %353, %358 : vector<16x48xf32>
    %c2_141 = arith.constant 2 : index
    %c0_142 = arith.constant 0 : index
    %c0_143 = arith.constant 0 : index
    %360 = vector.load %arg8[%c2_141, %c0_142, %c0_143] : memref<4x48x32xf32, #tpu.memory_space<vmem>>, vector<1x48x32xf32>
    %361 = vector.shape_cast %360 : vector<1x48x32xf32> to vector<48x32xf32>
    %cst_144 = arith.constant dense<0.000000e+00> : vector<16x32xf32>
    %362 = tpu.matmul %359, %361, %cst_144 {dimension_numbers = #tpu.dot_dimension_numbers<[1], [0], [0], [1], [0, 0, 1, 1], [], []>} : vector<16x48xf32>, vector<48x32xf32>, vector<16x32xf32> -> vector<16x32xf32>
    %363 = vector.broadcast %281 : vector<1x32xf32> to vector<16x32xf32>
    %364 = arith.mulf %362, %363 : vector<16x32xf32>
    %365 = arith.addf %364, %275 : vector<16x32xf32>
    %c3_145 = arith.constant 3 : index
    %c0_146 = arith.constant 0 : index
    %c0_147 = arith.constant 0 : index
    %366 = vector.load %arg4[%c3_145, %c0_146, %c0_147] : memref<4x4x48xf32, #tpu.memory_space<vmem>>, vector<1x1x32xf32>
    %367 = vector.shape_cast %366 : vector<1x1x32xf32> to vector<1x32xf32>
    %c3_148 = arith.constant 3 : index
    %c1_149 = arith.constant 1 : index
    %c0_150 = arith.constant 0 : index
    %368 = vector.load %arg4[%c3_148, %c1_149, %c0_150] : memref<4x4x48xf32, #tpu.memory_space<vmem>>, vector<1x1x32xf32>
    %369 = vector.shape_cast %368 : vector<1x1x32xf32> to vector<1x32xf32>
    %c3_151 = arith.constant 3 : index
    %c2_152 = arith.constant 2 : index
    %c0_153 = arith.constant 0 : index
    %370 = vector.load %arg4[%c3_151, %c2_152, %c0_153] : memref<4x4x48xf32, #tpu.memory_space<vmem>>, vector<1x1x32xf32>
    %371 = vector.shape_cast %370 : vector<1x1x32xf32> to vector<1x32xf32>
    %c3_154 = arith.constant 3 : index
    %c3_155 = arith.constant 3 : index
    %c0_156 = arith.constant 0 : index
    %372 = vector.load %arg4[%c3_154, %c3_155, %c0_156] : memref<4x4x48xf32, #tpu.memory_space<vmem>>, vector<1x1x48xf32>
    %373 = vector.shape_cast %372 : vector<1x1x48xf32> to vector<1x48xf32>
    %cst_157 = arith.constant dense<0.000000e+00> : vector<16xf32>
    %374 = vector.multi_reduction <add>, %365, %cst_157 [1] : vector<16x32xf32> to vector<16xf32>
    %375 = vector.shape_cast %374 : vector<16xf32> to vector<16x1xf32>
    %cst_158 = arith.constant 3.200000e+01 : f32
    %376 = vector.broadcast %cst_158 : f32 to vector<16x1xf32>
    %377 = arith.divf %375, %376 : vector<16x1xf32>
    %378 = vector.broadcast %377 : vector<16x1xf32> to vector<16x32xf32>
    %379 = arith.subf %365, %378 : vector<16x32xf32>
    %380 = arith.mulf %379, %379 : vector<16x32xf32>
    %cst_159 = arith.constant dense<0.000000e+00> : vector<16xf32>
    %381 = vector.multi_reduction <add>, %380, %cst_159 [1] : vector<16x32xf32> to vector<16xf32>
    %382 = vector.shape_cast %381 : vector<16xf32> to vector<16x1xf32>
    %cst_160 = arith.constant 3.200000e+01 : f32
    %383 = vector.broadcast %cst_160 : f32 to vector<16x1xf32>
    %384 = arith.divf %382, %383 : vector<16x1xf32>
    %385 = vector.broadcast %377 : vector<16x1xf32> to vector<16x32xf32>
    %386 = arith.subf %365, %385 : vector<16x32xf32>
    %cst_161 = arith.constant 9.99999974E-6 : f32
    %387 = vector.broadcast %cst_161 : f32 to vector<16x1xf32>
    %388 = arith.addf %384, %387 : vector<16x1xf32>
    %389 = math.rsqrt %388 : vector<16x1xf32>
    %390 = vector.broadcast %389 : vector<16x1xf32> to vector<16x32xf32>
    %391 = arith.mulf %386, %390 : vector<16x32xf32>
    %392 = vector.broadcast %367 : vector<1x32xf32> to vector<16x32xf32>
    %393 = arith.mulf %391, %392 : vector<16x32xf32>
    %394 = vector.broadcast %369 : vector<1x32xf32> to vector<16x32xf32>
    %395 = arith.addf %393, %394 : vector<16x32xf32>
    %c3_162 = arith.constant 3 : index
    %c0_163 = arith.constant 0 : index
    %c0_164 = arith.constant 0 : index
    %396 = vector.load %arg5[%c3_162, %c0_163, %c0_164] : memref<4x32x96xf32, #tpu.memory_space<vmem>>, vector<1x32x96xf32>
    %397 = vector.shape_cast %396 : vector<1x32x96xf32> to vector<32x96xf32>
    %cst_165 = arith.constant dense<0.000000e+00> : vector<16x96xf32>
    %398 = tpu.matmul %395, %397, %cst_165 {dimension_numbers = #tpu.dot_dimension_numbers<[1], [0], [0], [1], [0, 0, 1, 1], [], []>} : vector<16x32xf32>, vector<32x96xf32>, vector<16x96xf32> -> vector<16x96xf32>
    %399 = vector.extract_strided_slice %398 {offsets = [0, 0], sizes = [16, 48], strides = [1, 1]} : vector<16x96xf32> to vector<16x48xf32>
    %400 = vector.extract_strided_slice %398 {offsets = [0, 48], sizes = [16, 48], strides = [1, 1]} : vector<16x96xf32> to vector<16x48xf32>
    %c3_166 = arith.constant 3 : index
    %c0_167 = arith.constant 0 : index
    %c0_168 = arith.constant 0 : index
    %401 = vector.load %arg6[%c3_166, %c0_167, %c0_168] : memref<4x3x48xf32, #tpu.memory_space<vmem>>, vector<1x3x48xf32>
    %402 = vector.shape_cast %401 : vector<1x3x48xf32> to vector<3x48xf32>
    %c1_i32_169 = arith.constant 1 : i32
    %403 = tpu.dynamic_rotate %399 by %c1_i32_169 dim 0 : vector<16x48xf32>, i32 -> vector<16x48xf32>
    %404 = arith.mulf %403, %91 : vector<16x48xf32>
    %c15_i32_170 = arith.constant 15 : i32
    %405 = tpu.dynamic_rotate %399 by %c15_i32_170 dim 0 : vector<16x48xf32>, i32 -> vector<16x48xf32>
    %406 = arith.mulf %405, %95 : vector<16x48xf32>
    %407 = vector.extract_strided_slice %402 {offsets = [0, 0], sizes = [1, 48], strides = [1, 1]} : vector<3x48xf32> to vector<1x48xf32>
    %408 = vector.broadcast %407 : vector<1x48xf32> to vector<16x48xf32>
    %409 = arith.mulf %404, %408 : vector<16x48xf32>
    %410 = vector.extract_strided_slice %402 {offsets = [1, 0], sizes = [1, 48], strides = [1, 1]} : vector<3x48xf32> to vector<1x48xf32>
    %411 = vector.broadcast %410 : vector<1x48xf32> to vector<16x48xf32>
    %412 = arith.mulf %399, %411 : vector<16x48xf32>
    %413 = arith.addf %409, %412 : vector<16x48xf32>
    %414 = vector.extract_strided_slice %402 {offsets = [2, 0], sizes = [1, 48], strides = [1, 1]} : vector<3x48xf32> to vector<1x48xf32>
    %415 = vector.broadcast %414 : vector<1x48xf32> to vector<16x48xf32>
    %416 = arith.mulf %406, %415 : vector<16x48xf32>
    %417 = arith.addf %413, %416 : vector<16x48xf32>
    %418 = arith.negf %417 : vector<16x48xf32>
    %419 = math.exp %418 : vector<16x48xf32>
    %cst_171 = arith.constant 1.000000e+00 : f32
    %420 = vector.broadcast %cst_171 : f32 to vector<16x48xf32>
    %421 = arith.addf %420, %419 : vector<16x48xf32>
    %422 = arith.divf %420, %421 : vector<16x48xf32>
    %423 = arith.mulf %417, %422 : vector<16x48xf32>
    %c3_172 = arith.constant 3 : index
    %c0_173 = arith.constant 0 : index
    %c0_174 = arith.constant 0 : index
    %424 = vector.load %arg7[%c3_172, %c0_173, %c0_174] : memref<4x48x48xf32, #tpu.memory_space<vmem>>, vector<1x48x48xf32>
    %425 = vector.shape_cast %424 : vector<1x48x48xf32> to vector<48x48xf32>
    %cst_175 = arith.constant dense<0.000000e+00> : vector<16x48xf32>
    %426 = tpu.matmul %423, %425, %cst_175 {dimension_numbers = #tpu.dot_dimension_numbers<[1], [0], [0], [1], [0, 0, 1, 1], [], []>} : vector<16x48xf32>, vector<48x48xf32>, vector<16x48xf32> -> vector<16x48xf32>
    %427 = vector.broadcast %373 : vector<1x48xf32> to vector<16x48xf32>
    %428 = arith.addf %426, %427 : vector<16x48xf32>
    %cst_176 = arith.constant 2.000000e+01 : f32
    %429 = vector.broadcast %cst_176 : f32 to vector<16x48xf32>
    %430 = arith.cmpf ogt, %428, %429 : vector<16x48xf32>
    %cst_177 = arith.constant 2.000000e+01 : f32
    %431 = vector.broadcast %cst_177 : f32 to vector<16x48xf32>
    %432 = arith.minimumf %428, %431 : vector<16x48xf32>
    %433 = math.exp %432 : vector<16x48xf32>
    %cst_178 = arith.constant 1.000000e+00 : f32
    %434 = vector.broadcast %cst_178 : f32 to vector<16x48xf32>
    %435 = arith.addf %434, %433 : vector<16x48xf32>
    %436 = math.log %435 : vector<16x48xf32>
    %437 = arith.select %430, %428, %436 : vector<16x48xi1>, vector<16x48xf32>
    %438 = arith.negf %437 : vector<16x48xf32>
    %439 = math.exp %438 : vector<16x48xf32>
    %cst_179 = arith.constant 1.000000e+00 : f32
    %440 = vector.broadcast %cst_179 : f32 to vector<16x48xf32>
    %441 = arith.addf %440, %439 : vector<16x48xf32>
    %442 = arith.divf %440, %441 : vector<16x48xf32>
    %443 = arith.mulf %423, %442 : vector<16x48xf32>
    %444 = arith.negf %400 : vector<16x48xf32>
    %445 = math.exp %444 : vector<16x48xf32>
    %cst_180 = arith.constant 1.000000e+00 : f32
    %446 = vector.broadcast %cst_180 : f32 to vector<16x48xf32>
    %447 = arith.addf %446, %445 : vector<16x48xf32>
    %448 = arith.divf %446, %447 : vector<16x48xf32>
    %449 = arith.mulf %443, %448 : vector<16x48xf32>
    %c3_181 = arith.constant 3 : index
    %c0_182 = arith.constant 0 : index
    %c0_183 = arith.constant 0 : index
    %450 = vector.load %arg8[%c3_181, %c0_182, %c0_183] : memref<4x48x32xf32, #tpu.memory_space<vmem>>, vector<1x48x32xf32>
    %451 = vector.shape_cast %450 : vector<1x48x32xf32> to vector<48x32xf32>
    %cst_184 = arith.constant dense<0.000000e+00> : vector<16x32xf32>
    %452 = tpu.matmul %449, %451, %cst_184 {dimension_numbers = #tpu.dot_dimension_numbers<[1], [0], [0], [1], [0, 0, 1, 1], [], []>} : vector<16x48xf32>, vector<48x32xf32>, vector<16x32xf32> -> vector<16x32xf32>
    %453 = vector.broadcast %371 : vector<1x32xf32> to vector<16x32xf32>
    %454 = arith.mulf %452, %453 : vector<16x32xf32>
    %455 = arith.addf %454, %365 : vector<16x32xf32>
    %cst_185 = arith.constant dense<0.000000e+00> : vector<16xf32>
    %456 = vector.multi_reduction <add>, %455, %cst_185 [1] : vector<16x32xf32> to vector<16xf32>
    %457 = vector.shape_cast %456 : vector<16xf32> to vector<16x1xf32>
    %cst_186 = arith.constant 3.200000e+01 : f32
    %458 = vector.broadcast %cst_186 : f32 to vector<16x1xf32>
    %459 = arith.divf %457, %458 : vector<16x1xf32>
    %460 = vector.broadcast %459 : vector<16x1xf32> to vector<16x32xf32>
    %461 = arith.subf %455, %460 : vector<16x32xf32>
    %462 = arith.mulf %461, %461 : vector<16x32xf32>
    %cst_187 = arith.constant dense<0.000000e+00> : vector<16xf32>
    %463 = vector.multi_reduction <add>, %462, %cst_187 [1] : vector<16x32xf32> to vector<16xf32>
    %464 = vector.shape_cast %463 : vector<16xf32> to vector<16x1xf32>
    %cst_188 = arith.constant 3.200000e+01 : f32
    %465 = vector.broadcast %cst_188 : f32 to vector<16x1xf32>
    %466 = arith.divf %464, %465 : vector<16x1xf32>
    %467 = vector.broadcast %459 : vector<16x1xf32> to vector<16x32xf32>
    %468 = arith.subf %455, %467 : vector<16x32xf32>
    %cst_189 = arith.constant 9.99999974E-6 : f32
    %469 = vector.broadcast %cst_189 : f32 to vector<16x1xf32>
    %470 = arith.addf %466, %469 : vector<16x1xf32>
    %471 = math.rsqrt %470 : vector<16x1xf32>
    %472 = vector.broadcast %471 : vector<16x1xf32> to vector<16x32xf32>
    %473 = arith.mulf %468, %472 : vector<16x32xf32>
    %c0_190 = arith.constant 0 : index
    %c0_191 = arith.constant 0 : index
    %474 = vector.load %arg9[%c0_190, %c0_191] : memref<32x128xf32, #tpu.memory_space<vmem>>, vector<32x128xf32>
    %cst_192 = arith.constant dense<0.000000e+00> : vector<16x128xf32>
    %475 = tpu.matmul %473, %474, %cst_192 {dimension_numbers = #tpu.dot_dimension_numbers<[1], [0], [0], [1], [0, 0, 1, 1], [], []>} : vector<16x32xf32>, vector<32x128xf32>, vector<16x128xf32> -> vector<16x128xf32>
    %c0_193 = arith.constant 0 : index
    %c0_194 = arith.constant 0 : index
    %476 = vector.load %arg10[%c0_193, %c0_194] : memref<1x128xf32, #tpu.memory_space<vmem>>, vector<1x128xf32>
    %477 = vector.broadcast %476 : vector<1x128xf32> to vector<16x128xf32>
    %478 = arith.addf %475, %477 : vector<16x128xf32>
    %cst_195 = arith.constant 5.000000e-01 : f32
    %479 = vector.broadcast %cst_195 : f32 to vector<16x128xf32>
    %480 = arith.mulf %479, %478 : vector<16x128xf32>
    %cst_196 = arith.constant 0.707106769 : f32
    %481 = vector.broadcast %cst_196 : f32 to vector<16x128xf32>
    %482 = arith.mulf %478, %481 : vector<16x128xf32>
    %483 = math.absf %482 : vector<16x128xf32>
    %cst_197 = arith.constant 0.327591091 : f32
    %484 = vector.broadcast %cst_197 : f32 to vector<16x128xf32>
    %485 = arith.mulf %484, %483 : vector<16x128xf32>
    %cst_198 = arith.constant 1.000000e+00 : f32
    %486 = vector.broadcast %cst_198 : f32 to vector<16x128xf32>
    %487 = arith.addf %486, %485 : vector<16x128xf32>
    %cst_199 = arith.constant 1.000000e+00 : f32
    %488 = vector.broadcast %cst_199 : f32 to vector<16x128xf32>
    %489 = arith.divf %488, %487 : vector<16x128xf32>
    %cst_200 = arith.constant 1.06140542 : f32
    %490 = vector.broadcast %cst_200 : f32 to vector<16x128xf32>
    %491 = arith.mulf %490, %489 : vector<16x128xf32>
    %cst_201 = arith.constant -1.45315206 : f32
    %492 = vector.broadcast %cst_201 : f32 to vector<16x128xf32>
    %493 = arith.addf %491, %492 : vector<16x128xf32>
    %494 = arith.mulf %493, %489 : vector<16x128xf32>
    %cst_202 = arith.constant 1.42141378 : f32
    %495 = vector.broadcast %cst_202 : f32 to vector<16x128xf32>
    %496 = arith.addf %494, %495 : vector<16x128xf32>
    %497 = arith.mulf %496, %489 : vector<16x128xf32>
    %cst_203 = arith.constant -0.284496725 : f32
    %498 = vector.broadcast %cst_203 : f32 to vector<16x128xf32>
    %499 = arith.addf %497, %498 : vector<16x128xf32>
    %500 = arith.mulf %499, %489 : vector<16x128xf32>
    %cst_204 = arith.constant 0.254829586 : f32
    %501 = vector.broadcast %cst_204 : f32 to vector<16x128xf32>
    %502 = arith.addf %500, %501 : vector<16x128xf32>
    %503 = arith.mulf %502, %489 : vector<16x128xf32>
    %cst_205 = arith.constant 0.000000e+00 : f32
    %504 = vector.broadcast %cst_205 : f32 to vector<16x128xf32>
    %505 = arith.subf %504, %483 : vector<16x128xf32>
    %506 = arith.mulf %505, %483 : vector<16x128xf32>
    %507 = math.exp %506 : vector<16x128xf32>
    %508 = arith.mulf %503, %507 : vector<16x128xf32>
    %cst_206 = arith.constant 1.000000e+00 : f32
    %509 = vector.broadcast %cst_206 : f32 to vector<16x128xf32>
    %510 = arith.subf %509, %508 : vector<16x128xf32>
    %cst_207 = arith.constant 0.000000e+00 : f32
    %511 = vector.broadcast %cst_207 : f32 to vector<16x128xf32>
    %512 = arith.cmpf oge, %482, %511 : vector<16x128xf32>
    %cst_208 = arith.constant 0.000000e+00 : f32
    %513 = vector.broadcast %cst_208 : f32 to vector<16x128xf32>
    %514 = arith.subf %513, %510 : vector<16x128xf32>
    %515 = arith.select %512, %510, %514 : vector<16x128xi1>, vector<16x128xf32>
    %cst_209 = arith.constant 1.000000e+00 : f32
    %516 = vector.broadcast %cst_209 : f32 to vector<16x128xf32>
    %517 = arith.addf %516, %515 : vector<16x128xf32>
    %518 = arith.mulf %480, %517 : vector<16x128xf32>
    %c0_210 = arith.constant 0 : index
    %c0_211 = arith.constant 0 : index
    %519 = vector.load %arg11[%c0_210, %c0_211] : memref<128x512xf32, #tpu.memory_space<vmem>>, vector<128x512xf32>
    %cst_212 = arith.constant dense<0.000000e+00> : vector<16x512xf32>
    %520 = tpu.matmul %518, %519, %cst_212 {dimension_numbers = #tpu.dot_dimension_numbers<[1], [0], [0], [1], [0, 0, 1, 1], [], []>} : vector<16x128xf32>, vector<128x512xf32>, vector<16x512xf32> -> vector<16x512xf32>
    %c0_213 = arith.constant 0 : index
    %c0_214 = arith.constant 0 : index
    %521 = vector.load %arg12[%c0_213, %c0_214] : memref<1x512xf32, #tpu.memory_space<vmem>>, vector<1x512xf32>
    %522 = vector.broadcast %521 : vector<1x512xf32> to vector<16x512xf32>
    %523 = arith.addf %520, %522 : vector<16x512xf32>
    %524 = vector.shape_cast %523 : vector<16x512xf32> to vector<2x8x512xf32>
    %c0_215 = arith.constant 0 : index
    %c0_216 = arith.constant 0 : index
    %c0_217 = arith.constant 0 : index
    %525 = vector.load %arg13[%c0_215, %c0_216, %c0_217] : memref<2x8x512xf32, #tpu.memory_space<vmem>>, vector<2x8x512xf32>
    tpu.vector_store %arg13[%c0_215, %c0_216, %c0_217], %524 {strides = array<i32>} : memref<2x8x512xf32, #tpu.memory_space<vmem>>, vector<2x8x512xf32>,
    return
  }
  func.func @transform_0(%arg0: i32) -> (i32, i32, i32, i32) {
    %c0_i32 = arith.constant 0 : i32
    %c0_i32_0 = arith.constant 0 : i32
    %c0_i32_1 = arith.constant 0 : i32
    %c0_i32_2 = arith.constant 0 : i32
    return %c0_i32, %arg0, %c0_i32_0, %c0_i32_1 : i32, i32, i32, i32
  }
  func.func @transform_1(%arg0: i32) -> (i32, i32, i32) {
    %c0_i32 = arith.constant 0 : i32
    %c0_i32_0 = arith.constant 0 : i32
    %c0_i32_1 = arith.constant 0 : i32
    return %arg0, %c0_i32, %c0_i32_0 : i32, i32, i32
  }
  func.func @transform_2(%arg0: i32) -> (i32, i32, i32) {
    %c0_i32 = arith.constant 0 : i32
    %c0_i32_0 = arith.constant 0 : i32
    %c0_i32_1 = arith.constant 0 : i32
    %c0_i32_2 = arith.constant 0 : i32
    return %c0_i32, %c0_i32_0, %c0_i32_1 : i32, i32, i32
  }
  func.func @transform_3(%arg0: i32) -> (i32, i32, i32) {
    %c0_i32 = arith.constant 0 : i32
    %c0_i32_0 = arith.constant 0 : i32
    %c0_i32_1 = arith.constant 0 : i32
    %c0_i32_2 = arith.constant 0 : i32
    return %c0_i32, %c0_i32_0, %c0_i32_1 : i32, i32, i32
  }
  func.func @transform_4(%arg0: i32) -> (i32, i32, i32) {
    %c0_i32 = arith.constant 0 : i32
    %c0_i32_0 = arith.constant 0 : i32
    %c0_i32_1 = arith.constant 0 : i32
    %c0_i32_2 = arith.constant 0 : i32
    return %c0_i32, %c0_i32_0, %c0_i32_1 : i32, i32, i32
  }
  func.func @transform_5(%arg0: i32) -> (i32, i32, i32) {
    %c0_i32 = arith.constant 0 : i32
    %c0_i32_0 = arith.constant 0 : i32
    %c0_i32_1 = arith.constant 0 : i32
    %c0_i32_2 = arith.constant 0 : i32
    return %c0_i32, %c0_i32_0, %c0_i32_1 : i32, i32, i32
  }
  func.func @transform_6(%arg0: i32) -> (i32, i32, i32) {
    %c0_i32 = arith.constant 0 : i32
    %c0_i32_0 = arith.constant 0 : i32
    %c0_i32_1 = arith.constant 0 : i32
    %c0_i32_2 = arith.constant 0 : i32
    return %c0_i32, %c0_i32_0, %c0_i32_1 : i32, i32, i32
  }
  func.func @transform_7(%arg0: i32) -> (i32, i32, i32) {
    %c0_i32 = arith.constant 0 : i32
    %c0_i32_0 = arith.constant 0 : i32
    %c0_i32_1 = arith.constant 0 : i32
    %c0_i32_2 = arith.constant 0 : i32
    return %c0_i32, %c0_i32_0, %c0_i32_1 : i32, i32, i32
  }
  func.func @transform_8(%arg0: i32) -> (i32, i32) {
    %c0_i32 = arith.constant 0 : i32
    %c0_i32_0 = arith.constant 0 : i32
    %c0_i32_1 = arith.constant 0 : i32
    return %c0_i32, %c0_i32_0 : i32, i32
  }
  func.func @transform_9(%arg0: i32) -> (i32, i32) {
    %c0_i32 = arith.constant 0 : i32
    %c0_i32_0 = arith.constant 0 : i32
    %c0_i32_1 = arith.constant 0 : i32
    return %c0_i32, %c0_i32_0 : i32, i32
  }
  func.func @transform_10(%arg0: i32) -> (i32, i32) {
    %c0_i32 = arith.constant 0 : i32
    %c0_i32_0 = arith.constant 0 : i32
    %c0_i32_1 = arith.constant 0 : i32
    return %c0_i32, %c0_i32_0 : i32, i32
  }
  func.func @transform_11(%arg0: i32) -> (i32, i32) {
    %c0_i32 = arith.constant 0 : i32
    %c0_i32_0 = arith.constant 0 : i32
    %c0_i32_1 = arith.constant 0 : i32
    return %c0_i32, %c0_i32_0 : i32, i32
  }
  func.func @transform_12(%arg0: i32) -> (i32, i32, i32) {
    %c0_i32 = arith.constant 0 : i32
    %c0_i32_0 = arith.constant 0 : i32
    %c0_i32_1 = arith.constant 0 : i32
    return %arg0, %c0_i32, %c0_i32_0 : i32, i32, i32
  }
}

</mosaic_0001>

<bundles_post_ra>
// kernel: audio_processor_forward.1
= control target key start
LH: loop header
LB: loop body
LE: loop exit
PB: predicated region body
PF: predicated region fallthrough
CT: control target
= control target key end

     0   :  { %vm57_vm0 = vcmask 261120   ;;  %s3290_s20 = smov 80   ;;  %vm571_vm4 = vcmask 392192   ;;  %s4256_s0 = inlined_call_operand.vmem [shape: f32[8,2,8,32], index: 0, kind: input, shape index: {}]   ;;  %s4257_s2 = inlined_call_operand.vmem [shape: f32[8,1,32], index: 2, kind: input, shape index: {}]   ;;  %s4258_s1 = inlined_call_operand.vmem [shape: f32[2,1,32], index: 1, kind: input, shape index: {}]   ;;  %s4259_s4 = inlined_call_operand.vmem [shape: f32[4,32,96], index: 4, kind: input, shape index: {}]   ;;  %s4260_s3 = inlined_call_operand.vmem [shape: f32[4,4,48], index: 3, kind: input, shape index: {}]   ;;  %s4261_s6 = inlined_call_operand.vmem [shape: f32[4,48,48], index: 6, kind: input, shape index: {}]   ;;  %s4262_s5 = inlined_call_operand.vmem [shape: f32[4,3,48], index: 5, kind: input, shape index: {}]   ;;  %s4263_s7 = inlined_call_operand.vmem [shape: f32[4,48,32], index: 7, kind: input, shape index: {}]   ;;  %s4264_s8 = inlined_call_operand.vmem [shape: f32[32,128], index: 8, kind: input, shape index: {}]   ;;  %s4265_s10 = inlined_call_operand.vmem [shape: f32[128,512], index: 10, kind: input, shape index: {}]   ;;  %s4266_s9 = inlined_call_operand.vmem [shape: f32[1,128], index: 9, kind: input, shape index: {}]   ;;  %s4267_s11 = inlined_call_operand.vmem [shape: f32[1,512], index: 11, kind: input, shape index: {}]   ;;  %s4268_s12 = inlined_call_operand.vmem [shape: f32[2,8,512], index: 12, kind: output, shape index: {}]  }
   0x1   :  { %v41_v0 = vld [vmem:[%s4256_s0] sm:$0xff]  ;;  %v42_v1 = vld [vmem:[%s4256_s0 + $0x8] sm:$0xff]  ;;  %v43_v2 = vld [vmem:[%s4256_s0 + $0x10] sm:$0xff] }
   0x2   :  { %v58_v3 = vsel %vm57_vm0, %v41_v0, 0.0  ;;  %v61_v4 = vsel %vm57_vm0, %v42_v1, 0.0  ;;  %v44_v5 = vld [vmem:[%s4256_s0 + $0x18] sm:$0xff]  ;;  %v64_v6 = vsel %vm57_vm0, %v43_v2, 0.0  ;;  %v45_v8 = vld [vmem:[%s4256_s0 + $0x20] sm:$0xff]  ;;  %v46_v9 = vld [vmem:[%s4256_s0 + $0x28] sm:$0xff] }
   0x3   :  { %59 = vadd.xlane.f32.xlu0 %v58_v3  ;;  %62 = vadd.xlane.f32.xlu1 %v61_v4  ;;  %v67_v7 = vsel %vm57_vm0, %v44_v5, 0.0  ;;  %v70_v10 = vsel %vm57_vm0, %v45_v8, 0.0  ;;  %v73_v11 = vsel %vm57_vm0, %v46_v9, 0.0  ;;  %v3383_v12 = vld [vmem:[%s4256_s0 + $0x30] sm:$0xff]  ;;  %v3388_v13 = vld [vmem:[%s4256_s0 + $0x38] sm:$0xff]  ;;  %v3397_v16 = vld [vmem:[%s4256_s0 + $0x40] sm:$0xff] }
   0x4   :  { %v76_v14 = vsel %vm57_vm0, %v3383_v12, 0.0  ;;  %v79_v15 = vsel %vm57_vm0, %v3388_v13, 0.0  ;;  %v3402_v17 = vld [vmem:[%s4256_s0 + $0x48] sm:$0xff]  ;;  %v82_v18 = vsel %vm57_vm0, %v3397_v16, 0.0  ;;  %v3411_v20 = vld [vmem:[%s4256_s0 + $0x50] sm:$0xff]  ;;  %v3416_v21 = vld [vmem:[%s4256_s0 + $0x58] sm:$0xff] }
   0x5   :  { %v85_v19 = vsel %vm57_vm0, %v3402_v17, 0.0  ;;  %v88_v22 = vsel %vm57_vm0, %v3411_v20, 0.0  ;;  %v91_v23 = vsel %vm57_vm0, %v3416_v21, 0.0  ;;  %v3425_v24 = vld [vmem:[%s4256_s0 + $0x60] sm:$0xff]  ;;  %v3430_v25 = vld [vmem:[%s4256_s0 + $0x68] sm:$0xff]  ;;  %v3439_v28 = vld [vmem:[%s4256_s0 + $0x70] sm:$0xff] }
   0x6   :  { %v94_v26 = vsel %vm57_vm0, %v3425_v24, 0.0  ;;  %v97_v27 = vsel %vm57_vm0, %v3430_v25, 0.0  ;;  %v3444_v29 = vld [vmem:[%s4256_s0 + $0x78] sm:$0xff]  ;;  %v100_v30 = vsel %vm57_vm0, %v3439_v28, 0.0 }
   0x7   :  { %65 = vadd.xlane.f32.xlu0 %v64_v6  ;;  %68 = vadd.xlane.f32.xlu1 %v67_v7  ;;  %v103_v31 = vsel %vm57_vm0, %v3444_v29, 0.0 }
   0xb   :  { %71 = vadd.xlane.f32.xlu0 %v70_v10  ;;  %74 = vadd.xlane.f32.xlu1 %v73_v11 }
   0xf   :  { %77 = vadd.xlane.f32.xlu0 %v76_v14  ;;  %80 = vadd.xlane.f32.xlu1 %v79_v15 }
  0x13   :  { %83 = vadd.xlane.f32.xlu0 %v82_v18  ;;  %86 = vadd.xlane.f32.xlu1 %v85_v19 }
  0x17   :  { %89 = vadd.xlane.f32.xlu0 %v88_v22  ;;  %92 = vadd.xlane.f32.xlu1 %v91_v23 }
  0x1b   :  { %95 = vadd.xlane.f32.xlu0 %v94_v26  ;;  %98 = vadd.xlane.f32.xlu1 %v97_v27 }
  0x1f   :  { %101 = vadd.xlane.f32.xlu0 %v100_v30  ;;  %104 = vadd.xlane.f32.xlu1 %v103_v31 }
  0x90   :  { %v60_v32 = vpop.xlane.xlu0 %59  ;;  %v63_v33 = vpop.xlane.xlu1 %62 }
  0x91   :  { %v107_v34 = vmul.f32 0.03125, %v60_v32  ;;  %v108_v35 = vmul.f32 0.03125, %v63_v33 }
  0x93   :  { %v3450_v36 = vsub.f32 %v41_v0, %v107_v34  ;;  %v3452_v37 = vsub.f32 %v42_v1, %v108_v35 }
  0x94   :  { %v66_v38 = vpop.xlane.xlu0 %65  ;;  %v69_v39 = vpop.xlane.xlu1 %68 }
  0x95   :  { %v109_v40 = vmul.f32 0.03125, %v66_v38  ;;  %v110_v41 = vmul.f32 0.03125, %v69_v39  ;;  %v139_v42 = vmul.f32 %v3450_v36, %v3450_v36  ;;  %v140_v43 = vmul.f32 %v3452_v37, %v3452_v37 }
  0x97   :  { %v3458_v44 = vsub.f32 %v43_v2, %v109_v40  ;;  %v3460_v45 = vsub.f32 %v44_v5, %v110_v41  ;;  %v155_v46 = vsel %vm57_vm0, %v139_v42, 0.0  ;;  %v158_v49 = vsel %vm57_vm0, %v140_v43, 0.0 }
  0x98   :  { %156 = vadd.xlane.f32.xlu0 %v155_v46  ;;  %v72_v47 = vpop.xlane.xlu0 %71  ;;  %v75_v48 = vpop.xlane.xlu1 %74 }
  0x99   :  { %v111_v50 = vmul.f32 0.03125, %v72_v47  ;;  %v112_v51 = vmul.f32 0.03125, %v75_v48  ;;  %v141_v52 = vmul.f32 %v3458_v44, %v3458_v44  ;;  %v142_v53 = vmul.f32 %v3460_v45, %v3460_v45 }
  0x9b   :  { %v3468_v54 = vsub.f32 %v45_v8, %v111_v50  ;;  %v3470_v55 = vsub.f32 %v46_v9, %v112_v51  ;;  %v161_v56 = vsel %vm57_vm0, %v141_v52, 0.0  ;;  %v164_v59 = vsel %vm57_vm0, %v142_v53, 0.0 }
  0x9c   :  { %159 = vadd.xlane.f32.xlu0 %v158_v49  ;;  %162 = vadd.xlane.f32.xlu1 %v161_v56  ;;  %v78_v57 = vpop.xlane.xlu0 %77  ;;  %v81_v58 = vpop.xlane.xlu1 %80 }
  0x9d   :  { %v113_v60 = vmul.f32 0.03125, %v78_v57  ;;  %v114_v61 = vmul.f32 0.03125, %v81_v58  ;;  %v143_v62 = vmul.f32 %v3468_v54, %v3468_v54  ;;  %v144_v63 = vmul.f32 %v3470_v55, %v3470_v55 }
  0x9f   :  { %v3479_v0 = vsub.f32 %v3383_v12, %v113_v60  ;;  %v3482_v1 = vsub.f32 %v3388_v13, %v114_v61  ;;  %v167_v2 = vsel %vm57_vm0, %v143_v62, 0.0  ;;  %v170_v5 = vsel %vm57_vm0, %v144_v63, 0.0 }
  0xa0   :  { %165 = vadd.xlane.f32.xlu1 %v164_v59  ;;  %168 = vadd.xlane.f32.xlu0 %v167_v2  ;;  %v84_v3 = vpop.xlane.xlu0 %83  ;;  %v87_v4 = vpop.xlane.xlu1 %86 }
  0xa1   :  { %v115_v6 = vmul.f32 0.03125, %v84_v3  ;;  %v116_v7 = vmul.f32 0.03125, %v87_v4  ;;  %v145_v8 = vmul.f32 %v3479_v0, %v3479_v0  ;;  %v146_v9 = vmul.f32 %v3482_v1, %v3482_v1 }
  0xa3   :  { %v3491_v10 = vsub.f32 %v3397_v16, %v115_v6  ;;  %v3494_v11 = vsub.f32 %v3402_v17, %v116_v7  ;;  %v173_v12 = vsel %vm57_vm0, %v145_v8, 0.0  ;;  %v176_v15 = vsel %vm57_vm0, %v146_v9, 0.0 }
  0xa4   :  { %171 = vadd.xlane.f32.xlu1 %v170_v5  ;;  %174 = vadd.xlane.f32.xlu0 %v173_v12  ;;  %v90_v13 = vpop.xlane.xlu0 %89  ;;  %v93_v14 = vpop.xlane.xlu1 %92 }
  0xa5   :  { %v117_v18 = vmul.f32 0.03125, %v90_v13  ;;  %v118_v19 = vmul.f32 0.03125, %v93_v14  ;;  %v147_v22 = vmul.f32 %v3491_v10, %v3491_v10  ;;  %v148_v16 = vmul.f32 %v3494_v11, %v3494_v11 }
  0xa7   :  { %v3503_v23 = vsub.f32 %v3411_v20, %v117_v18  ;;  %v3506_v17 = vsub.f32 %v3416_v21, %v118_v19  ;;  %v179_v26 = vsel %vm57_vm0, %v147_v22, 0.0  ;;  %v182_v31 = vsel %vm57_vm0, %v148_v16, 0.0 }
  0xa8   :  { %177 = vadd.xlane.f32.xlu1 %v176_v15  ;;  %180 = vadd.xlane.f32.xlu0 %v179_v26  ;;  %v96_v27 = vpop.xlane.xlu0 %95  ;;  %v99_v30 = vpop.xlane.xlu1 %98 }
  0xa9   :  { %v119_v32 = vmul.f32 0.03125, %v96_v27  ;;  %v120_v33 = vmul.f32 0.03125, %v99_v30  ;;  %v149_v34 = vmul.f32 %v3503_v23, %v3503_v23  ;;  %v150_v20 = vmul.f32 %v3506_v17, %v3506_v17 }
  0xab   :  { %v3515_v35 = vsub.f32 %v3425_v24, %v119_v32  ;;  %v3518_v21 = vsub.f32 %v3430_v25, %v120_v33  ;;  %v185_v38 = vsel %vm57_vm0, %v149_v34, 0.0  ;;  %v188_v41 = vsel %vm57_vm0, %v150_v20, 0.0 }
  0xac   :  { %183 = vadd.xlane.f32.xlu1 %v182_v31  ;;  %186 = vadd.xlane.f32.xlu0 %v185_v38  ;;  %v102_v39 = vpop.xlane.xlu0 %101  ;;  %v105_v40 = vpop.xlane.xlu1 %104 }
  0xad   :  { %v121_v42 = vmul.f32 0.03125, %v102_v39  ;;  %v122_v43 = vmul.f32 0.03125, %v105_v40  ;;  %v151_v46 = vmul.f32 %v3515_v35, %v3515_v35  ;;  %v152_v24 = vmul.f32 %v3518_v21, %v3518_v21 }
  0xaf   :  { %v3527_v47 = vsub.f32 %v3439_v28, %v121_v42  ;;  %v3530_v25 = vsub.f32 %v3444_v29, %v122_v43  ;;  %v191_v48 = vsel %vm57_vm0, %v151_v46, 0.0  ;;  %v194_v49 = vsel %vm57_vm0, %v152_v24, 0.0 }
  0xb0   :  { %189 = vadd.xlane.f32.xlu1 %v188_v41  ;;  %192 = vadd.xlane.f32.xlu0 %v191_v48 }
  0xb1   :  { %v153_v50 = vmul.f32 %v3527_v47, %v3527_v47  ;;  %v154_v51 = vmul.f32 %v3530_v25, %v3530_v25 }
  0xb3   :  { %v197_v52 = vsel %vm57_vm0, %v153_v50, 0.0  ;;  %v200_v28 = vsel %vm57_vm0, %v154_v51, 0.0 }
  0xb4   :  { %195 = vadd.xlane.f32.xlu1 %v194_v49  ;;  %198 = vadd.xlane.f32.xlu0 %v197_v52 }
  0xb8   :  { %201 = vadd.xlane.f32.xlu1 %v200_v28 }
 0x125   :  { %v157_v29 = vpop.xlane.xlu0 %156 }
 0x126   :  { %v203_v57 = vmul.f32 0.03125, %v157_v29 }
 0x128   :  { %v219_v63 = vadd.f32 1e-05, %v203_v57 }
 0x129   :  { %v163_v53 = vpop.xlane.xlu1 %162  ;;  %v160_v56 = vpop.xlane.xlu0 %159 }
 0x12a   :  { %v205_v58 = vmul.f32 0.03125, %v163_v53  ;;  %v204_v61 = vmul.f32 0.03125, %v160_v56  ;;  %3101 = vrsqrt.f32 %v219_v63  ;;  %v2483_v53 = vld [vmem:[%s4257_s2 + $0x1] ss:$0 sm:$0xff]  ;;  %v2485_v63 = vld [vmem:[%s4257_s2 + $0x2] ss:$0 sm:$0xff] }
 0x12c   :  { %v221_v3 = vadd.f32 1e-05, %v205_v58  ;;  %v220_v6 = vadd.f32 1e-05, %v204_v61 }
 0x12d   :  { %v166_v59 = vpop.xlane.xlu1 %165  ;;  %v169_v60 = vpop.xlane.xlu0 %168 }
 0x12e   :  { %v207_v62 = vmul.f32 0.03125, %v169_v60  ;;  %v206_v2 = vmul.f32 0.03125, %v166_v59  ;;  %3103 = vrsqrt.f32 %v221_v3 }
 0x12f   :  { %3105 = vrsqrt.f32 %v220_v6 }
 0x130   :  { %v223_v9 = vadd.f32 1e-05, %v207_v62  ;;  %v222_v12 = vadd.f32 1e-05, %v206_v2 }
 0x131   :  { %v172_v4 = vpop.xlane.xlu1 %171  ;;  %v175_v5 = vpop.xlane.xlu0 %174 }
 0x132   :  { %v208_v7 = vmul.f32 0.03125, %v172_v4  ;;  %v209_v8 = vmul.f32 0.03125, %v175_v5  ;;  %3107 = vrsqrt.f32 %v223_v9 }
 0x133   :  { %3109 = vrsqrt.f32 %v222_v12 }
 0x134   :  { %v225_v13 = vadd.f32 1e-05, %v209_v8  ;;  %v224_v18 = vadd.f32 1e-05, %v208_v7  ;;  %v3102_v39 = vpop.eup %3101 }
 0x135   :  { %v178_v14 = vpop.xlane.xlu1 %177  ;;  %v181_v15 = vpop.xlane.xlu0 %180  ;;  %v251_v58 = vmul.f32 %v3102_v39, %v3450_v36 }
 0x136   :  { %v210_v19 = vmul.f32 0.03125, %v178_v14  ;;  %v211_v22 = vmul.f32 0.03125, %v181_v15  ;;  %3111 = vrsqrt.f32 %v225_v13 }
 0x137   :  { %3113 = vrsqrt.f32 %v224_v18 }
 0x138   :  { %v226_v16 = vadd.f32 1e-05, %v210_v19  ;;  %v227_v26 = vadd.f32 1e-05, %v211_v22  ;;  %v3104_v42 = vpop.eup %3103 }
 0x139   :  { %v184_v27 = vpop.xlane.xlu1 %183  ;;  %v187_v30 = vpop.xlane.xlu0 %186  ;;  %v253_v52 = vmul.f32 %v3104_v42, %v3458_v44  ;;  %v2481_v44 = vld [vmem:[%s4257_s2] ss:$0 sm:$0xff] }
 0x13a   :  { %v212_v31 = vmul.f32 0.03125, %v184_v27  ;;  %v213_v32 = vmul.f32 0.03125, %v187_v30  ;;  %3115 = vrsqrt.f32 %v227_v26  ;;  %v3106_v43 = vpop.eup %3105  ;;  %v274_v9 = vmul.f32 %v2481_v44, %v251_v58 }
 0x13b   :  { %3117 = vrsqrt.f32 %v226_v16  ;;  %v284_v5 = vmul.f32 %v2483_v53, %v253_v52  ;;  %v252_v6 = vmul.f32 %v3106_v43, %v3452_v37  ;;  %v2489_v37 = vld [vmem:[%s4257_s2 + $0x4] ss:$0 sm:$0xff] }
 0x13c   :  { %v228_v33 = vadd.f32 1e-05, %v212_v31  ;;  %v229_v34 = vadd.f32 1e-05, %v213_v32  ;;  %v3108_v48 = vpop.eup %3107 }
 0x13d   :  { %v190_v20 = vpop.xlane.xlu1 %189  ;;  %v193_v38 = vpop.xlane.xlu0 %192  ;;  %v255_v59 = vmul.f32 %v3108_v48, %v3468_v54  ;;  %v275_v16 = vmul.f32 %v2481_v44, %v252_v6 }
 0x13e   :  { %3119 = vrsqrt.f32 %v228_v33  ;;  %v214_v40 = vmul.f32 0.03125, %v190_v20  ;;  %v215_v41 = vmul.f32 0.03125, %v193_v38  ;;  %v3110_v51 = vpop.eup %3109 }
 0x13f   :  { %3121 = vrsqrt.f32 %v229_v34  ;;  %v254_v62 = vmul.f32 %v3110_v51, %v3460_v45  ;;  %v2487_v45 = vld [vmem:[%s4257_s2 + $0x3] ss:$0 sm:$0xff]  ;;  %v296_v12 = vmul.f32 %v2485_v63, %v255_v59 }
 0x140   :  { %v230_v46 = vadd.f32 1e-05, %v214_v40  ;;  %v231_v24 = vadd.f32 1e-05, %v215_v41  ;;  %v3112_v29 = vpop.eup %3111 }
 0x141   :  { %v196_v49 = vpop.xlane.xlu1 %195  ;;  %v199_v50 = vpop.xlane.xlu0 %198  ;;  %v257_v36 = vmul.f32 %v3112_v29, %v3479_v0  ;;  %v285_v18 = vmul.f32 %v2483_v53, %v254_v62 }
 0x142   :  { %3123 = vrsqrt.f32 %v230_v46  ;;  %v216_v28 = vmul.f32 0.03125, %v196_v49  ;;  %v217_v56 = vmul.f32 0.03125, %v199_v50  ;;  %v3114_v57 = vpop.eup %3113 }
 0x143   :  { %3125 = vrsqrt.f32 %v231_v24  ;;  %v256_v7 = vmul.f32 %v3114_v57, %v3470_v55  ;;  %v286_v55 = vadd.f32 %v284_v5, %v274_v9  ;;  %v308_v19 = vmul.f32 %v2487_v45, %v257_v36  ;;  %v2496_v57 = vld [vmem:[%s4258_s1] ss:$0 sm:$0xff] }
 0x144   :  { %v232_v60 = vadd.f32 1e-05, %v216_v28  ;;  %v3116_v61 = vpop.eup %3115  ;;  %v233_v2 = vadd.f32 1e-05, %v217_v56  ;;  %v287_v33 = vadd.f32 %v285_v18, %v275_v16  ;;  %v429_v18 = vld [vmem:[%s4259_s4 + $0x18] sm:$0xff] }
 0x145   :  { %v202_v3 = vpop.xlane.xlu1 %201  ;;  %v3118_v4 = vpop.eup %3117  ;;  %v259_v13 = vmul.f32 %v3116_v61, %v3491_v10  ;;  %v297_v26 = vmul.f32 %v2485_v63, %v256_v7  ;;  %v2491_v10 = vld [vmem:[%s4257_s2 + $0x5] ss:$0 sm:$0xff]  ;;  %v298_v31 = vadd.f32 %v296_v12, %v286_v55 }
 0x146   :  { %3127 = vrsqrt.f32 %v232_v60  ;;  %v218_v54 = vmul.f32 0.03125, %v202_v3  ;;  %v258_v0 = vmul.f32 %v3118_v4, %v3482_v1  ;;  %v426_v12 = vld [vmem:[%s4259_s4] sm:$0xff] }
 0x147   :  { %3129 = vrsqrt.f32 %v233_v2  ;;  %v320_v1 = vmul.f32 %v2489_v37, %v259_v13  ;;  %v310_v39 = vadd.f32 %v308_v19, %v298_v31  ;;  %v299_v40 = vadd.f32 %v297_v26, %v287_v33  ;;  %v427_v13 = vld [vmem:[%s4259_s4 + $0x8] sm:$0xff]  ;;  %v2501_v31 = vld [vmem:[%s4260_s3 + $0x1] ss:$0 sm:$0xff] }
 0x148   :  { %v3120_v8 = vpop.eup %3119  ;;  %v234_v14 = vadd.f32 1e-05, %v218_v54  ;;  %v309_v34 = vmul.f32 %v2487_v45, %v258_v0 }
 0x149   :  { %v3122_v15 = vpop.eup %3121  ;;  %v260_v27 = vmul.f32 %v3120_v8, %v3494_v11  ;;  %v322_v43 = vadd.f32 %v320_v1, %v310_v39  ;;  %v562_v39 = vld [vmem:[%s4261_s6 + $0x8] sm:$0xff] }
 0x14a   :  { %v261_v22 = vmul.f32 %v3122_v15, %v3503_v23  ;;  %3131 = vrsqrt.f32 %v234_v14  ;;  %v2493_v23 = vld [vmem:[%s4257_s2 + $0x6] ss:$0 sm:$0xff]  ;;  %v311_v49 = vadd.f32 %v309_v34, %v299_v40  ;;  %v428_v14 = vld [vmem:[%s4259_s4 + $0x10] sm:$0xff]  ;;  %v2899_v15 = vpack.c.bf16 %v427_v13, %v426_v12 }
 0x14b   :  { %v321_v41 = vmul.f32 %v2489_v37, %v260_v27  ;;  %v2903_v0 = vpack.c.bf16 %v429_v18, %v428_v14 }
 0x14c   :  { %v3124_v30 = vpop.eup %3123  ;;  %v332_v11 = vmul.f32 %v2491_v10, %v261_v22  ;;  %2900 = vmatprep.subr.bf16.mxu0 %v2899_v15 }
 0x14d   :  { %v3126_v32 = vpop.eup %3125  ;;  %v262_v20 = vmul.f32 %v3124_v30, %v3506_v17  ;;  %v2495_v17 = vld [vmem:[%s4257_s2 + $0x7] ss:$0 sm:$0xff]  ;;  %2902 = vmatpush3.bf16.msra.mxu0 %v2899_v15 }
 0x14e   :  { %v263_v38 = vmul.f32 %v3126_v32, %v3515_v35  ;;  %v334_v52 = vadd.f32 %v332_v11, %v322_v43  ;;  %v323_v35 = vadd.f32 %v321_v41, %v311_v49  ;;  %2904 = vmatprep.subr.bf16.mxu0 %v2903_v0  ;;  %v563_v11 = vld [vmem:[%s4261_s6 + $0x10] sm:$0xff]  ;;  %v564_v41 = vld [vmem:[%s4261_s6 + $0x18] sm:$0xff]  ;;  %v565_v43 = vld [vmem:[%s4261_s6 + $0x20] sm:$0xff] }
 0x14f   :  { %v333_v50 = vmul.f32 %v2491_v10, %v262_v20  ;;  %v2500_v10 = vld [vmem:[%s4260_s3] ss:$0 sm:$0xff] }
 0x150   :  { %v3128_v42 = vpop.eup %3127  ;;  %v344_v46 = vmul.f32 %v2493_v23, %v263_v38  ;;  %v561_v38 = vld [vmem:[%s4261_s6] sm:$0xff] }
 0x151   :  { %v3130_v24 = vpop.eup %3129  ;;  %v264_v48 = vmul.f32 %v3128_v42, %v3518_v21  ;;  %v335_v58 = vadd.f32 %v333_v50, %v323_v35  ;;  %2906 = vmatpush3.bf16.msra.mxu0 %v2903_v0  ;;  %v2907_v40 = vpack.c.bf16 %v562_v39, %v561_v38  ;;  %v2911_v42 = vpack.c.bf16 %v564_v41, %v563_v11  ;;  %v511_v35 = vld [vmem:[%s4262_s5] sm:$0x7]  ;;  %v706_v11 = vld [vmem:[%s4263_s7 + $0x8] sm:$0xff] }
 0x152   :  { %v265_v51 = vmul.f32 %v3130_v24, %v3527_v47  ;;  %v346_v53 = vadd.f32 %v344_v46, %v334_v52  ;;  %v2497_v47 = vld [vmem:[%s4258_s1 + $0x1] ss:$0 sm:$0xff]  ;;  %v566_v46 = vld [vmem:[%s4261_s6 + $0x28] sm:$0xff] }
 0x153   :  { %v345_v28 = vmul.f32 %v2493_v23, %v264_v48  ;;  %2908 = vmatprep.subr.bf16.mxu1 %v2907_v40  ;;  %v2915_v24 = vpack.c.bf16 %v566_v46, %v565_v43  ;;  %v376_v48 = vlaneseq  ;;  %v705_v39 = vld [vmem:[%s4263_s7] sm:$0xff] }
 0x154   :  { %v3132_v29 = vpop.eup %3131  ;;  %v356_v56 = vmul.f32 %v2495_v17, %v265_v51  ;;  %2910 = vmatpush3.bf16.msra.mxu1 %v2907_v40  ;;  %v707_v40 = vld [vmem:[%s4263_s7 + $0x10] sm:$0xff]  ;;  %v2919_v41 = vpack.c.bf16 %v706_v11, %v705_v39  ;;  %v709_v46 = vld [vmem:[%s4263_s7 + $0x20] sm:$0xff] }
 0x155   :  { %v266_v21 = vmul.f32 %v3132_v29, %v3530_v25  ;;  %v347_v60 = vadd.f32 %v345_v28, %v335_v58  ;;  %2912 = vmatprep.subr.bf16.mxu1 %v2911_v42 }
 0x156   :  { %v358_v59 = vadd.f32 %v356_v56, %v346_v53  ;;  %v3289_v56 = vmov 0.0   ;;  %2920 = vmatprep.subr.bf16.mxu0 %v2919_v41 }
 0x157   :  { %v357_v61 = vmul.f32 %v2495_v17, %v266_v21  ;;  %v3636_v17 = vshrl.u32 %v376_v48, 7 }
 0x158   :  { %v3583_v44 = vadd.f32 %v2496_v57, %v358_v59  ;;  %2914 = vmatpush3.bf16.msra.mxu1 %v2911_v42  ;;  %v708_v42 = vld [vmem:[%s4263_s7 + $0x18] sm:$0xff] }
 0x159   :  { %v359_v62 = vadd.f32 %v357_v61, %v347_v60  ;;  %2916 = vmatprep.subr.bf16.mxu1 %v2915_v24  ;;  %vm378_vm1 = vcmp.gt.s32.totalorder %v3636_v17, 0  ;;  %v3640_v49 = vsub.s32 1, %v3636_v17  ;;  %vm381_vm2 = vcmp.lt.s32.totalorder %v3636_v17, 7 }
 0x15a   :  { %v388_v63 = vsel %vm57_vm0, %v3583_v44, 0.0  ;;  %v3644_v50 = vsub.s32 0, %v3636_v17  ;;  %v3647_v51 = vsub.s32 2, %v3636_v17  ;;  %vm514_vm3 = vcmp.lt.s32.totalorder %v3636_v17, 1 }
 0x15b   :  { %389 = vadd.xlane.f32.xlu0 %v388_v63  ;;  %v3590_v2 = vadd.f32 %v2497_v47, %v359_v62  ;;  %v3654_v57 = vsel %vm378_vm1, 1.0, %v3289_v56  ;;  %v3659_v58 = vsel %vm381_vm2, 1.0, %v3289_v56  ;;  %v534_v47 = vrot.slane %v511_v35, %v3640_v49 }
 0x15c   :  { %2918 = vmatpush3.bf16.msra.mxu1 %v2915_v24  ;;  %v528_v62 = vrot.slane %v511_v35, %v3644_v50  ;;  %v542_v63 = vrot.slane %v511_v35, %v3647_v51  ;;  %v2923_v43 = vpack.c.bf16 %v708_v42, %v707_v40  ;;  %v710_v24 = vld [vmem:[%s4263_s7 + $0x28] sm:$0xff]  ;;  %v2522_v42 = vld [vmem:[%s4259_s4 + $0x20] sm:$0xff] }
 0x15d   :  { %v391_v25 = vsel %vm57_vm0, %v3590_v2, 0.0  ;;  %v2927_v48 = vpack.c.bf16 %v710_v24, %v709_v46  ;;  %v2524_v24 = vld [vmem:[%s4259_s4 + $0x30] sm:$0xff] }
 0x15e   :  { %392 = vadd.xlane.f32.xlu1 %v391_v25 }
 0x1e8   :  { %v390_v3 = vpop.xlane.xlu0 %389 }
 0x1e9   :  { %v394_v4 = vmul.f32 0.03125, %v390_v3 }
 0x1eb   :  { %v396_v5 = vsub.f32 %v3583_v44, %v394_v4  ;;  %v393_v36 = vpop.xlane.xlu1 %392 }
 0x1ec   :  { %v395_v54 = vmul.f32 0.03125, %v393_v36 }
 0x1ed   :  { %v398_v6 = vmul.f32 %v396_v5, %v396_v5 }
 0x1ee   :  { %v397_v7 = vsub.f32 %v3590_v2, %v395_v54 }
 0x1ef   :  { %v400_v45 = vsel %vm57_vm0, %v398_v6, 0.0 }
 0x1f0   :  { %401 = vadd.xlane.f32.xlu0 %v400_v45  ;;  %v399_v8 = vmul.f32 %v397_v7, %v397_v7 }
 0x1f2   :  { %v403_v9 = vsel %vm57_vm0, %v399_v8, 0.0 }
 0x1f3   :  { %404 = vadd.xlane.f32.xlu1 %v403_v9 }
 0x27d   :  { %v402_v37 = vpop.xlane.xlu0 %401 }
 0x27e   :  { %v406_v55 = vmul.f32 0.03125, %v402_v37 }
 0x280   :  { %v408_v19 = vadd.f32 1e-05, %v406_v55  ;;  %v405_v22 = vpop.xlane.xlu1 %404 }
 0x281   :  { %v407_v16 = vmul.f32 0.03125, %v405_v22 }
 0x282   :  { %3133 = vrsqrt.f32 %v408_v19 }
 0x283   :  { %v409_v26 = vadd.f32 1e-05, %v407_v16 }
 0x285   :  { %3135 = vrsqrt.f32 %v409_v26 }
 0x28c   :  { %v3134_v27 = vpop.eup %3133 }
 0x28d   :  { %v412_v30 = vmul.f32 %v3134_v27, %v396_v5 }
 0x28f   :  { %v3136_v1 = vpop.eup %3135  ;;  %v418_v32 = vmul.f32 %v2500_v10, %v412_v30 }
 0x290   :  { %v413_v33 = vmul.f32 %v3136_v1, %v397_v7 }
 0x291   :  { %v424_v34 = vadd.f32 %v2501_v31, %v418_v32 }
 0x292   :  { %v419_v20 = vmul.f32 %v2500_v10, %v413_v33 }
 0x293   :  { %2732 = vmatprep.mubr.msk.f32.mxu0 %vm57_vm0, %v424_v34 }
 0x294   :  { %v425_v23 = vadd.f32 %v2501_v31, %v419_v20 }
 0x296   :  { %2733 = vmatmul.mubr.msk.f32.vlgmr.msra.gmra.mrb[0].mxu0 %vm57_vm0, %v425_v23 }
 0x297   :  { %2922 = vmatpush3.bf16.msra.mxu0 %v2919_v41 }
 0x298   :  { %2924 = vmatprep.subr.bf16.mxu0 %v2923_v43 }
 0x29b   :  { %2926 = vmatpush3.bf16.msra.mxu0 %v2923_v43  ;;  %v2523_v43 = vld [vmem:[%s4259_s4 + $0x28] sm:$0xff] }
 0x29c   :  { %2928 = vmatprep.subr.bf16.mxu0 %v2927_v48  ;;  %v2931_v46 = vpack.c.bf16 %v2523_v43, %v2522_v42 }
 0x29e   :  { %2932 = vmatprep.subr.bf16.mxu1 %v2931_v46 }
 0x29f   :  { %2930 = vmatpush3.bf16.msra.mxu0 %v2927_v48  ;;  %v2525_v48 = vld [vmem:[%s4259_s4 + $0x38] sm:$0xff] }
 0x369   :  { %v2734_v52 = vpop.f32.mrb[0].mxu0 }
 0x36a   :  { %v513_v28 = vrot.slane %v2734_v52, 7  ;;  %v520_v29 = vrot.slane %v2734_v52, 1  ;;  %v2512_v53 = vmul.f32 -1.442695, %v2734_v52  ;;  %v502_v21 = vpop.f32.mrb[1].mxu0  ;;  %v536_v45 = vmul.f32 %v2734_v52, %v534_v47 }
 0x36b   :  { %v512_v59 = vrot.slane %v502_v21, 7  ;;  %v519_v60 = vrot.slane %v502_v21, 1  ;;  %v2511_v61 = vmul.f32 -1.442695, %v502_v21  ;;  %v535_v8 = vmul.f32 %v534_v47, %v502_v21  ;;  %v2506_v52 = vld [vmem:[%s4260_s3 + $0x3] ss:$0 sm:$0xff] }
 0x36c   :  { %3137 = vpow2.f32 %v2512_v53 }
 0x36d   :  { %v515_v25 = vsel %vm514_vm3, %v512_v59, %v513_v28  ;;  %v516_v3 = vsel %vm514_vm3, %v513_v28, %v512_v59  ;;  %v522_v4 = vsel %vm381_vm2, %v520_v29, %v519_v60  ;;  %3139 = vpow2.f32 %v2511_v61 }
 0x36e   :  { %v518_v5 = vmul.f32 %v3654_v57, %v515_v25  ;;  %v524_v36 = vmul.f32 %v3659_v58, %v522_v4  ;;  %v517_v54 = vmul.f32 %v3654_v57, %v516_v3  ;;  %v521_v6 = vsel %vm381_vm2, %v519_v60, %v520_v29 }
 0x36f   :  { %v523_v7 = vmul.f32 %v3659_v58, %v521_v6 }
 0x370   :  { %v529_v9 = vmul.f32 %v528_v62, %v517_v54  ;;  %v530_v12 = vmul.f32 %v528_v62, %v518_v5  ;;  %v544_v15 = vmul.f32 %v542_v63, %v524_v36 }
 0x371   :  { %v543_v14 = vmul.f32 %v542_v63, %v523_v7 }
 0x372   :  { %v537_v13 = vadd.f32 %v535_v8, %v529_v9  ;;  %v538_v18 = vadd.f32 %v536_v45, %v530_v12 }
 0x374   :  { %v545_v0 = vadd.f32 %v543_v14, %v537_v13  ;;  %v546_v37 = vadd.f32 %v544_v15, %v538_v18 }
 0x376   :  { %v3138_v55 = vpop.eup %3137  ;;  %v2504_v19 = vmul.f32 -1.442695, %v545_v0  ;;  %v2505_v26 = vmul.f32 -1.442695, %v546_v37 }
 0x377   :  { %v3140_v22 = vpop.eup %3139  ;;  %v690_v16 = vadd.f32 1.0, %v3138_v55 }
 0x378   :  { %v689_v27 = vadd.f32 1.0, %v3140_v22  ;;  %3141 = vpow2.f32 %v2504_v19 }
 0x379   :  { %3143 = vrcp.f32 %v690_v16  ;;  %v2515_v16 = vld [vmem:[%s4260_s3 + $0x2] ss:$0 sm:$0xff] }
 0x37a   :  { %3145 = vrcp.f32 %v689_v27 }
 0x37b   :  { %3147 = vpow2.f32 %v2505_v26 }
 0x382   :  { %v3142_v10 = vpop.eup %3141 }
 0x383   :  { %v3144_v30 = vpop.eup %3143  ;;  %v553_v31 = vadd.f32 1.0, %v3142_v10 }
 0x384   :  { %v3146_v1 = vpop.eup %3145  ;;  %699 = vrot.lane.b32.xlu1 %v3144_v30, %s3290_s20 }
 0x385   :  { %v3148_v32 = vpop.eup %3147  ;;  %697 = vrot.lane.b32.xlu0 %v3146_v1, %s3290_s20  ;;  %3149 = vrcp.f32 %v553_v31 }
 0x386   :  { %v554_v33 = vadd.f32 1.0, %v3148_v32 }
 0x388   :  { %3151 = vrcp.f32 %v554_v33 }
 0x38f   :  { %v3150_v34 = vpop.eup %3149 }
 0x390   :  { %v559_v20 = vmul.f32 %v3150_v34, %v545_v0 }
 0x392   :  { %v3152_v23 = vpop.eup %3151  ;;  %2747 = vmatprep.mubr.msk.f32.mxu1 %vm571_vm4, %v559_v20 }
 0x393   :  { %v560_v38 = vmul.f32 %v3152_v23, %v546_v37 }
 0x395   :  { %2748 = vmatmul.mubr.msk.f32.vlgmr.msra.gmra.mrb[0].mxu1 %vm571_vm4, %v560_v38 }
 0x396   :  { %2934 = vmatpush3.bf16.msra.mxu1 %v2931_v46 }
 0x3f6   :  { %v700_v55 = vpop.permute.xlu1 %699 }
 0x3f7   :  { %v698_v37 = vpop.permute.xlu0 %697 }
 0x468   :  { %v2749_v35 = vpop.f32.mrb[0].mxu1 }
 0x469   :  { %v650_v28 = vadd.f32 %v2749_v35, %v2506_v52  ;;  %v644_v29 = vpop.f32.mrb[1].mxu1 }
 0x46a   :  { %v645_v53 = vadd.f32 %v2506_v52, %v644_v29  ;;  %v2935_v52 = vpack.c.bf16 %v2525_v48, %v2524_v24 }
 0x46b   :  { %v656_v21 = vmin.f32 %v650_v28, 20.0  ;;  %vm654_vm5 = vcmp.gt.f32.partialorder %v650_v28, 20.0 }
 0x46c   :  { %v655_v59 = vmin.f32 %v645_v53, 20.0  ;;  %vm653_vm6 = vcmp.gt.f32.partialorder %v645_v53, 20.0  ;;  %2936 = vmatprep.subr.bf16.mxu1 %v2935_v52 }
 0x46d   :  { %v659_v60 = vmul.f32 1.442695, %v656_v21  ;;  %2938 = vmatpush3.bf16.msra.mxu1 %v2935_v52 }
 0x46e   :  { %v657_v61 = vmul.f32 1.442695, %v655_v59 }
 0x46f   :  { %3153 = vpow2.f32 %v659_v60 }
 0x470   :  { %3155 = vpow2.f32 %v657_v61  ;;  %v2520_v61 = vld [vmem:[%s4260_s3 + $0x4] ss:$0 sm:$0xff] }
 0x479   :  { %v3154_v47 = vpop.eup %3153 }
 0x47a   :  { %v3156_v62 = vpop.eup %3155  ;;  %v662_v63 = vadd.f32 1.0, %v3154_v47 }
 0x47b   :  { %v661_v25 = vadd.f32 1.0, %v3156_v62 }
 0x47c   :  { %3157 = vlog2.f32 %v662_v63 }
 0x47d   :  { %3159 = vlog2.f32 %v661_v25  ;;  %v2521_v25 = vld [vmem:[%s4260_s3 + $0x5] ss:$0 sm:$0xff] }
 0x486   :  { %v3158_v3 = vpop.eup %3157 }
 0x487   :  { %v3160_v4 = vpop.eup %3159  ;;  %v666_v5 = vmul.f32 0.6931472, %v3158_v3 }
 0x488   :  { %v664_v36 = vmul.f32 0.6931472, %v3160_v4 }
 0x489   :  { %v668_v54 = vsel %vm654_vm5, %v650_v28, %v666_v5 }
 0x48a   :  { %v2510_v6 = vmul.f32 -1.442695, %v668_v54  ;;  %v667_v7 = vsel %vm653_vm6, %v645_v53, %v664_v36  ;;  %v2531_v54 = vld [vmem:[%s4261_s6 + $0x30] sm:$0xff] }
 0x48b   :  { %v2509_v45 = vmul.f32 -1.442695, %v667_v7 }
 0x48c   :  { %3161 = vpow2.f32 %v2510_v6  ;;  %v2532_v6 = vld [vmem:[%s4261_s6 + $0x38] sm:$0xff] }
 0x48d   :  { %3163 = vpow2.f32 %v2509_v45  ;;  %v2939_v7 = vpack.c.bf16 %v2532_v6, %v2531_v54  ;;  %v2533_v45 = vld [vmem:[%s4261_s6 + $0x40] sm:$0xff]  ;;  %v2544_v54 = vld [vmem:[%s4263_s7 + $0x30] sm:$0xff]  ;;  %v2545_v6 = vld [vmem:[%s4263_s7 + $0x38] sm:$0xff] }
 0x48f   :  { %2940 = vmatprep.subr.bf16.mxu0 %v2939_v7 }
 0x496   :  { %v3162_v8 = vpop.eup %3161 }
 0x497   :  { %v3164_v9 = vpop.eup %3163  ;;  %v676_v12 = vadd.f32 1.0, %v3162_v8  ;;  %v2534_v8 = vld [vmem:[%s4261_s6 + $0x48] sm:$0xff] }
 0x498   :  { %v675_v13 = vadd.f32 1.0, %v3164_v9  ;;  %v2943_v9 = vpack.c.bf16 %v2534_v8, %v2533_v45  ;;  %v2951_v45 = vpack.c.bf16 %v2545_v6, %v2544_v54  ;;  %v2547_v8 = vld [vmem:[%s4263_s7 + $0x48] sm:$0xff] }
 0x499   :  { %3165 = vrcp.f32 %v676_v12  ;;  %v2535_v12 = vld [vmem:[%s4261_s6 + $0x50] sm:$0xff] }
 0x49a   :  { %3167 = vrcp.f32 %v675_v13  ;;  %v2536_v13 = vld [vmem:[%s4261_s6 + $0x58] sm:$0xff]  ;;  %2952 = vmatprep.subr.bf16.mxu1 %v2951_v45 }
 0x4a3   :  { %v3166_v14 = vpop.eup %3165 }
 0x4a4   :  { %v3168_v15 = vpop.eup %3167  ;;  %v682_v18 = vmul.f32 %v3166_v14, %v560_v38  ;;  %v2947_v14 = vpack.c.bf16 %v2536_v13, %v2535_v12  ;;  %v2548_v12 = vld [vmem:[%s4263_s7 + $0x50] sm:$0xff]  ;;  %v2549_v13 = vld [vmem:[%s4263_s7 + $0x58] sm:$0xff] }
 0x4a5   :  { %v681_v0 = vmul.f32 %v3168_v15, %v559_v20 }
 0x4a6   :  { %v704_v22 = vmul.f32 %v700_v55, %v682_v18  ;;  %v2528_v18 = vld [vmem:[%s4262_s5 + $0x4] sm:$0x7] }
 0x4a7   :  { %v703_v19 = vmul.f32 %v698_v37, %v681_v0 }
 0x4a9   :  { %2762 = vmatprep.mubr.msk.f32.mxu0 %vm571_vm4, %v703_v19 }
 0x4aa   :  { %2763 = vmatmul.mubr.msk.f32.vlgmr.msra.gmra.mrb[2].mxu0 %vm571_vm4, %v704_v22 }
 0x4ab   :  { %2942 = vmatpush3.bf16.msra.mxu0 %v2939_v7  ;;  %v2546_v7 = vld [vmem:[%s4263_s7 + $0x40] sm:$0xff] }
 0x4ac   :  { %2944 = vmatprep.subr.bf16.mxu0 %v2943_v9 }
 0x4af   :  { %2946 = vmatpush3.bf16.msra.mxu0 %v2943_v9  ;;  %v2955_v9 = vpack.c.bf16 %v2547_v8, %v2546_v7  ;;  %v2559_v8 = vld [vmem:[%s4259_s4 + $0x40] sm:$0xff] }
 0x4b0   :  { %2948 = vmatprep.subr.bf16.mxu0 %v2947_v14 }
 0x4b3   :  { %2950 = vmatpush3.bf16.msra.mxu0 %v2947_v14  ;;  %v2959_v14 = vpack.c.bf16 %v2549_v13, %v2548_v12  ;;  %v2561_v13 = vld [vmem:[%s4259_s4 + $0x50] sm:$0xff] }
 0x57d   :  { %v2764_v26 = vpop.f32.mrb[2].mxu0 }
 0x57e   :  { %v797_v27 = vmul.f32 %v2764_v26, %v2515_v16  ;;  %v783_v10 = vpop.f32.mrb[3].mxu0 }
 0x57f   :  { %v796_v30 = vmul.f32 %v2515_v16, %v783_v10  ;;  %v960_v10 = vrot.slane %v2528_v18, %v3647_v51 }
 0x580   :  { %v3707_v31 = vadd.f32 %v797_v27, %v3590_v2  ;;  %v952_v27 = vrot.slane %v2528_v18, %v3640_v49 }
 0x581   :  { %v3710_v1 = vadd.f32 %v796_v30, %v3583_v44  ;;  %v946_v30 = vrot.slane %v2528_v18, %v3644_v50 }
 0x582   :  { %v808_v32 = vsel %vm57_vm0, %v3707_v31, 0.0 }
 0x583   :  { %809 = vadd.xlane.f32.xlu0 %v808_v32  ;;  %v805_v33 = vsel %vm57_vm0, %v3710_v1, 0.0 }
 0x584   :  { %806 = vadd.xlane.f32.xlu1 %v805_v33 }
 0x610   :  { %v810_v34 = vpop.xlane.xlu0 %809 }
 0x611   :  { %v812_v20 = vmul.f32 0.03125, %v810_v34  ;;  %v807_v23 = vpop.xlane.xlu1 %806 }
 0x612   :  { %v811_v38 = vmul.f32 0.03125, %v807_v23 }
 0x613   :  { %v814_v39 = vsub.f32 %v3707_v31, %v812_v20 }
 0x614   :  { %v813_v2 = vsub.f32 %v3710_v1, %v811_v38 }
 0x615   :  { %v816_v11 = vmul.f32 %v814_v39, %v814_v39 }
 0x616   :  { %v815_v40 = vmul.f32 %v813_v2, %v813_v2 }
 0x617   :  { %v820_v44 = vsel %vm57_vm0, %v816_v11, 0.0 }
 0x618   :  { %821 = vadd.xlane.f32.xlu1 %v820_v44  ;;  %v817_v41 = vsel %vm57_vm0, %v815_v40, 0.0 }
 0x619   :  { %818 = vadd.xlane.f32.xlu0 %v817_v41 }
 0x6a5   :  { %v822_v35 = vpop.xlane.xlu1 %821 }
 0x6a6   :  { %v824_v28 = vmul.f32 0.03125, %v822_v35  ;;  %v819_v29 = vpop.xlane.xlu0 %818 }
 0x6a7   :  { %v823_v53 = vmul.f32 0.03125, %v819_v29 }
 0x6a8   :  { %v826_v21 = vadd.f32 1e-05, %v824_v28 }
 0x6a9   :  { %v825_v59 = vadd.f32 1e-05, %v823_v53 }
 0x6aa   :  { %3169 = vrsqrt.f32 %v826_v21 }
 0x6ab   :  { %3171 = vrsqrt.f32 %v825_v59 }
 0x6b4   :  { %v3170_v60 = vpop.eup %3169 }
 0x6b5   :  { %v3172_v47 = vpop.eup %3171  ;;  %v830_v62 = vmul.f32 %v3170_v60, %v814_v39 }
 0x6b6   :  { %v829_v63 = vmul.f32 %v3172_v47, %v813_v2 }
 0x6b7   :  { %v836_v3 = vmul.f32 %v2520_v61, %v830_v62 }
 0x6b8   :  { %v835_v4 = vmul.f32 %v2520_v61, %v829_v63 }
 0x6b9   :  { %v842_v36 = vadd.f32 %v2521_v25, %v836_v3 }
 0x6ba   :  { %v841_v5 = vadd.f32 %v2521_v25, %v835_v4 }
 0x6bc   :  { %2773 = vmatprep.mubr.msk.f32.mxu1 %vm57_vm0, %v841_v5 }
 0x6bd   :  { %2774 = vmatmul.mubr.msk.f32.vlgmr.msra.gmra.mrb[2].mxu1 %vm57_vm0, %v842_v36 }
 0x6be   :  { %2954 = vmatpush3.bf16.msra.mxu1 %v2951_v45 }
 0x6bf   :  { %2956 = vmatprep.subr.bf16.mxu1 %v2955_v9 }
 0x6c2   :  { %2958 = vmatpush3.bf16.msra.mxu1 %v2955_v9  ;;  %v2560_v9 = vld [vmem:[%s4259_s4 + $0x48] sm:$0xff] }
 0x6c3   :  { %2960 = vmatprep.subr.bf16.mxu1 %v2959_v14  ;;  %v2963_v12 = vpack.c.bf16 %v2560_v9, %v2559_v8 }
 0x6c5   :  { %2964 = vmatprep.subr.bf16.mxu0 %v2963_v12 }
 0x6c6   :  { %2962 = vmatpush3.bf16.msra.mxu1 %v2959_v14  ;;  %v2562_v14 = vld [vmem:[%s4259_s4 + $0x58] sm:$0xff] }
 0x790   :  { %v2775_v15 = vpop.f32.mrb[2].mxu1 }
 0x791   :  { %v932_v0 = vrot.slane %v2775_v15, 7  ;;  %v938_v37 = vrot.slane %v2775_v15, 1  ;;  %v2543_v55 = vmul.f32 -1.442695, %v2775_v15  ;;  %v920_v19 = vpop.f32.mrb[3].mxu1  ;;  %v954_v11 = vmul.f32 %v2775_v15, %v952_v27 }
 0x792   :  { %v931_v22 = vrot.slane %v920_v19, 7  ;;  %v937_v16 = vrot.slane %v920_v19, 1  ;;  %v2542_v26 = vmul.f32 -1.442695, %v920_v19  ;;  %v953_v41 = vmul.f32 %v952_v27, %v920_v19  ;;  %v2537_v15 = vld [vmem:[%s4260_s3 + $0x7] ss:$0 sm:$0xff] }
 0x793   :  { %3173 = vpow2.f32 %v2543_v55 }
 0x794   :  { %v933_v32 = vsel %vm514_vm3, %v931_v22, %v932_v0  ;;  %v934_v33 = vsel %vm514_vm3, %v932_v0, %v931_v22  ;;  %v939_v34 = vsel %vm381_vm2, %v937_v16, %v938_v37  ;;  %v940_v20 = vsel %vm381_vm2, %v938_v37, %v937_v16 }
 0x795   :  { %v935_v23 = vmul.f32 %v3654_v57, %v934_v33  ;;  %v936_v38 = vmul.f32 %v3654_v57, %v933_v32  ;;  %v941_v39 = vmul.f32 %v3659_v58, %v939_v34  ;;  %v942_v2 = vmul.f32 %v3659_v58, %v940_v20 }
 0x796   :  { %3175 = vpow2.f32 %v2542_v26 }
 0x797   :  { %v947_v40 = vmul.f32 %v946_v30, %v935_v23  ;;  %v948_v44 = vmul.f32 %v946_v30, %v936_v38  ;;  %v962_v46 = vmul.f32 %v960_v10, %v942_v2  ;;  %v961_v24 = vmul.f32 %v960_v10, %v941_v39 }
 0x799   :  { %v955_v42 = vadd.f32 %v953_v41, %v947_v40  ;;  %v956_v43 = vadd.f32 %v954_v11, %v948_v44 }
 0x79b   :  { %v963_v48 = vadd.f32 %v961_v24, %v955_v42  ;;  %v964_v52 = vadd.f32 %v962_v46, %v956_v43 }
 0x79d   :  { %v3174_v35 = vpop.eup %3173  ;;  %v2529_v28 = vmul.f32 -1.442695, %v963_v48  ;;  %v2530_v29 = vmul.f32 -1.442695, %v964_v52 }
 0x79e   :  { %v1108_v53 = vadd.f32 1.0, %v3174_v35 }
 0x79f   :  { %3177 = vpow2.f32 %v2529_v28 }
 0x7a0   :  { %v3176_v21 = vpop.eup %3175  ;;  %3179 = vrcp.f32 %v1108_v53  ;;  %v2552_v53 = vld [vmem:[%s4260_s3 + $0x6] ss:$0 sm:$0xff] }
 0x7a1   :  { %v1107_v59 = vadd.f32 1.0, %v3176_v21  ;;  %3181 = vpow2.f32 %v2530_v29 }
 0x7a3   :  { %3183 = vrcp.f32 %v1107_v59 }
 0x7a9   :  { %v3178_v60 = vpop.eup %3177 }
 0x7aa   :  { %v3180_v61 = vpop.eup %3179  ;;  %v971_v47 = vadd.f32 1.0, %v3178_v60 }
 0x7ab   :  { %v3182_v62 = vpop.eup %3181  ;;  %1117 = vrot.lane.b32.xlu1 %v3180_v61, %s3290_s20 }
 0x7ac   :  { %3185 = vrcp.f32 %v971_v47  ;;  %v972_v63 = vadd.f32 1.0, %v3182_v62 }
 0x7ad   :  { %v3184_v25 = vpop.eup %3183 }
 0x7ae   :  { %1115 = vrot.lane.b32.xlu0 %v3184_v25, %s3290_s20  ;;  %3187 = vrcp.f32 %v972_v63 }
 0x7b6   :  { %v3186_v3 = vpop.eup %3185 }
 0x7b7   :  { %v977_v4 = vmul.f32 %v3186_v3, %v963_v48 }
 0x7b8   :  { %v3188_v5 = vpop.eup %3187 }
 0x7b9   :  { %2788 = vmatprep.mubr.msk.f32.mxu0 %vm571_vm4, %v977_v4  ;;  %v978_v36 = vmul.f32 %v3188_v5, %v964_v52 }
 0x7bb   :  { %2789 = vmatmul.mubr.msk.f32.vlgmr.msra.gmra.mrb[4].mxu0 %vm571_vm4, %v978_v36 }
 0x7bc   :  { %2966 = vmatpush3.bf16.msra.mxu0 %v2963_v12 }
 0x81d   :  { %v1118_v35 = vpop.permute.xlu1 %1117 }
 0x820   :  { %v1116_v52 = vpop.permute.xlu0 %1115 }
 0x88e   :  { %v2790_v18 = vpop.f32.mrb[4].mxu0 }
 0x88f   :  { %v1068_v0 = vadd.f32 %v2790_v18, %v2537_v15  ;;  %v1062_v37 = vpop.f32.mrb[5].mxu0 }
 0x890   :  { %v1063_v55 = vadd.f32 %v2537_v15, %v1062_v37  ;;  %v2967_v15 = vpack.c.bf16 %v2562_v14, %v2561_v13 }
 0x891   :  { %v1074_v19 = vmin.f32 %v1068_v0, 20.0  ;;  %vm1072_vm7 = vcmp.gt.f32.partialorder %v1068_v0, 20.0 }
 0x892   :  { %v1073_v22 = vmin.f32 %v1063_v55, 20.0  ;;  %vm1071_vm8 = vcmp.gt.f32.partialorder %v1063_v55, 20.0  ;;  %2968 = vmatprep.subr.bf16.mxu0 %v2967_v15 }
 0x893   :  { %v1077_v16 = vmul.f32 1.442695, %v1074_v19  ;;  %2970 = vmatpush3.bf16.msra.mxu0 %v2967_v15 }
 0x894   :  { %v1075_v26 = vmul.f32 1.442695, %v1073_v22 }
 0x895   :  { %3189 = vpow2.f32 %v1077_v16 }
 0x896   :  { %3191 = vpow2.f32 %v1075_v26  ;;  %v2557_v26 = vld [vmem:[%s4260_s3 + $0x8] ss:$0 sm:$0xff] }
 0x89f   :  { %v3190_v27 = vpop.eup %3189 }
 0x8a0   :  { %v3192_v10 = vpop.eup %3191  ;;  %v1080_v30 = vadd.f32 1.0, %v3190_v27 }
 0x8a1   :  { %v1079_v32 = vadd.f32 1.0, %v3192_v10 }
 0x8a2   :  { %3193 = vlog2.f32 %v1080_v30 }
 0x8a3   :  { %3195 = vlog2.f32 %v1079_v32  ;;  %v2558_v32 = vld [vmem:[%s4260_s3 + $0x9] ss:$0 sm:$0xff] }
 0x8ac   :  { %v3194_v33 = vpop.eup %3193 }
 0x8ad   :  { %v3196_v34 = vpop.eup %3195  ;;  %v1084_v20 = vmul.f32 0.6931472, %v3194_v33 }
 0x8ae   :  { %v1082_v23 = vmul.f32 0.6931472, %v3196_v34 }
 0x8af   :  { %v1086_v38 = vsel %vm1072_vm7, %v1068_v0, %v1084_v20 }
 0x8b0   :  { %v2541_v39 = vmul.f32 -1.442695, %v1086_v38  ;;  %v1085_v2 = vsel %vm1071_vm8, %v1063_v55, %v1082_v23  ;;  %v2568_v38 = vld [vmem:[%s4261_s6 + $0x60] sm:$0xff] }
 0x8b1   :  { %v2540_v11 = vmul.f32 -1.442695, %v1085_v2 }
 0x8b2   :  { %3197 = vpow2.f32 %v2541_v39  ;;  %v2569_v39 = vld [vmem:[%s4261_s6 + $0x68] sm:$0xff] }
 0x8b3   :  { %3199 = vpow2.f32 %v2540_v11  ;;  %v2971_v2 = vpack.c.bf16 %v2569_v39, %v2568_v38  ;;  %v2570_v11 = vld [vmem:[%s4261_s6 + $0x70] sm:$0xff]  ;;  %v2581_v38 = vld [vmem:[%s4263_s7 + $0x60] sm:$0xff]  ;;  %v2582_v39 = vld [vmem:[%s4263_s7 + $0x68] sm:$0xff] }
 0x8b5   :  { %2972 = vmatprep.subr.bf16.mxu1 %v2971_v2 }
 0x8bc   :  { %v3198_v40 = vpop.eup %3197 }
 0x8bd   :  { %v3200_v44 = vpop.eup %3199  ;;  %v1094_v41 = vadd.f32 1.0, %v3198_v40  ;;  %v2571_v40 = vld [vmem:[%s4261_s6 + $0x78] sm:$0xff] }
 0x8be   :  { %v1093_v42 = vadd.f32 1.0, %v3200_v44  ;;  %v2975_v44 = vpack.c.bf16 %v2571_v40, %v2570_v11  ;;  %v2983_v11 = vpack.c.bf16 %v2582_v39, %v2581_v38  ;;  %v2584_v40 = vld [vmem:[%s4263_s7 + $0x78] sm:$0xff] }
 0x8bf   :  { %3201 = vrcp.f32 %v1094_v41  ;;  %v2572_v41 = vld [vmem:[%s4261_s6 + $0x80] sm:$0xff] }
 0x8c0   :  { %3203 = vrcp.f32 %v1093_v42  ;;  %v2573_v42 = vld [vmem:[%s4261_s6 + $0x88] sm:$0xff]  ;;  %2984 = vmatprep.subr.bf16.mxu0 %v2983_v11 }
 0x8c9   :  { %v3202_v43 = vpop.eup %3201 }
 0x8ca   :  { %v3204_v46 = vpop.eup %3203  ;;  %v1100_v24 = vmul.f32 %v3202_v43, %v978_v36  ;;  %v2979_v43 = vpack.c.bf16 %v2573_v42, %v2572_v41  ;;  %v2585_v41 = vld [vmem:[%s4263_s7 + $0x80] sm:$0xff]  ;;  %v2586_v42 = vld [vmem:[%s4263_s7 + $0x88] sm:$0xff] }
 0x8cb   :  { %v1099_v48 = vmul.f32 %v3204_v46, %v977_v4 }
 0x8cc   :  { %v1122_v29 = vmul.f32 %v1118_v35, %v1100_v24  ;;  %v2565_v24 = vld [vmem:[%s4262_s5 + $0x8] sm:$0x7] }
 0x8cd   :  { %v1121_v28 = vmul.f32 %v1116_v52, %v1099_v48 }
 0x8cf   :  { %2803 = vmatprep.mubr.msk.f32.mxu1 %vm571_vm4, %v1121_v28 }
 0x8d0   :  { %2804 = vmatmul.mubr.msk.f32.vlgmr.msra.gmra.mrb[4].mxu1 %vm571_vm4, %v1122_v29 }
 0x8d1   :  { %2974 = vmatpush3.bf16.msra.mxu1 %v2971_v2  ;;  %v2583_v2 = vld [vmem:[%s4263_s7 + $0x70] sm:$0xff] }
 0x8d2   :  { %2976 = vmatprep.subr.bf16.mxu1 %v2975_v44 }
 0x8d5   :  { %2978 = vmatpush3.bf16.msra.mxu1 %v2975_v44  ;;  %v2987_v44 = vpack.c.bf16 %v2584_v40, %v2583_v2  ;;  %v2596_v40 = vld [vmem:[%s4259_s4 + $0x60] sm:$0xff] }
 0x8d6   :  { %2980 = vmatprep.subr.bf16.mxu1 %v2979_v43 }
 0x8d9   :  { %2982 = vmatpush3.bf16.msra.mxu1 %v2979_v43  ;;  %v2991_v43 = vpack.c.bf16 %v2586_v42, %v2585_v41  ;;  %v2598_v42 = vld [vmem:[%s4259_s4 + $0x70] sm:$0xff] }
 0x9a3   :  { %v2805_v21 = vpop.f32.mrb[4].mxu1 }
 0x9a4   :  { %v1216_v59 = vmul.f32 %v2805_v21, %v2552_v53  ;;  %v1202_v60 = vpop.f32.mrb[5].mxu1 }
 0x9a5   :  { %v1215_v61 = vmul.f32 %v2552_v53, %v1202_v60  ;;  %v1379_v60 = vrot.slane %v2565_v24, %v3647_v51 }
 0x9a6   :  { %v3807_v47 = vadd.f32 %v1216_v59, %v3707_v31  ;;  %v1371_v59 = vrot.slane %v2565_v24, %v3640_v49 }
 0x9a7   :  { %v3810_v62 = vadd.f32 %v1215_v61, %v3710_v1  ;;  %v1365_v61 = vrot.slane %v2565_v24, %v3644_v50 }
 0x9a8   :  { %v1227_v63 = vsel %vm57_vm0, %v3807_v47, 0.0 }
 0x9a9   :  { %1228 = vadd.xlane.f32.xlu0 %v1227_v63  ;;  %v1224_v25 = vsel %vm57_vm0, %v3810_v62, 0.0 }
 0x9aa   :  { %1225 = vadd.xlane.f32.xlu1 %v1224_v25 }
 0xa36   :  { %v1229_v3 = vpop.xlane.xlu0 %1228 }
 0xa37   :  { %v1231_v4 = vmul.f32 0.03125, %v1229_v3  ;;  %v1226_v5 = vpop.xlane.xlu1 %1225 }
 0xa38   :  { %v1230_v36 = vmul.f32 0.03125, %v1226_v5 }
 0xa39   :  { %v1233_v54 = vsub.f32 %v3807_v47, %v1231_v4 }
 0xa3a   :  { %v1232_v31 = vsub.f32 %v3810_v62, %v1230_v36 }
 0xa3b   :  { %v1235_v6 = vmul.f32 %v1233_v54, %v1233_v54 }
 0xa3c   :  { %v1234_v7 = vmul.f32 %v1232_v31, %v1232_v31 }
 0xa3d   :  { %v1239_v1 = vsel %vm57_vm0, %v1235_v6, 0.0 }
 0xa3e   :  { %1240 = vadd.xlane.f32.xlu1 %v1239_v1  ;;  %v1236_v45 = vsel %vm57_vm0, %v1234_v7, 0.0 }
 0xa3f   :  { %1237 = vadd.xlane.f32.xlu0 %v1236_v45 }
 0xacb   :  { %v1241_v18 = vpop.xlane.xlu1 %1240 }
 0xacc   :  { %v1243_v0 = vmul.f32 0.03125, %v1241_v18  ;;  %v1238_v37 = vpop.xlane.xlu0 %1237 }
 0xacd   :  { %v1242_v55 = vmul.f32 0.03125, %v1238_v37 }
 0xace   :  { %v1245_v19 = vadd.f32 1e-05, %v1243_v0 }
 0xacf   :  { %v1244_v22 = vadd.f32 1e-05, %v1242_v55 }
 0xad0   :  { %3205 = vrsqrt.f32 %v1245_v19 }
 0xad1   :  { %3207 = vrsqrt.f32 %v1244_v22 }
 0xada   :  { %v3206_v16 = vpop.eup %3205 }
 0xadb   :  { %v3208_v27 = vpop.eup %3207  ;;  %v1249_v10 = vmul.f32 %v3206_v16, %v1233_v54 }
 0xadc   :  { %v1248_v30 = vmul.f32 %v3208_v27, %v1232_v31 }
 0xadd   :  { %v1255_v33 = vmul.f32 %v2557_v26, %v1249_v10 }
 0xade   :  { %v1254_v34 = vmul.f32 %v2557_v26, %v1248_v30 }
 0xadf   :  { %v1261_v23 = vadd.f32 %v2558_v32, %v1255_v33 }
 0xae0   :  { %v1260_v20 = vadd.f32 %v2558_v32, %v1254_v34 }
 0xae2   :  { %2814 = vmatprep.mubr.msk.f32.mxu0 %vm57_vm0, %v1260_v20 }
 0xae3   :  { %2815 = vmatmul.mubr.msk.f32.vlgmr.msra.gmra.mrb[6].mxu0 %vm57_vm0, %v1261_v23 }
 0xae4   :  { %2986 = vmatpush3.bf16.msra.mxu0 %v2983_v11 }
 0xae5   :  { %2988 = vmatprep.subr.bf16.mxu0 %v2987_v44 }
 0xae8   :  { %2990 = vmatpush3.bf16.msra.mxu0 %v2987_v44  ;;  %v2597_v44 = vld [vmem:[%s4259_s4 + $0x68] sm:$0xff] }
 0xae9   :  { %2992 = vmatprep.subr.bf16.mxu0 %v2991_v43  ;;  %v2995_v41 = vpack.c.bf16 %v2597_v44, %v2596_v40 }
 0xaeb   :  { %2996 = vmatprep.subr.bf16.mxu1 %v2995_v41 }
 0xaec   :  { %2994 = vmatpush3.bf16.msra.mxu0 %v2991_v43  ;;  %v2599_v43 = vld [vmem:[%s4259_s4 + $0x78] sm:$0xff] }
 0xbb6   :  { %v2816_v46 = vpop.f32.mrb[6].mxu0 }
 0xbb7   :  { %v1351_v48 = vrot.slane %v2816_v46, 7  ;;  %v1357_v52 = vrot.slane %v2816_v46, 1  ;;  %v2580_v35 = vmul.f32 -1.442695, %v2816_v46  ;;  %v1339_v28 = vpop.f32.mrb[7].mxu0  ;;  %v1373_v6 = vmul.f32 %v2816_v46, %v1371_v59 }
 0xbb8   :  { %v1350_v29 = vrot.slane %v1339_v28, 7  ;;  %v1356_v53 = vrot.slane %v1339_v28, 1  ;;  %v2579_v21 = vmul.f32 -1.442695, %v1339_v28  ;;  %v1372_v45 = vmul.f32 %v1371_v59, %v1339_v28  ;;  %v2574_v46 = vld [vmem:[%s4260_s3 + $0xb] ss:$0 sm:$0xff] }
 0xbb9   :  { %3209 = vpow2.f32 %v2580_v35 }
 0xbba   :  { %v1352_v63 = vsel %vm514_vm3, %v1350_v29, %v1351_v48  ;;  %v1353_v25 = vsel %vm514_vm3, %v1351_v48, %v1350_v29  ;;  %v1358_v3 = vsel %vm381_vm2, %v1356_v53, %v1357_v52  ;;  %v1359_v4 = vsel %vm381_vm2, %v1357_v52, %v1356_v53 }
 0xbbb   :  { %v1354_v5 = vmul.f32 %v3654_v57, %v1353_v25  ;;  %v1355_v36 = vmul.f32 %v3654_v57, %v1352_v63  ;;  %v1360_v54 = vmul.f32 %v3659_v58, %v1358_v3  ;;  %v1361_v31 = vmul.f32 %v3659_v58, %v1359_v4 }
 0xbbc   :  { %3211 = vpow2.f32 %v2579_v21 }
 0xbbd   :  { %v1366_v7 = vmul.f32 %v1365_v61, %v1354_v5  ;;  %v1367_v1 = vmul.f32 %v1365_v61, %v1355_v36  ;;  %v1381_v12 = vmul.f32 %v1379_v60, %v1361_v31  ;;  %v1380_v13 = vmul.f32 %v1379_v60, %v1360_v54 }
 0xbbf   :  { %v1374_v8 = vadd.f32 %v1372_v45, %v1366_v7  ;;  %v1375_v9 = vadd.f32 %v1373_v6, %v1367_v1 }
 0xbc1   :  { %v1382_v14 = vadd.f32 %v1380_v13, %v1374_v8  ;;  %v1383_v15 = vadd.f32 %v1381_v12, %v1375_v9 }
 0xbc3   :  { %v3210_v18 = vpop.eup %3209  ;;  %v2566_v0 = vmul.f32 -1.442695, %v1382_v14  ;;  %v2567_v37 = vmul.f32 -1.442695, %v1383_v15 }
 0xbc4   :  { %v1527_v55 = vadd.f32 1.0, %v3210_v18 }
 0xbc5   :  { %3213 = vpow2.f32 %v2566_v0 }
 0xbc6   :  { %v3212_v19 = vpop.eup %3211  ;;  %3215 = vrcp.f32 %v1527_v55  ;;  %v2589_v55 = vld [vmem:[%s4260_s3 + $0xa] ss:$0 sm:$0xff] }
 0xbc7   :  { %v1526_v22 = vadd.f32 1.0, %v3212_v19  ;;  %3217 = vpow2.f32 %v2567_v37 }
 0xbc9   :  { %3219 = vrcp.f32 %v1526_v22 }
 0xbcf   :  { %v3214_v16 = vpop.eup %3213 }
 0xbd0   :  { %v3216_v26 = vpop.eup %3215  ;;  %v1390_v27 = vadd.f32 1.0, %v3214_v16 }
 0xbd1   :  { %v3218_v10 = vpop.eup %3217  ;;  %1536 = vrot.lane.b32.xlu1 %v3216_v26, %s3290_s20 }
 0xbd2   :  { %3221 = vrcp.f32 %v1390_v27  ;;  %v1391_v30 = vadd.f32 1.0, %v3218_v10 }
 0xbd3   :  { %v3220_v32 = vpop.eup %3219 }
 0xbd4   :  { %1534 = vrot.lane.b32.xlu0 %v3220_v32, %s3290_s20  ;;  %3223 = vrcp.f32 %v1391_v30 }
 0xbdc   :  { %v3222_v33 = vpop.eup %3221 }
 0xbdd   :  { %v1396_v34 = vmul.f32 %v3222_v33, %v1382_v14 }
 0xbde   :  { %v3224_v20 = vpop.eup %3223 }
 0xbdf   :  { %2829 = vmatprep.mubr.msk.f32.mxu1 %vm571_vm4, %v1396_v34  ;;  %v1397_v23 = vmul.f32 %v3224_v20, %v1383_v15 }
 0xbe1   :  { %2830 = vmatmul.mubr.msk.f32.vlgmr.msra.gmra.mrb[6].mxu1 %vm571_vm4, %v1397_v23 }
 0xbe2   :  { %2998 = vmatpush3.bf16.msra.mxu1 %v2995_v41 }
 0xc43   :  { %v1537_v18 = vpop.permute.xlu1 %1536 }
 0xc46   :  { %v1535_v15 = vpop.permute.xlu0 %1534 }
 0xcb4   :  { %v2831_v24 = vpop.f32.mrb[6].mxu1 }
 0xcb5   :  { %v1487_v48 = vadd.f32 %v2831_v24, %v2574_v46  ;;  %v1481_v52 = vpop.f32.mrb[7].mxu1 }
 0xcb6   :  { %v1482_v35 = vadd.f32 %v2574_v46, %v1481_v52  ;;  %v2999_v46 = vpack.c.bf16 %v2599_v43, %v2598_v42 }
 0xcb7   :  { %v1493_v28 = vmin.f32 %v1487_v48, 20.0  ;;  %vm1491_vm9 = vcmp.gt.f32.partialorder %v1487_v48, 20.0 }
 0xcb8   :  { %v1492_v29 = vmin.f32 %v1482_v35, 20.0  ;;  %vm1490_vm10 = vcmp.gt.f32.partialorder %v1482_v35, 20.0  ;;  %3000 = vmatprep.subr.bf16.mxu1 %v2999_v46 }
 0xcb9   :  { %v1496_v53 = vmul.f32 1.442695, %v1493_v28  ;;  %3002 = vmatpush3.bf16.msra.mxu1 %v2999_v46 }
 0xcba   :  { %v1494_v21 = vmul.f32 1.442695, %v1492_v29 }
 0xcbb   :  { %3225 = vpow2.f32 %v1496_v53 }
 0xcbc   :  { %3227 = vpow2.f32 %v1494_v21  ;;  %v2594_v21 = vld [vmem:[%s4260_s3 + $0xc] ss:$0 sm:$0xff] }
 0xcc5   :  { %v3226_v59 = vpop.eup %3225 }
 0xcc6   :  { %v3228_v60 = vpop.eup %3227  ;;  %v1499_v61 = vadd.f32 1.0, %v3226_v59 }
 0xcc7   :  { %v1498_v63 = vadd.f32 1.0, %v3228_v60 }
 0xcc8   :  { %3229 = vlog2.f32 %v1499_v61 }
 0xcc9   :  { %3231 = vlog2.f32 %v1498_v63  ;;  %v2595_v63 = vld [vmem:[%s4260_s3 + $0xd] ss:$0 sm:$0xff] }
 0xcd2   :  { %v3230_v25 = vpop.eup %3229 }
 0xcd3   :  { %v3232_v3 = vpop.eup %3231  ;;  %v1503_v4 = vmul.f32 0.6931472, %v3230_v25 }
 0xcd4   :  { %v1501_v5 = vmul.f32 0.6931472, %v3232_v3 }
 0xcd5   :  { %v1505_v36 = vsel %vm1491_vm9, %v1487_v48, %v1503_v4 }
 0xcd6   :  { %v2578_v54 = vmul.f32 -1.442695, %v1505_v36  ;;  %v1504_v31 = vsel %vm1490_vm10, %v1482_v35, %v1501_v5  ;;  %v2605_v36 = vld [vmem:[%s4261_s6 + $0x90] sm:$0xff] }
 0xcd7   :  { %v2577_v6 = vmul.f32 -1.442695, %v1504_v31 }
 0xcd8   :  { %3233 = vpow2.f32 %v2578_v54  ;;  %v2606_v54 = vld [vmem:[%s4261_s6 + $0x98] sm:$0xff] }
 0xcd9   :  { %3235 = vpow2.f32 %v2577_v6  ;;  %v3003_v31 = vpack.c.bf16 %v2606_v54, %v2605_v36  ;;  %v2607_v6 = vld [vmem:[%s4261_s6 + $0xa0] sm:$0xff] }
 0xcda   :  { %v2620_v36 = vld [vmem:[%s4263_s7 + $0xa0] sm:$0xff] }
 0xcdb   :  { %3004 = vmatprep.subr.bf16.mxu0 %v3003_v31 }
 0xce2   :  { %v3234_v7 = vpop.eup %3233 }
 0xce3   :  { %v3236_v1 = vpop.eup %3235  ;;  %v1513_v45 = vadd.f32 1.0, %v3234_v7  ;;  %v2608_v7 = vld [vmem:[%s4261_s6 + $0xa8] sm:$0xff] }
 0xce4   :  { %v1512_v8 = vadd.f32 1.0, %v3236_v1  ;;  %v3007_v1 = vpack.c.bf16 %v2608_v7, %v2607_v6  ;;  %v2622_v7 = vld [vmem:[%s4263_s7 + $0xb0] sm:$0xff] }
 0xce5   :  { %3237 = vrcp.f32 %v1513_v45  ;;  %v2609_v45 = vld [vmem:[%s4261_s6 + $0xb0] sm:$0xff] }
 0xce6   :  { %3239 = vrcp.f32 %v1512_v8  ;;  %v2610_v8 = vld [vmem:[%s4261_s6 + $0xb8] sm:$0xff] }
 0xcef   :  { %v3238_v9 = vpop.eup %3237 }
 0xcf0   :  { %v3240_v12 = vpop.eup %3239  ;;  %v1519_v13 = vmul.f32 %v3238_v9, %v1397_v23  ;;  %v3011_v9 = vpack.c.bf16 %v2610_v8, %v2609_v45  ;;  %v2611_v8 = vld [vmem:[%s4260_s3 + $0xf] ss:$0 sm:$0xff] }
 0xcf1   :  { %v1518_v14 = vmul.f32 %v3240_v12, %v1396_v34 }
 0xcf2   :  { %v1541_v37 = vmul.f32 %v1537_v18, %v1519_v13  ;;  %v2602_v13 = vld [vmem:[%s4262_s5 + $0xc] sm:$0x7] }
 0xcf3   :  { %v1540_v0 = vmul.f32 %v1535_v15, %v1518_v14 }
 0xcf5   :  { %2844 = vmatprep.mubr.msk.f32.mxu0 %vm571_vm4, %v1540_v0 }
 0xcf6   :  { %2845 = vmatmul.mubr.msk.f32.vlgmr.msra.gmra.mrb[8].mxu0 %vm571_vm4, %v1541_v37 }
 0xcf7   :  { %3006 = vmatpush3.bf16.msra.mxu0 %v3003_v31  ;;  %v2621_v31 = vld [vmem:[%s4263_s7 + $0xa8] sm:$0xff] }
 0xcf8   :  { %3008 = vmatprep.subr.bf16.mxu0 %v3007_v1  ;;  %v3019_v6 = vpack.c.bf16 %v2621_v31, %v2620_v36 }
 0xcfb   :  { %3010 = vmatpush3.bf16.msra.mxu0 %v3007_v1  ;;  %v2623_v1 = vld [vmem:[%s4263_s7 + $0xb8] sm:$0xff] }
 0xcfc   :  { %3012 = vmatprep.subr.bf16.mxu0 %v3011_v9  ;;  %v3023_v45 = vpack.c.bf16 %v2623_v1, %v2622_v7  ;;  %v2086_v7 = vld [vmem:[%s4264_s8 + $0x18] sm:$0xff] }
 0xcff   :  { %3014 = vmatpush3.bf16.msra.mxu0 %v3011_v9 }
 0xdc9   :  { %v2846_v19 = vpop.f32.mrb[8].mxu0 }
 0xdca   :  { %v1635_v22 = vmul.f32 %v2846_v19, %v2589_v55  ;;  %v1621_v16 = vpop.f32.mrb[9].mxu0 }
 0xdcb   :  { %v1634_v26 = vmul.f32 %v2589_v55, %v1621_v16  ;;  %v1798_v16 = vrot.slane %v2602_v13, %v3647_v51 }
 0xdcc   :  { %v3907_v27 = vadd.f32 %v1635_v22, %v3807_v47  ;;  %v1790_v22 = vrot.slane %v2602_v13, %v3640_v49 }
 0xdcd   :  { %v3910_v10 = vadd.f32 %v1634_v26, %v3810_v62  ;;  %v1784_v26 = vrot.slane %v2602_v13, %v3644_v50 }
 0xdce   :  { %v1646_v30 = vsel %vm57_vm0, %v3907_v27, 0.0 }
 0xdcf   :  { %1647 = vadd.xlane.f32.xlu0 %v1646_v30  ;;  %v1643_v32 = vsel %vm57_vm0, %v3910_v10, 0.0 }
 0xdd0   :  { %1644 = vadd.xlane.f32.xlu1 %v1643_v32 }
 0xe5c   :  { %v1648_v33 = vpop.xlane.xlu0 %1647 }
 0xe5d   :  { %v1650_v34 = vmul.f32 0.03125, %v1648_v33  ;;  %v1645_v20 = vpop.xlane.xlu1 %1644 }
 0xe5e   :  { %v1649_v23 = vmul.f32 0.03125, %v1645_v20 }
 0xe5f   :  { %v1652_v38 = vsub.f32 %v3907_v27, %v1650_v34 }
 0xe60   :  { %v1651_v47 = vsub.f32 %v3910_v10, %v1649_v23 }
 0xe61   :  { %v1654_v39 = vmul.f32 %v1652_v38, %v1652_v38 }
 0xe62   :  { %v1653_v2 = vmul.f32 %v1651_v47, %v1651_v47 }
 0xe63   :  { %v1658_v62 = vsel %vm57_vm0, %v1654_v39, 0.0 }
 0xe64   :  { %1659 = vadd.xlane.f32.xlu1 %v1658_v62  ;;  %v1655_v11 = vsel %vm57_vm0, %v1653_v2, 0.0 }
 0xe65   :  { %1656 = vadd.xlane.f32.xlu0 %v1655_v11 }
 0xef1   :  { %v1660_v24 = vpop.xlane.xlu1 %1659 }
 0xef2   :  { %v1662_v48 = vmul.f32 0.03125, %v1660_v24  ;;  %v1657_v52 = vpop.xlane.xlu0 %1656 }
 0xef3   :  { %v1661_v35 = vmul.f32 0.03125, %v1657_v52 }
 0xef4   :  { %v1664_v28 = vadd.f32 1e-05, %v1662_v48 }
 0xef5   :  { %v1663_v29 = vadd.f32 1e-05, %v1661_v35 }
 0xef6   :  { %3241 = vrsqrt.f32 %v1664_v28 }
 0xef7   :  { %3243 = vrsqrt.f32 %v1663_v29 }
 0xf00   :  { %v3242_v53 = vpop.eup %3241 }
 0xf01   :  { %v3244_v59 = vpop.eup %3243  ;;  %v1668_v60 = vmul.f32 %v3242_v53, %v1652_v38 }
 0xf02   :  { %v1667_v61 = vmul.f32 %v3244_v59, %v1651_v47 }
 0xf03   :  { %v1674_v25 = vmul.f32 %v2594_v21, %v1668_v60 }
 0xf04   :  { %v1673_v3 = vmul.f32 %v2594_v21, %v1667_v61 }
 0xf05   :  { %v1680_v5 = vadd.f32 %v2595_v63, %v1674_v25 }
 0xf06   :  { %v1679_v4 = vadd.f32 %v2595_v63, %v1673_v3 }
 0xf08   :  { %2855 = vmatprep.mubr.msk.f32.mxu1 %vm57_vm0, %v1679_v4  ;;  %v2618_v4 = vld [vmem:[%s4263_s7 + $0x90] sm:$0xff] }
 0xf09   :  { %2856 = vmatmul.mubr.msk.f32.vlgmr.msra.gmra.mrb[8].mxu1 %vm57_vm0, %v1680_v5  ;;  %v2619_v5 = vld [vmem:[%s4263_s7 + $0x98] sm:$0xff] }
 0xf0a   :  { %v3015_v54 = vpack.c.bf16 %v2619_v5, %v2618_v4 }
 0xf0c   :  { %3016 = vmatprep.subr.bf16.mxu1 %v3015_v54 }
 0xf0d   :  { %3018 = vmatpush3.bf16.msra.mxu1 %v3015_v54  ;;  %v2084_v54 = vld [vmem:[%s4264_s8 + $0x8] sm:$0xff] }
 0xf0e   :  { %3020 = vmatprep.subr.bf16.mxu1 %v3019_v6 }
 0xf11   :  { %3022 = vmatpush3.bf16.msra.mxu1 %v3019_v6  ;;  %v2085_v6 = vld [vmem:[%s4264_s8 + $0x10] sm:$0xff] }
 0xf12   :  { %3024 = vmatprep.subr.bf16.mxu1 %v3023_v45  ;;  %v3031_v1 = vpack.c.bf16 %v2086_v7, %v2085_v6  ;;  %v2259_v6 = vld [vmem:[%s4265_s10 + $0xf0] sm:$0xff] }
 0xf15   :  { %3026 = vmatpush3.bf16.msra.mxu1 %v3023_v45 }
 0xfdc   :  { %v2857_v12 = vpop.f32.mrb[8].mxu1 }
 0xfdd   :  { %v1770_v14 = vrot.slane %v2857_v12, 7  ;;  %v1776_v15 = vrot.slane %v2857_v12, 1  ;;  %v2617_v18 = vmul.f32 -1.442695, %v2857_v12  ;;  %v1758_v0 = vpop.f32.mrb[9].mxu1  ;;  %v1792_v39 = vmul.f32 %v2857_v12, %v1790_v22 }
 0xfde   :  { %v1769_v37 = vrot.slane %v1758_v0, 7  ;;  %v1775_v55 = vrot.slane %v1758_v0, 1  ;;  %v2616_v19 = vmul.f32 -1.442695, %v1758_v0  ;;  %v1791_v11 = vmul.f32 %v1790_v22, %v1758_v0 }
 0xfdf   :  { %3245 = vpow2.f32 %v2617_v18 }
 0xfe0   :  { %v1771_v30 = vsel %vm514_vm3, %v1769_v37, %v1770_v14  ;;  %v1772_v32 = vsel %vm514_vm3, %v1770_v14, %v1769_v37  ;;  %v1777_v33 = vsel %vm381_vm2, %v1775_v55, %v1776_v15  ;;  %v1778_v34 = vsel %vm381_vm2, %v1776_v15, %v1775_v55 }
 0xfe1   :  { %v1773_v20 = vmul.f32 %v3654_v57, %v1772_v32  ;;  %v1774_v23 = vmul.f32 %v3654_v57, %v1771_v30  ;;  %v1779_v38 = vmul.f32 %v3659_v58, %v1777_v33  ;;  %v1780_v47 = vmul.f32 %v3659_v58, %v1778_v34 }
 0xfe2   :  { %3247 = vpow2.f32 %v2616_v19 }
 0xfe3   :  { %v1785_v2 = vmul.f32 %v1784_v26, %v1773_v20  ;;  %v1786_v62 = vmul.f32 %v1784_v26, %v1774_v23  ;;  %v1800_v41 = vmul.f32 %v1798_v16, %v1780_v47  ;;  %v1799_v42 = vmul.f32 %v1798_v16, %v1779_v38 }
 0xfe5   :  { %v1793_v40 = vadd.f32 %v1791_v11, %v1785_v2  ;;  %v1794_v44 = vadd.f32 %v1792_v39, %v1786_v62 }
 0xfe7   :  { %v1801_v43 = vadd.f32 %v1799_v42, %v1793_v40  ;;  %v1802_v46 = vadd.f32 %v1800_v41, %v1794_v44 }
 0xfe9   :  { %v3246_v24 = vpop.eup %3245  ;;  %v2603_v48 = vmul.f32 -1.442695, %v1801_v43  ;;  %v2604_v52 = vmul.f32 -1.442695, %v1802_v46 }
 0xfea   :  { %v1946_v35 = vadd.f32 1.0, %v3246_v24 }
 0xfeb   :  { %3249 = vpow2.f32 %v2603_v48  ;;  %v2626_v48 = vld [vmem:[%s4260_s3 + $0xe] ss:$0 sm:$0xff] }
 0xfec   :  { %v3248_v57 = vpop.eup %3247  ;;  %3251 = vrcp.f32 %v1946_v35 }
 0xfed   :  { %v1945_v28 = vadd.f32 1.0, %v3248_v57  ;;  %3253 = vpow2.f32 %v2604_v52 }
 0xfef   :  { %3255 = vrcp.f32 %v1945_v28 }
 0xff5   :  { %v3250_v58 = vpop.eup %3249 }
 0xff6   :  { %v3252_v29 = vpop.eup %3251  ;;  %v1809_v53 = vadd.f32 1.0, %v3250_v58 }
 0xff7   :  { %v3254_v21 = vpop.eup %3253  ;;  %1955 = vrot.lane.b32.xlu1 %v3252_v29, %s3290_s20 }
 0xff8   :  { %3257 = vrcp.f32 %v1809_v53  ;;  %v1810_v59 = vadd.f32 1.0, %v3254_v21 }
 0xff9   :  { %v3256_v60 = vpop.eup %3255 }
 0xffa   :  { %1953 = vrot.lane.b32.xlu0 %v3256_v60, %s3290_s20  ;;  %3259 = vrcp.f32 %v1810_v59 }
0x1002   :  { %v3258_v61 = vpop.eup %3257 }
0x1003   :  { %v1815_v63 = vmul.f32 %v3258_v61, %v1801_v43 }
0x1004   :  { %v3260_v25 = vpop.eup %3259 }
0x1005   :  { %2870 = vmatprep.mubr.msk.f32.mxu0 %vm571_vm4, %v1815_v63  ;;  %v1816_v3 = vmul.f32 %v3260_v25, %v1802_v46 }
0x1007   :  { %2871 = vmatmul.mubr.msk.f32.vlgmr.msra.gmra.mrb[10].mxu0 %vm571_vm4, %v1816_v3 }
0x1069   :  { %v1956_v43 = vpop.permute.xlu1 %1955 }
0x106c   :  { %v1954_v42 = vpop.permute.xlu0 %1953 }
0x10da   :  { %v2872_v9 = vpop.f32.mrb[10].mxu0 }
0x10db   :  { %v1906_v12 = vadd.f32 %v2872_v9, %v2611_v8  ;;  %v1900_v13 = vpop.f32.mrb[11].mxu0 }
0x10dc   :  { %v1901_v14 = vadd.f32 %v2611_v8, %v1900_v13 }
0x10dd   :  { %v1912_v15 = vmin.f32 %v1906_v12, 20.0  ;;  %vm1910_vm11 = vcmp.gt.f32.partialorder %v1906_v12, 20.0 }
0x10de   :  { %v1911_v18 = vmin.f32 %v1901_v14, 20.0  ;;  %vm1909_vm12 = vcmp.gt.f32.partialorder %v1901_v14, 20.0 }
0x10df   :  { %v1915_v0 = vmul.f32 1.442695, %v1912_v15 }
0x10e0   :  { %v1913_v37 = vmul.f32 1.442695, %v1911_v18 }
0x10e1   :  { %3261 = vpow2.f32 %v1915_v0 }
0x10e2   :  { %3263 = vpow2.f32 %v1913_v37 }
0x10eb   :  { %v3262_v55 = vpop.eup %3261 }
0x10ec   :  { %v3264_v19 = vpop.eup %3263  ;;  %v1918_v22 = vadd.f32 1.0, %v3262_v55  ;;  %v2230_v55 = vld [vmem:[%s4265_s10 + $0x8] sm:$0xff] }
0x10ed   :  { %v1917_v16 = vadd.f32 1.0, %v3264_v19  ;;  %v2234_v19 = vld [vmem:[%s4265_s10 + $0x28] sm:$0xff] }
0x10ee   :  { %3265 = vlog2.f32 %v1918_v22  ;;  %v2232_v22 = vld [vmem:[%s4265_s10 + $0x18] sm:$0xff] }
0x10ef   :  { %3267 = vlog2.f32 %v1917_v16  ;;  %v3035_v16 = vpack.c.bf16 %v2234_v19, %v2230_v55  ;;  %v2270_v19 = vld [vmem:[%s4265_s10 + $0x148] sm:$0xff] }
0x10f1   :  { %3036 = vmatprep.subr.bf16.mxu1 %v3035_v16  ;;  %v2272_v16 = vld [vmem:[%s4265_s10 + $0x158] sm:$0xff] }
0x10f8   :  { %v3266_v26 = vpop.eup %3265 }
0x10f9   :  { %v3268_v30 = vpop.eup %3267  ;;  %v1922_v32 = vmul.f32 0.6931472, %v3266_v26  ;;  %v2236_v26 = vld [vmem:[%s4265_s10 + $0x38] sm:$0xff] }
0x10fa   :  { %v1920_v33 = vmul.f32 0.6931472, %v3268_v30  ;;  %v2229_v30 = vld [vmem:[%s4265_s10] sm:$0xff] }
0x10fb   :  { %v1924_v34 = vsel %vm1910_vm11, %v1906_v12, %v1922_v32  ;;  %v2233_v32 = vld [vmem:[%s4265_s10 + $0x20] sm:$0xff] }
0x10fc   :  { %v2615_v20 = vmul.f32 -1.442695, %v1924_v34  ;;  %v1923_v23 = vsel %vm1909_vm12, %v1901_v14, %v1920_v33  ;;  %v3067_v33 = vpack.c.bf16 %v2236_v26, %v2232_v22  ;;  %v3037_v34 = vpack.c.bf16 %v2233_v32, %v2229_v30  ;;  %v2274_v22 = vld [vmem:[%s4265_s10 + $0x168] sm:$0xff]  ;;  %v2276_v30 = vld [vmem:[%s4265_s10 + $0x178] sm:$0xff]  ;;  %v2269_v32 = vld [vmem:[%s4265_s10 + $0x140] sm:$0xff] }
0x10fd   :  { %v2614_v38 = vmul.f32 -1.442695, %v1923_v23  ;;  %v2235_v23 = vld [vmem:[%s4265_s10 + $0x30] sm:$0xff]  ;;  %v3055_v26 = vpack.c.bf16 %v2274_v22, %v2270_v19 }
0x10fe   :  { %3269 = vpow2.f32 %v2615_v20  ;;  %v2231_v20 = vld [vmem:[%s4265_s10 + $0x10] sm:$0xff] }
0x10ff   :  { %3271 = vpow2.f32 %v2614_v38  ;;  %v3069_v38 = vpack.c.bf16 %v2235_v23, %v2231_v20  ;;  %v2271_v23 = vld [vmem:[%s4265_s10 + $0x150] sm:$0xff] }
0x1108   :  { %v3270_v47 = vpop.eup %3269 }
0x1109   :  { %v3272_v39 = vpop.eup %3271  ;;  %v1932_v2 = vadd.f32 1.0, %v3270_v47  ;;  %v2238_v47 = vld [vmem:[%s4265_s10 + $0x48] sm:$0xff] }
0x110a   :  { %v1931_v62 = vadd.f32 1.0, %v3272_v39  ;;  %v2242_v39 = vld [vmem:[%s4265_s10 + $0x68] sm:$0xff] }
0x110b   :  { %3273 = vrcp.f32 %v1932_v2  ;;  %v2240_v2 = vld [vmem:[%s4265_s10 + $0x58] sm:$0xff] }
0x110c   :  { %3275 = vrcp.f32 %v1931_v62  ;;  %v3039_v62 = vpack.c.bf16 %v2242_v39, %v2238_v47  ;;  %v2278_v39 = vld [vmem:[%s4265_s10 + $0x188] sm:$0xff] }
0x1115   :  { %v3274_v11 = vpop.eup %3273 }
0x1116   :  { %v3276_v40 = vpop.eup %3275  ;;  %v1938_v44 = vmul.f32 %v3274_v11, %v1816_v3  ;;  %v2244_v11 = vld [vmem:[%s4265_s10 + $0x78] sm:$0xff] }
0x1117   :  { %v1937_v41 = vmul.f32 %v3276_v40, %v1815_v63  ;;  %v2237_v40 = vld [vmem:[%s4265_s10 + $0x40] sm:$0xff] }
0x1118   :  { %v1960_v24 = vmul.f32 %v1956_v43, %v1938_v44  ;;  %v2241_v44 = vld [vmem:[%s4265_s10 + $0x60] sm:$0xff]  ;;  %v2239_v43 = vld [vmem:[%s4265_s10 + $0x50] sm:$0xff] }
0x1119   :  { %v1959_v46 = vmul.f32 %v1954_v42, %v1937_v41  ;;  %v3071_v41 = vpack.c.bf16 %v2244_v11, %v2240_v2  ;;  %v3041_v42 = vpack.c.bf16 %v2241_v44, %v2237_v40  ;;  %v2282_v2 = vld [vmem:[%s4265_s10 + $0x1a8] sm:$0xff]  ;;  %v2284_v40 = vld [vmem:[%s4265_s10 + $0x1b8] sm:$0xff]  ;;  %v2277_v44 = vld [vmem:[%s4265_s10 + $0x180] sm:$0xff] }
0x111a   :  { %v3059_v11 = vpack.c.bf16 %v2282_v2, %v2278_v39 }
0x111b   :  { %2885 = vmatprep.mubr.msk.f32.mxu1 %vm571_vm4, %v1959_v46  ;;  %v2243_v46 = vld [vmem:[%s4265_s10 + $0x70] sm:$0xff] }
0x111c   :  { %2886 = vmatmul.mubr.msk.f32.vlgmr.msra.gmra.mrb[10].mxu1 %vm571_vm4, %v1960_v24  ;;  %v3073_v24 = vpack.c.bf16 %v2243_v46, %v2239_v43  ;;  %v2279_v46 = vld [vmem:[%s4265_s10 + $0x190] sm:$0xff] }
0x111d   :  { %2379 = vmatprep.mubr.f32.mxu1 %v3289_v56  ;;  %3038 = vmatpush1.bf16.msra.mxu1 %v3037_v34  ;;  %v3087_v34 = vpack.c.bf16 %v2276_v30, %v2272_v16 }
0x111e   :  { %3040 = vmatprep.subr.bf16.mxu1 %v3039_v62  ;;  %v2280_v62 = vld [vmem:[%s4265_s10 + $0x198] sm:$0xff] }
0x1121   :  { %3042 = vmatpush1.bf16.msra.mxu1 %v3041_v42  ;;  %v3091_v42 = vpack.c.bf16 %v2284_v40, %v2280_v62 }
0x11ef   :  { %v2887_v52 = vpop.f32.mrb[10].mxu1 }
0x11f0   :  { %v2054_v35 = vmul.f32 %v2887_v52, %v2626_v48  ;;  %v2040_v57 = vpop.f32.mrb[11].mxu1  ;;  %v2250_v52 = vld [vmem:[%s4265_s10 + $0xa8] sm:$0xff] }
0x11f1   :  { %v2053_v28 = vmul.f32 %v2626_v48, %v2040_v57  ;;  %v2246_v48 = vld [vmem:[%s4265_s10 + $0x88] sm:$0xff] }
0x11f2   :  { %v2056_v58 = vadd.f32 %v2054_v35, %v3907_v27  ;;  %v2248_v35 = vld [vmem:[%s4265_s10 + $0x98] sm:$0xff]  ;;  %v3043_v57 = vpack.c.bf16 %v2250_v52, %v2246_v48  ;;  %v2286_v52 = vld [vmem:[%s4265_s10 + $0x1c8] sm:$0xff] }
0x11f3   :  { %v2055_v29 = vadd.f32 %v2053_v28, %v3910_v10  ;;  %v2083_v10 = vld [vmem:[%s4264_s8] sm:$0xff]  ;;  %v2252_v28 = vld [vmem:[%s4265_s10 + $0xb8] sm:$0xff] }
0x11f4   :  { %v2060_v53 = vsel %vm57_vm0, %v2056_v58, 0.0  ;;  %v3027_v31 = vpack.c.bf16 %v2084_v54, %v2083_v10  ;;  %3044 = vmatprep.subr.bf16.mxu1 %v3043_v57  ;;  %v2288_v57 = vld [vmem:[%s4265_s10 + $0x1d8] sm:$0xff] }
0x11f5   :  { %2061 = vadd.xlane.f32.xlu0 %v2060_v53  ;;  %v2057_v21 = vsel %vm57_vm0, %v2055_v29, 0.0  ;;  %v3075_v53 = vpack.c.bf16 %v2252_v28, %v2248_v35  ;;  %v2290_v35 = vld [vmem:[%s4265_s10 + $0x1e8] sm:$0xff] }
0x11f6   :  { %2058 = vadd.xlane.f32.xlu1 %v2057_v21  ;;  %3028 = vmatprep.subr.bf16.mxu0 %v3027_v31  ;;  %v3063_v28 = vpack.c.bf16 %v2290_v35, %v2286_v52 }
0x11f7   :  { %3030 = vmatpush3.bf16.msra.mxu0 %v3027_v31  ;;  %v2255_v31 = vld [vmem:[%s4265_s10 + $0xd0] sm:$0xff] }
0x11f8   :  { %3032 = vmatprep.subr.bf16.mxu0 %v3031_v1  ;;  %v3081_v7 = vpack.c.bf16 %v2259_v6, %v2255_v31 }
0x11fb   :  { %3034 = vmatpush3.bf16.msra.mxu0 %v3031_v1  ;;  %v2262_v1 = vld [vmem:[%s4265_s10 + $0x108] sm:$0xff] }
0x11fc   :  { %3068 = vmatprep.subr.bf16.mxu0 %v3067_v33  ;;  %v2273_v33 = vld [vmem:[%s4265_s10 + $0x160] sm:$0xff] }
0x11fd   :  { %v3057_v20 = vpack.c.bf16 %v2273_v33, %v2269_v32 }
0x1282   :  { %v2062_v59 = vpop.xlane.xlu0 %2061 }
0x1283   :  { %v2064_v60 = vmul.f32 0.03125, %v2062_v59  ;;  %v2059_v61 = vpop.xlane.xlu1 %2058  ;;  %v2247_v59 = vld [vmem:[%s4265_s10 + $0x90] sm:$0xff] }
0x1284   :  { %v2063_v63 = vmul.f32 0.03125, %v2059_v61 }
0x1285   :  { %v2066_v25 = vsub.f32 %v2056_v58, %v2064_v60  ;;  %v2245_v58 = vld [vmem:[%s4265_s10 + $0x80] sm:$0xff]  ;;  %v2251_v60 = vld [vmem:[%s4265_s10 + $0xb0] sm:$0xff] }
0x1286   :  { %v2065_v3 = vsub.f32 %v2055_v29, %v2063_v63  ;;  %v2249_v29 = vld [vmem:[%s4265_s10 + $0xa0] sm:$0xff]  ;;  %v3077_v61 = vpack.c.bf16 %v2251_v60, %v2247_v59  ;;  %v2254_v63 = vld [vmem:[%s4265_s10 + $0xc8] sm:$0xff]  ;;  %v2287_v60 = vld [vmem:[%s4265_s10 + $0x1d0] sm:$0xff] }
0x1287   :  { %v2068_v4 = vmul.f32 %v2066_v25, %v2066_v25  ;;  %v3045_v21 = vpack.c.bf16 %v2249_v29, %v2245_v58  ;;  %v2292_v58 = vld [vmem:[%s4265_s10 + $0x1f8] sm:$0xff]  ;;  %v2285_v29 = vld [vmem:[%s4265_s10 + $0x1c0] sm:$0xff] }
0x1288   :  { %v2067_v5 = vmul.f32 %v2065_v3, %v2065_v3 }
0x1289   :  { %v2072_v36 = vsel %vm57_vm0, %v2068_v4, 0.0  ;;  %3046 = vmatpush1.bf16.msra.mxu1 %v3045_v21  ;;  %v3095_v21 = vpack.c.bf16 %v2292_v58, %v2288_v57 }
0x128a   :  { %2073 = vadd.xlane.f32.xlu1 %v2072_v36  ;;  %v2069_v27 = vsel %vm57_vm0, %v2067_v5, 0.0  ;;  %v2260_v5 = vld [vmem:[%s4265_s10 + $0xf8] sm:$0xff]  ;;  %v2253_v36 = vld [vmem:[%s4265_s10 + $0xc0] sm:$0xff] }
0x128b   :  { %2070 = vadd.xlane.f32.xlu0 %v2069_v27  ;;  %v2257_v27 = vld [vmem:[%s4265_s10 + $0xe0] sm:$0xff] }
0x128c   :  { %v3049_v54 = vpack.c.bf16 %v2257_v27, %v2253_v36 }
0x1317   :  { %v2074_v45 = vpop.xlane.xlu1 %2073 }
0x1318   :  { %v2076_v8 = vmul.f32 0.03125, %v2074_v45  ;;  %v2071_v9 = vpop.xlane.xlu0 %2070  ;;  %v2266_v45 = vld [vmem:[%s4265_s10 + $0x128] sm:$0xff] }
0x1319   :  { %v2075_v12 = vmul.f32 0.03125, %v2071_v9  ;;  %v3051_v9 = vpack.c.bf16 %v2266_v45, %v2262_v1 }
0x131a   :  { %v2078_v13 = vadd.f32 1e-05, %v2076_v8  ;;  %v2264_v8 = vld [vmem:[%s4265_s10 + $0x118] sm:$0xff] }
0x131b   :  { %v2077_v14 = vadd.f32 1e-05, %v2075_v12  ;;  %v2268_v12 = vld [vmem:[%s4265_s10 + $0x138] sm:$0xff] }
0x131c   :  { %3277 = vrsqrt.f32 %v2078_v13  ;;  %v2261_v13 = vld [vmem:[%s4265_s10 + $0x100] sm:$0xff] }
0x131d   :  { %3279 = vrsqrt.f32 %v2077_v14  ;;  %v2265_v14 = vld [vmem:[%s4265_s10 + $0x120] sm:$0xff] }
0x1326   :  { %v3278_v15 = vpop.eup %3277 }
0x1327   :  { %v3280_v18 = vpop.eup %3279  ;;  %v2082_v37 = vmul.f32 %v3278_v15, %v2066_v25  ;;  %v2258_v25 = vld [vmem:[%s4265_s10 + $0xe8] sm:$0xff]  ;;  %v3083_v15 = vpack.c.bf16 %v2268_v12, %v2264_v8 }
0x1328   :  { %v2081_v0 = vmul.f32 %v3280_v18, %v2065_v3  ;;  %v2256_v3 = vld [vmem:[%s4265_s10 + $0xd8] sm:$0xff]  ;;  %v3047_v4 = vpack.c.bf16 %v2258_v25, %v2254_v63  ;;  %v3053_v18 = vpack.c.bf16 %v2265_v14, %v2261_v13  ;;  %v2627_v25 = vld [vmem:[%s4266_s9] ss:$0 sm:$0xff] }
0x1329   :  { %v3079_v10 = vpack.c.bf16 %v2260_v5, %v2256_v3 }
0x132a   :  { %2896 = vmatprep.mubr.msk.f32.mxu0 %vm57_vm0, %v2081_v0  ;;  %3048 = vmatprep.subr.bf16.mxu1 %v3047_v4  ;;  %v2263_v0 = vld [vmem:[%s4265_s10 + $0x110] sm:$0xff] }
0x132b   :  { %2897 = vmatmul.mubr.msk.f32.vlgmr.msra.gmra.mrb[12].mxu0 %vm57_vm0, %v2082_v37  ;;  %3050 = vmatpush1.bf16.msra.mxu1 %v3049_v54  ;;  %v2267_v37 = vld [vmem:[%s4265_s10 + $0x130] sm:$0xff] }
0x132c   :  { %2456 = vmatprep.mubr.f32.mxu0 %v3289_v56  ;;  %3070 = vmatpush1.bf16.msra.mxu0 %v3069_v38  ;;  %v3085_v55 = vpack.c.bf16 %v2267_v37, %v2263_v0  ;;  %v2275_v38 = vld [vmem:[%s4265_s10 + $0x170] sm:$0xff] }
0x132d   :  { %3072 = vmatprep.subr.bf16.mxu0 %v3071_v41  ;;  %3052 = vmatprep.subr.bf16.mxu1 %v3051_v9  ;;  %v3089_v47 = vpack.c.bf16 %v2275_v38, %v2271_v23  ;;  %v2281_v41 = vld [vmem:[%s4265_s10 + $0x1a0] sm:$0xff] }
0x132e   :  { %v3061_v43 = vpack.c.bf16 %v2281_v41, %v2277_v44 }
0x132f   :  { %3054 = vmatpush1.bf16.msra.mxu1 %v3053_v18 }
0x1330   :  { %3074 = vmatpush1.bf16.msra.mxu0 %v3073_v24  ;;  %3056 = vmatprep.subr.bf16.mxu1 %v3055_v26  ;;  %v2283_v24 = vld [vmem:[%s4265_s10 + $0x1b0] sm:$0xff] }
0x1331   :  { %3076 = vmatprep.subr.bf16.mxu0 %v3075_v53  ;;  %v3093_v48 = vpack.c.bf16 %v2283_v24, %v2279_v46  ;;  %v2289_v53 = vld [vmem:[%s4265_s10 + $0x1e0] sm:$0xff] }
0x1332   :  { %v3065_v59 = vpack.c.bf16 %v2289_v53, %v2285_v29 }
0x1333   :  { %3058 = vmatpush1.bf16.msra.mxu1 %v3057_v20 }
0x1334   :  { %3078 = vmatpush1.bf16.msra.mxu0 %v3077_v61  ;;  %3060 = vmatprep.subr.bf16.mxu1 %v3059_v11  ;;  %v2291_v61 = vld [vmem:[%s4265_s10 + $0x1f0] sm:$0xff] }
0x1335   :  { %3080 = vmatprep.subr.bf16.mxu0 %v3079_v10  ;;  %v3097_v63 = vpack.c.bf16 %v2291_v61, %v2287_v60  ;;  %v2309_v60 = vsub.s32 3, %v3636_v17 }
0x1337   :  { %3062 = vmatpush1.bf16.msra.mxu1 %v3061_v43 }
0x1338   :  { %3082 = vmatpush1.bf16.msra.mxu0 %v3081_v7  ;;  %3064 = vmatprep.subr.bf16.mxu1 %v3063_v28 }
0x1339   :  { %3084 = vmatprep.subr.bf16.mxu0 %v3083_v15 }
0x133b   :  { %3066 = vmatpush1.bf16.msra.mxu1 %v3065_v59  ;;  %v2293_v59 = vld [vmem:[%s4267_s11] sm:$0xf] }
0x133c   :  { %3086 = vmatpush1.bf16.msra.mxu0 %v3085_v55  ;;  %v2298_v61 = vrot.slane %v2293_v59, %v3644_v50 }
0x133d   :  { %3088 = vmatprep.subr.bf16.mxu0 %v3087_v34 }
0x1340   :  { %3090 = vmatpush1.bf16.msra.mxu0 %v3089_v47 }
0x1341   :  { %3092 = vmatprep.subr.bf16.mxu0 %v3091_v42 }
0x1344   :  { %3094 = vmatpush1.bf16.msra.mxu0 %v3093_v48 }
0x1345   :  { %3096 = vmatprep.subr.bf16.mxu0 %v3095_v21 }
0x1348   :  { %3098 = vmatpush1.bf16.msra.mxu0 %v3097_v63  ;;  %v2306_v63 = vrot.slane %v2293_v59, %v3647_v51 }
0x13fe   :  { %v2898_v3 = vpop.f32.mrb[12].mxu0 }
0x13ff   :  { %v2172_v4 = vadd.f32 %v2898_v3, %v2627_v25  ;;  %v2166_v5 = vpop.f32.mrb[13].mxu0  ;;  %v2310_v3 = vrot.slane %v2293_v59, %v2309_v60 }
0x1400   :  { %v2167_v36 = vadd.f32 %v2627_v25, %v2166_v5  ;;  %v2302_v25 = vrot.slane %v2293_v59, %v3640_v49 }
0x1401   :  { %v2178_v27 = vmul.f32 0.70710677, %v2172_v4  ;;  %v2176_v53 = vmul.f32 0.5, %v2172_v4 }
0x1402   :  { %v2177_v10 = vmul.f32 0.70710677, %v2167_v36  ;;  %v2175_v57 = vmul.f32 0.5, %v2167_v36 }
0x1403   :  { %v2180_v54 = vand.u32 2147483647, %v2178_v27  ;;  %vm2220_vm13 = vcmp.ge.f32.partialorder %v2178_v27, 0.0 }
0x1404   :  { %v2179_v31 = vand.u32 2147483647, %v2177_v10  ;;  %vm2219_vm14 = vcmp.ge.f32.partialorder %v2177_v10, 0.0 }
0x1405   :  { %v2182_v6 = vmul.f32 0.3275911, %v2180_v54  ;;  %v2208_v8 = vsub.f32 0.0, %v2180_v54 }
0x1406   :  { %v2181_v7 = vmul.f32 0.3275911, %v2179_v31  ;;  %v2207_v9 = vsub.f32 0.0, %v2179_v31 }
0x1407   :  { %v2184_v1 = vadd.f32 1.0, %v2182_v6  ;;  %v2210_v13 = vmul.f32 %v2208_v8, %v2180_v54 }
0x1408   :  { %v2183_v45 = vadd.f32 1.0, %v2181_v7  ;;  %v2209_v15 = vmul.f32 %v2207_v9, %v2179_v31 }
0x1409   :  { %3281 = vrcp.f32 %v2184_v1  ;;  %v2213_v55 = vmul.f32 1.442695, %v2210_v13 }
0x140a   :  { %3283 = vrcp.f32 %v2183_v45  ;;  %v2211_v22 = vmul.f32 1.442695, %v2209_v15 }
0x140b   :  { %3285 = vpow2.f32 %v2213_v55 }
0x140c   :  { %3287 = vpow2.f32 %v2211_v22 }
0x1413   :  { %v3282_v12 = vpop.eup %3281 }
0x1414   :  { %v3284_v14 = vpop.eup %3283  ;;  %v2190_v18 = vmul.f32 1.0614054, %v3282_v12 }
0x1415   :  { %v2189_v0 = vmul.f32 1.0614054, %v3284_v14  ;;  %v3286_v11 = vpop.eup %3285 }
0x1416   :  { %v2192_v37 = vadd.f32 -1.4531521, %v2190_v18  ;;  %v3288_v44 = vpop.eup %3287 }
0x1417   :  { %v2191_v19 = vadd.f32 -1.4531521, %v2189_v0 }
0x1418   :  { %v2194_v16 = vmul.f32 %v3282_v12, %v2192_v37 }
0x1419   :  { %v2193_v26 = vmul.f32 %v3284_v14, %v2191_v19 }
0x141a   :  { %v2196_v30 = vadd.f32 1.4214138, %v2194_v16 }
0x141b   :  { %v2195_v32 = vadd.f32 1.4214138, %v2193_v26 }
0x141c   :  { %v2198_v33 = vmul.f32 %v3282_v12, %v2196_v30 }
0x141d   :  { %v2197_v34 = vmul.f32 %v3284_v14, %v2195_v32 }
0x141e   :  { %v2200_v20 = vadd.f32 -0.28449672, %v2198_v33 }
0x141f   :  { %v2199_v23 = vadd.f32 -0.28449672, %v2197_v34 }
0x1420   :  { %v2202_v38 = vmul.f32 %v3282_v12, %v2200_v20 }
0x1421   :  { %v2201_v47 = vmul.f32 %v3284_v14, %v2199_v23 }
0x1422   :  { %v2204_v39 = vadd.f32 0.2548296, %v2202_v38 }
0x1423   :  { %v2203_v2 = vadd.f32 0.2548296, %v2201_v47 }
0x1424   :  { %v2206_v62 = vmul.f32 %v3282_v12, %v2204_v39 }
0x1425   :  { %v2205_v40 = vmul.f32 %v3284_v14, %v2203_v2 }
0x1426   :  { %v2216_v41 = vmul.f32 %v3286_v11, %v2206_v62 }
0x1427   :  { %v2215_v42 = vmul.f32 %v3288_v44, %v2205_v40 }
0x1428   :  { %v2218_v43 = vsub.f32 1.0, %v2216_v41 }
0x1429   :  { %v2217_v46 = vsub.f32 1.0, %v2215_v42 }
0x142a   :  { %v2222_v24 = vsub.f32 0.0, %v2218_v43 }
0x142b   :  { %v2221_v48 = vsub.f32 0.0, %v2217_v46 }
0x142c   :  { %v2224_v35 = vsel %vm2220_vm13, %v2218_v43, %v2222_v24 }
0x142d   :  { %v2223_v52 = vsel %vm2219_vm14, %v2217_v46, %v2221_v48  ;;  %v2226_v29 = vadd.f32 1.0, %v2224_v35 }
0x142e   :  { %v2225_v28 = vadd.f32 1.0, %v2223_v52 }
0x142f   :  { %v2228_v21 = vmul.f32 %v2226_v29, %v2176_v53 }
0x1430   :  { %v2227_v58 = vmul.f32 %v2225_v28, %v2175_v57 }
0x1432   :  { %2380 = vmatmul.mubr.f32.vlgmr.msra.gmra.mrb[12].mxu1 %v2227_v58  ;;  %2457 = vmatmul.mubr.f32.vlgmr.msra.gmra.mrb[14].mxu0 %v2227_v58 }
0x1433   :  { %2385 = vmatprep.mubr.f32.mxu1 %v3289_v56  ;;  %2462 = vmatprep.mubr.f32.mxu0 %v3289_v56 }
0x1436   :  { %2386 = vmatmul.mubr.f32.gmra.mrb[14].mxu1 %v2228_v21  ;;  %2463 = vmatmul.mubr.f32.gmra.mrb[16].mxu0 %v2228_v21 }
0x1505   :  { %v2381_v4 = vpop.f32.mrb[12].mxu1  ;;  %v2458_v5 = vpop.f32.mrb[14].mxu0 }
0x1506   :  { %v2382_v36 = vadd.f32 %v2381_v4, %v2298_v61  ;;  %v2459_v56 = vadd.f32 %v2458_v5, %v2306_v63  ;;  %v2383_v27 = vpop.f32.mrb[13].mxu1  ;;  %v2460_v10 = vpop.f32.mrb[15].mxu0 }
0x1507   :  { %v2384_v54 = vadd.f32 %v2383_v27, %v2302_v25  ;;  %v2461_v31 = vadd.f32 %v2460_v10, %v2310_v3 }
0x1508   :  { %2469 = vst [vmem:[%s4268_s12] sm:$0xff] %v2382_v36  ;;  %2471 = vst [vmem:[%s4268_s12 + $0x10] sm:$0xff] %v2459_v56 }
0x1509   :  { %2470 = vst [vmem:[%s4268_s12 + $0x8] sm:$0xff] %v2384_v54  ;;  %2472 = vst [vmem:[%s4268_s12 + $0x18] sm:$0xff] %v2461_v31  ;;  %v2387_v17 = vpop.f32.mrb[14].mxu1  ;;  %v2464_v49 = vpop.f32.mrb[16].mxu0 }
0x150a   :  { %v2388_v50 = vadd.f32 %v2387_v17, %v2298_v61  ;;  %v2465_v51 = vadd.f32 %v2464_v49, %v2306_v63  ;;  %v2389_v6 = vpop.f32.mrb[15].mxu1  ;;  %v2466_v7 = vpop.f32.mrb[17].mxu0 }
0x150b   :  { %v2390_v1 = vadd.f32 %v2389_v6, %v2302_v25  ;;  %v2467_v45 = vadd.f32 %v2466_v7, %v2310_v3 }
0x150c   :  { %2473 = vst [vmem:[%s4268_s12 + $0x20] sm:$0xff] %v2388_v50  ;;  %2475 = vst [vmem:[%s4268_s12 + $0x30] sm:$0xff] %v2465_v51 }
0x150d   :  { %2474 = vst [vmem:[%s4268_s12 + $0x28] sm:$0xff] %v2390_v1  ;;  %2476 = vst [vmem:[%s4268_s12 + $0x38] sm:$0xff] %v2467_v45 }

</bundles_post_ra>
